<compile_context>
chip_gen: v5e
topology: v5e:2x2
jax: 0.10.0
libtpu: 0.0.40
codegen_flags: <defaults>
</compile_context>

<pallas_src>
import functools

import jax
import jax.numpy as jnp
from jax import lax
from jax.experimental import pallas as pl
from jax.experimental.pallas import tpu as pltpu

EMB = 512          # embedding length (emb_len = 512)
HIDDEN = 200       # nn.Linear(4*512, 200)
HIDDEN_PAD = 256   # lane-dense padding of the hidden axis
BN_EPS = 1e-3      # BatchNorm1d(eps=0.001)
BATCH_ALIGN = 16   # bf16 sublane packing -> keep batch tiles 16-aligned
VMEM_LIMIT = 32 * 1024 * 1024  # explicit scoped-VMEM limit (safe on v5e/v6e/v7x)


def _round_up(x, m):
    return ((x + m - 1) // m) * m


def _pick_batch_tile(b_pad):
    """Largest power-of-two*16 tile <= 512, capped at b_pad//2 so NB >= 2
    whenever possible (v7x megacore sharding); b_pad is a multiple of 16."""
    cap = 512
    if b_pad >= 2 * BATCH_ALIGN:
        cap = min(cap, b_pad // 2)
    tb = BATCH_ALIGN
    while tb * 2 <= cap and b_pad % (tb * 2) == 0:
        tb *= 2
    return tb


def encoder_features_kernel(x_ref, wenc_ref, w1_ref, h_ref, stats_ref):
    """Stub encoder + siamese feature combination + Linear(2048->256pad, no bias),
    plus per-tile BatchNorm partial statistics.

    x_ref: (2, TB, IN) bf16 (stacked x1/x2); wenc: (IN, 512) bf16;
    w1: (2048, 256) bf16; h_ref: (TB, 256) f32; stats_ref: (1, 8, 256) f32.
    """
    tb = x_ref.shape[1]
    in_features = x_ref.shape[2]

    # ---- fused stub encoder: one MXU pass over wenc for both inputs ----
    # (2, TB, IN) -> (2*TB, IN) is a contiguous, tile-aligned merge (TB % 8 == 0).
    xcat = x_ref[...].reshape(2 * tb, in_features)                        # (2TB, IN) bf16
    e = jnp.dot(xcat, wenc_ref[...], preferred_element_type=jnp.float32)  # (2TB, 512) f32
    # L2 normalize per row (facenet embedding convention). Zero (padded) rows
    # stay exactly zero.
    e = e * lax.rsqrt(jnp.sum(e * e, axis=1, keepdims=True) + 1e-12)
    e1 = e[:tb, :]
    e2 = e[tb:, :]

    # ---- siamese feature combination (f1 = e1^2 - e2^2 = (e1-e2)*(e1+e2)) ----
    d = e1 - e2
    s = e1 + e2
    f1 = d * s
    f2 = d * d
    f3 = e1 * e2
    f4 = s

    # ---- Linear(4*512 -> 200 [padded to 256], bias=False) as one K=2048 dot ----
    # Cast to bf16 BEFORE the lane concat: halves the (TB, 2048) copy bytes.
    f = jnp.concatenate(
        [f1.astype(jnp.bfloat16), f2.astype(jnp.bfloat16),
         f3.astype(jnp.bfloat16), f4.astype(jnp.bfloat16)], axis=1)       # (TB, 2048) bf16
    h = jnp.dot(f, w1_ref[...], preferred_element_type=jnp.float32)       # (TB, 256) f32
    h_ref[...] = h

    # ---- per-tile BN partial statistics (padded batch rows are exactly 0) ----
    col_sum = jnp.sum(h, axis=0, keepdims=True)                           # (1, 256)
    col_sq = jnp.sum(h * h, axis=0, keepdims=True)                        # (1, 256)
    tile_stats = jnp.concatenate(
        [col_sum, col_sq, jnp.zeros((6, HIDDEN_PAD), jnp.float32)], axis=0)
    stats_ref[...] = tile_stats[None, :, :]


def head_kernel(sum_ref, sq_ref, gamma_ref, beta_ref, w2_ref, b2_ref,
                h_ref, out_ref, *, inv_batch):
    """BatchNorm1d(200) (training-mode batch stats from precomputed sums,
    divisor = real batch size) + ReLU + Linear(200 -> 1), batch-tiled."""
    mean = sum_ref[...] * inv_batch                                # (1, 256)
    var = jnp.maximum(sq_ref[...] * inv_batch - mean * mean, 0.0)  # biased var, as torch BN
    rstd = lax.rsqrt(var + BN_EPS)

    h = h_ref[...]                                                 # (TB, 256) f32
    hn = (h - mean) * rstd * gamma_ref[...] + beta_ref[...]
    hr = jnp.maximum(hn, 0.0)
    # N=1 output: VPU multiply + XLU lane-reduce instead of an MXU matmul.
    out_ref[...] = jnp.sum(hr * w2_ref[...], axis=1, keepdims=True) + b2_ref[0]


def siamese_forward(input1, input2, params):
    """input1/input2: NCHW float32 [B, C, H, W] -> (B, 1) float32."""
    wenc, w1, gamma, beta, w2_row, b2 = params
    B = input1.shape[0]
    in_features = wenc.shape[0]

    x1f = input1.reshape(B, -1).astype(jnp.bfloat16)
    x2f = input2.reshape(B, -1).astype(jnp.bfloat16)

    # Pad the batch so tiles stay sublane-aligned for bf16; padded rows are all
    # zero, so h's padded rows are exactly zero and the BN sums are exact.
    B_pad = _round_up(B, BATCH_ALIGN)
    if B_pad != B:
        pad = ((0, B_pad - B), (0, 0))
        x1f = jnp.pad(x1f, pad)
        x2f = jnp.pad(x2f, pad)

    # Pre-stack the two siamese inputs -> one DMA stream, no in-kernel concat.
    xs = jnp.stack([x1f, x2f], axis=0)                 # (2, B_pad, IN) bf16

    TB = _pick_batch_tile(B_pad)
    NB = B_pad // TB

    wenc_bf = wenc.astype(jnp.bfloat16)
    w1_bf = w1.astype(jnp.bfloat16)

    single = pl.Buffered(buffer_count=1)               # grid-invariant weights

    # ---- pass 1: batch-tiled, pipelined, megacore-parallel ----
    h, stats = pl.pallas_call(
        encoder_features_kernel,
        out_shape=(
            jax.ShapeDtypeStruct((B_pad, HIDDEN_PAD), jnp.float32),
            jax.ShapeDtypeStruct((NB, 8, HIDDEN_PAD), jnp.float32),
        ),
        grid=(NB,),
        in_specs=[
            pl.BlockSpec((2, TB, in_features), lambda i: (0, i, 0)),
            pl.BlockSpec((in_features, EMB), lambda i: (0, 0),
                         pipeline_mode=single),
            pl.BlockSpec((4 * EMB, HIDDEN_PAD), lambda i: (0, 0),
                         pipeline_mode=single),
        ],
        out_specs=(
            pl.BlockSpec((TB, HIDDEN_PAD), lambda i: (i, 0)),
            pl.BlockSpec((1, 8, HIDDEN_PAD), lambda i: (i, 0, 0)),
        ),
        compiler_params=pltpu.CompilerParams(
            dimension_semantics=("parallel",),
            vmem_limit_bytes=VMEM_LIMIT),
    )(xs, wenc_bf, w1_bf)

    # Tiny host-side combine of per-tile partials (NB x 8 x 256 floats).
    totals = jnp.sum(stats, axis=0)                    # (8, 256)
    col_sum = totals[0:1, :]                           # (1, 256)
    col_sq = totals[1:2, :]                            # (1, 256)

    # ---- pass 2: gridded BN + ReLU + final linear over the same batch tiles ----
    out_pad = pl.pallas_call(
        functools.partial(head_kernel, inv_batch=1.0 / float(B)),
        out_shape=jax.ShapeDtypeStruct((B_pad, 1), jnp.float32),
        grid=(NB,),
        in_specs=[
            pl.BlockSpec((1, HIDDEN_PAD), lambda i: (0, 0)),      # col_sum
            pl.BlockSpec((1, HIDDEN_PAD), lambda i: (0, 0)),      # col_sq
            pl.BlockSpec((1, HIDDEN_PAD), lambda i: (0, 0)),      # gamma
            pl.BlockSpec((1, HIDDEN_PAD), lambda i: (0, 0)),      # beta
            pl.BlockSpec((1, HIDDEN_PAD), lambda i: (0, 0)),      # w2_row
            pl.BlockSpec(memory_space=pltpu.MemorySpace.SMEM),    # b2 scalar
            pl.BlockSpec((TB, HIDDEN_PAD), lambda i: (i, 0)),     # h tile
        ],
        out_specs=pl.BlockSpec((TB, 1), lambda i: (i, 0)),
        compiler_params=pltpu.CompilerParams(
            dimension_semantics=("parallel",)),
    )(col_sum, col_sq, gamma, beta, w2_row, b2, h)

    # Only the final (B_pad, 1) -> (B, 1) slice (tiny) happens outside kernels.
    return out_pad[:B]


def init_params(key, in_features):
    k_enc, k_w1, k_w2, k_b2 = jax.random.split(key, 4)
    # Stub encoder weight: [in_features, 512].
    wenc = jax.random.normal(k_enc, (in_features, EMB), jnp.float32) * (
        1.0 / jnp.sqrt(float(in_features)))
    # Linear(2048, 200, bias=False), stored as [2048, 200] (x @ W), zero-padded
    # on the output axis to 256 lanes.
    w1 = jax.random.uniform(k_w1, (4 * EMB, HIDDEN), jnp.float32,
                            minval=-1.0, maxval=1.0) / jnp.sqrt(4.0 * EMB)
    w1 = jnp.pad(w1, ((0, 0), (0, HIDDEN_PAD - HIDDEN)))
    # BatchNorm1d(200) affine params, default init (weight=1, bias=0), padded.
    gamma = jnp.ones((1, HIDDEN_PAD), jnp.float32)
    beta = jnp.zeros((1, HIDDEN_PAD), jnp.float32)
    # Linear(200, 1): weight stored as a (1, 256) zero-padded row + scalar bias.
    w2 = jax.random.uniform(k_w2, (1, HIDDEN), jnp.float32,
                            minval=-1.0, maxval=1.0) / jnp.sqrt(float(HIDDEN))
    w2_row = jnp.pad(w2, ((0, 0), (0, HIDDEN_PAD - HIDDEN)))
    b2 = jax.random.uniform(k_b2, (1,), jnp.float32,
                            minval=-1.0, maxval=1.0) / jnp.sqrt(float(HIDDEN))
    # Padding-correctness invariants: padded hidden columns must stay zero so
    # the 200 -> 256 lane padding is exact end-to-end.
    assert float(jnp.max(jnp.abs(w1[:, HIDDEN:]))) == 0.0
    assert float(jnp.max(jnp.abs(w2_row[:, HIDDEN:]))) == 0.0
    return (wenc, w1, gamma, beta, w2_row, b2)


if __name__ == "__main__":
    B, C, H, W = 2, 3, 16, 16
    key = jax.random.PRNGKey(0)
    k1, k2, kp = jax.random.split(key, 3)
    input1 = jax.random.normal(k1, (B, C, H, W), jnp.float32)
    input2 = jax.random.normal(k2, (B, C, H, W), jnp.float32)
    params = init_params(kp, C * H * W)

    fwd = jax.jit(siamese_forward)
    out = fwd(input1, input2, params)
    out = jax.block_until_ready(out)
    assert out.shape == (B, 1) and out.dtype == jnp.float32
    print("KERNEL_OK")
</pallas_src>

<mosaic_0001>
module attributes {stable_mosaic.version = 11 : i64} {
  func.func @encoder_features_kernel(%arg0: i32, %arg1: memref<2x16x768xbf16, #tpu.memory_space<vmem>>, %arg2: memref<768x512xbf16, #tpu.memory_space<vmem>>, %arg3: memref<2048x256xbf16, #tpu.memory_space<vmem>>, %arg4: memref<16x256xf32, #tpu.memory_space<vmem>>, %arg5: memref<1x8x256xf32, #tpu.memory_space<vmem>>) attributes {dimension_semantics = [#tpu.dimension_semantics<parallel>], iteration_bounds = array<i64: 1>, scalar_prefetch = 0 : i64, scratch_operands = 0 : i64, tpu.core_type = #tpu.core_type<tc>, window_params = [{transform_indices = @transform_0, window_bounds = array<i64: 2, 16, 768>}, {pipeline_mode = #tpu.pipeline_mode<synchronous>, transform_indices = @transform_1, window_bounds = array<i64: 768, 512>}, {pipeline_mode = #tpu.pipeline_mode<synchronous>, transform_indices = @transform_2, window_bounds = array<i64: 2048, 256>}, {transform_indices = @transform_3, window_bounds = array<i64: 16, 256>}, {transform_indices = @transform_4, window_bounds = array<i64: 1, 8, 256>}]} {
    %c0 = arith.constant 0 : index
    %c0_0 = arith.constant 0 : index
    %c0_1 = arith.constant 0 : index
    %0 = vector.load %arg1[%c0, %c0_0, %c0_1] : memref<2x16x768xbf16, #tpu.memory_space<vmem>>, vector<2x16x768xbf16>
    %1 = vector.shape_cast %0 : vector<2x16x768xbf16> to vector<32x768xbf16>
    %c0_2 = arith.constant 0 : index
    %c0_3 = arith.constant 0 : index
    %2 = vector.load %arg2[%c0_2, %c0_3] : memref<768x512xbf16, #tpu.memory_space<vmem>>, vector<768x512xbf16>
    %cst = arith.constant dense<0.000000e+00> : vector<32x512xf32>
    %3 = tpu.matmul %1, %2, %cst {dimension_numbers = #tpu.dot_dimension_numbers<[1], [0], [0], [1], [0, 0, 1, 1], [], []>} : vector<32x768xbf16>, vector<768x512xbf16>, vector<32x512xf32> -> vector<32x512xf32>
    %4 = arith.mulf %3, %3 : vector<32x512xf32>
    %cst_4 = arith.constant dense<0.000000e+00> : vector<32xf32>
    %5 = vector.multi_reduction <add>, %4, %cst_4 [1] : vector<32x512xf32> to vector<32xf32>
    %6 = vector.shape_cast %5 : vector<32xf32> to vector<32x1xf32>
    %cst_5 = arith.constant 9.99999996E-13 : f32
    %7 = vector.broadcast %cst_5 : f32 to vector<32x1xf32>
    %8 = arith.addf %6, %7 : vector<32x1xf32>
    %9 = math.rsqrt %8 : vector<32x1xf32>
    %10 = vector.broadcast %9 : vector<32x1xf32> to vector<32x512xf32>
    %11 = arith.mulf %3, %10 : vector<32x512xf32>
    %12 = vector.extract_strided_slice %11 {offsets = [0, 0], sizes = [16, 512], strides = [1, 1]} : vector<32x512xf32> to vector<16x512xf32>
    %13 = vector.extract_strided_slice %11 {offsets = [16, 0], sizes = [16, 512], strides = [1, 1]} : vector<32x512xf32> to vector<16x512xf32>
    %14 = arith.subf %12, %13 : vector<16x512xf32>
    %15 = arith.addf %12, %13 : vector<16x512xf32>
    %16 = arith.mulf %14, %15 : vector<16x512xf32>
    %17 = arith.mulf %14, %14 : vector<16x512xf32>
    %18 = arith.mulf %12, %13 : vector<16x512xf32>
    %19 = arith.truncf %16 : vector<16x512xf32> to vector<16x512xbf16>
    %20 = arith.truncf %17 : vector<16x512xf32> to vector<16x512xbf16>
    %21 = arith.truncf %18 : vector<16x512xf32> to vector<16x512xbf16>
    %22 = arith.truncf %15 : vector<16x512xf32> to vector<16x512xbf16>
    %23 = tpu.concatenate %19, %20, %21, %22 in 1 : vector<16x512xbf16>, vector<16x512xbf16>, vector<16x512xbf16>, vector<16x512xbf16> -> vector<16x2048xbf16>
    %c0_6 = arith.constant 0 : index
    %c0_7 = arith.constant 0 : index
    %24 = vector.load %arg3[%c0_6, %c0_7] : memref<2048x256xbf16, #tpu.memory_space<vmem>>, vector<2048x256xbf16>
    %cst_8 = arith.constant dense<0.000000e+00> : vector<16x256xf32>
    %25 = tpu.matmul %23, %24, %cst_8 {dimension_numbers = #tpu.dot_dimension_numbers<[1], [0], [0], [1], [0, 0, 1, 1], [], []>} : vector<16x2048xbf16>, vector<2048x256xbf16>, vector<16x256xf32> -> vector<16x256xf32>
    %c0_9 = arith.constant 0 : index
    %c0_10 = arith.constant 0 : index
    %26 = vector.load %arg4[%c0_9, %c0_10] : memref<16x256xf32, #tpu.memory_space<vmem>>, vector<16x256xf32>
    tpu.vector_store %arg4[%c0_9, %c0_10], %25 {strides = array<i32>} : memref<16x256xf32, #tpu.memory_space<vmem>>, vector<16x256xf32>,
    %cst_11 = arith.constant dense<0.000000e+00> : vector<256xf32>
    %27 = vector.multi_reduction <add>, %25, %cst_11 [0] : vector<16x256xf32> to vector<256xf32>
    %28 = vector.shape_cast %27 : vector<256xf32> to vector<1x256xf32>
    %29 = arith.mulf %25, %25 : vector<16x256xf32>
    %cst_12 = arith.constant dense<0.000000e+00> : vector<256xf32>
    %30 = vector.multi_reduction <add>, %29, %cst_12 [0] : vector<16x256xf32> to vector<256xf32>
    %31 = vector.shape_cast %30 : vector<256xf32> to vector<1x256xf32>
    %cst_13 = arith.constant 0.000000e+00 : f32
    %32 = vector.broadcast %cst_13 : f32 to vector<6x256xf32>
    %33 = tpu.concatenate %28, %31, %32 in 0 : vector<1x256xf32>, vector<1x256xf32>, vector<6x256xf32> -> vector<8x256xf32>
    %34 = vector.shape_cast %33 : vector<8x256xf32> to vector<1x8x256xf32>
    %c0_14 = arith.constant 0 : index
    %c0_15 = arith.constant 0 : index
    %c0_16 = arith.constant 0 : index
    %35 = vector.load %arg5[%c0_14, %c0_15, %c0_16] : memref<1x8x256xf32, #tpu.memory_space<vmem>>, vector<1x8x256xf32>
    tpu.vector_store %arg5[%c0_14, %c0_15, %c0_16], %34 {strides = array<i32>} : memref<1x8x256xf32, #tpu.memory_space<vmem>>, vector<1x8x256xf32>,
    return
  }
  func.func @transform_0(%arg0: i32) -> (i32, i32, i32) {
    %c0_i32 = arith.constant 0 : i32
    %c0_i32_0 = arith.constant 0 : i32
    %c0_i32_1 = arith.constant 0 : i32
    return %c0_i32, %arg0, %c0_i32_0 : i32, i32, i32
  }
  func.func @transform_1(%arg0: i32) -> (i32, i32) {
    %c0_i32 = arith.constant 0 : i32
    %c0_i32_0 = arith.constant 0 : i32
    %c0_i32_1 = arith.constant 0 : i32
    return %c0_i32, %c0_i32_0 : i32, i32
  }
  func.func @transform_2(%arg0: i32) -> (i32, i32) {
    %c0_i32 = arith.constant 0 : i32
    %c0_i32_0 = arith.constant 0 : i32
    %c0_i32_1 = arith.constant 0 : i32
    return %c0_i32, %c0_i32_0 : i32, i32
  }
  func.func @transform_3(%arg0: i32) -> (i32, i32) {
    %c0_i32 = arith.constant 0 : i32
    %c0_i32_0 = arith.constant 0 : i32
    return %arg0, %c0_i32 : i32, i32
  }
  func.func @transform_4(%arg0: i32) -> (i32, i32, i32) {
    %c0_i32 = arith.constant 0 : i32
    %c0_i32_0 = arith.constant 0 : i32
    %c0_i32_1 = arith.constant 0 : i32
    return %arg0, %c0_i32, %c0_i32_0 : i32, i32, i32
  }
}

module attributes {stable_mosaic.version = 11 : i64} {
  func.func @head_kernel(%arg0: i32, %arg1: memref<1x256xf32, #tpu.memory_space<vmem>>, %arg2: memref<1x256xf32, #tpu.memory_space<vmem>>, %arg3: memref<1x256xf32, #tpu.memory_space<vmem>>, %arg4: memref<1x256xf32, #tpu.memory_space<vmem>>, %arg5: memref<1x256xf32, #tpu.memory_space<vmem>>, %arg6: memref<1xf32, #tpu.memory_space<smem>>, %arg7: memref<16x256xf32, #tpu.memory_space<vmem>>, %arg8: memref<16x1xf32, #tpu.memory_space<vmem>>) attributes {dimension_semantics = [#tpu.dimension_semantics<parallel>], iteration_bounds = array<i64: 1>, scalar_prefetch = 0 : i64, scratch_operands = 0 : i64, tpu.core_type = #tpu.core_type<tc>, window_params = [{pipeline_mode = #tpu.pipeline_mode<synchronous>, transform_indices = @transform_0, window_bounds = array<i64: 1, 256>}, {pipeline_mode = #tpu.pipeline_mode<synchronous>, transform_indices = @transform_1, window_bounds = array<i64: 1, 256>}, {pipeline_mode = #tpu.pipeline_mode<synchronous>, transform_indices = @transform_2, window_bounds = array<i64: 1, 256>}, {pipeline_mode = #tpu.pipeline_mode<synchronous>, transform_indices = @transform_3, window_bounds = array<i64: 1, 256>}, {pipeline_mode = #tpu.pipeline_mode<synchronous>, transform_indices = @transform_4, window_bounds = array<i64: 1, 256>}, {transform_indices = @transform_5, window_bounds = array<i64: 1>}, {transform_indices = @transform_6, window_bounds = array<i64: 16, 256>}, {transform_indices = @transform_7, window_bounds = array<i64: 16, 1>}]} {
    %c0 = arith.constant 0 : index
    %c0_0 = arith.constant 0 : index
    %0 = vector.load %arg1[%c0, %c0_0] : memref<1x256xf32, #tpu.memory_space<vmem>>, vector<1x256xf32>
    %cst = arith.constant 5.000000e-01 : f32
    %1 = vector.broadcast %cst : f32 to vector<1x256xf32>
    %2 = arith.mulf %0, %1 : vector<1x256xf32>
    %c0_1 = arith.constant 0 : index
    %c0_2 = arith.constant 0 : index
    %3 = vector.load %arg2[%c0_1, %c0_2] : memref<1x256xf32, #tpu.memory_space<vmem>>, vector<1x256xf32>
    %cst_3 = arith.constant 5.000000e-01 : f32
    %4 = vector.broadcast %cst_3 : f32 to vector<1x256xf32>
    %5 = arith.mulf %3, %4 : vector<1x256xf32>
    %6 = arith.mulf %2, %2 : vector<1x256xf32>
    %7 = arith.subf %5, %6 : vector<1x256xf32>
    %cst_4 = arith.constant 0.000000e+00 : f32
    %8 = vector.broadcast %cst_4 : f32 to vector<1x256xf32>
    %9 = arith.maximumf %7, %8 : vector<1x256xf32>
    %cst_5 = arith.constant 1.000000e-03 : f32
    %10 = vector.broadcast %cst_5 : f32 to vector<1x256xf32>
    %11 = arith.addf %9, %10 : vector<1x256xf32>
    %12 = math.rsqrt %11 : vector<1x256xf32>
    %c0_6 = arith.constant 0 : index
    %c0_7 = arith.constant 0 : index
    %13 = vector.load %arg7[%c0_6, %c0_7] : memref<16x256xf32, #tpu.memory_space<vmem>>, vector<16x256xf32>
    %14 = vector.broadcast %2 : vector<1x256xf32> to vector<16x256xf32>
    %15 = arith.subf %13, %14 : vector<16x256xf32>
    %16 = vector.broadcast %12 : vector<1x256xf32> to vector<16x256xf32>
    %17 = arith.mulf %15, %16 : vector<16x256xf32>
    %c0_8 = arith.constant 0 : index
    %c0_9 = arith.constant 0 : index
    %18 = vector.load %arg3[%c0_8, %c0_9] : memref<1x256xf32, #tpu.memory_space<vmem>>, vector<1x256xf32>
    %19 = vector.broadcast %18 : vector<1x256xf32> to vector<16x256xf32>
    %20 = arith.mulf %17, %19 : vector<16x256xf32>
    %c0_10 = arith.constant 0 : index
    %c0_11 = arith.constant 0 : index
    %21 = vector.load %arg4[%c0_10, %c0_11] : memref<1x256xf32, #tpu.memory_space<vmem>>, vector<1x256xf32>
    %22 = vector.broadcast %21 : vector<1x256xf32> to vector<16x256xf32>
    %23 = arith.addf %20, %22 : vector<16x256xf32>
    %cst_12 = arith.constant 0.000000e+00 : f32
    %24 = vector.broadcast %cst_12 : f32 to vector<16x256xf32>
    %25 = arith.maximumf %23, %24 : vector<16x256xf32>
    %c0_13 = arith.constant 0 : index
    %c0_14 = arith.constant 0 : index
    %26 = vector.load %arg5[%c0_13, %c0_14] : memref<1x256xf32, #tpu.memory_space<vmem>>, vector<1x256xf32>
    %27 = vector.broadcast %26 : vector<1x256xf32> to vector<16x256xf32>
    %28 = arith.mulf %25, %27 : vector<16x256xf32>
    %cst_15 = arith.constant dense<0.000000e+00> : vector<16xf32>
    %29 = vector.multi_reduction <add>, %28, %cst_15 [1] : vector<16x256xf32> to vector<16xf32>
    %30 = vector.shape_cast %29 : vector<16xf32> to vector<16x1xf32>
    %c0_16 = arith.constant 0 : index
    %31 = memref.load %arg6[%c0_16] : memref<1xf32, #tpu.memory_space<smem>>
    %32 = vector.broadcast %31 : f32 to vector<16x1xf32>
    %33 = arith.addf %30, %32 : vector<16x1xf32>
    %c0_17 = arith.constant 0 : index
    %c0_18 = arith.constant 0 : index
    %34 = vector.load %arg8[%c0_17, %c0_18] : memref<16x1xf32, #tpu.memory_space<vmem>>, vector<16x1xf32>
    tpu.vector_store %arg8[%c0_17, %c0_18], %33 {strides = array<i32>} : memref<16x1xf32, #tpu.memory_space<vmem>>, vector<16x1xf32>,
    return
  }
  func.func @transform_0(%arg0: i32) -> (i32, i32) {
    %c0_i32 = arith.constant 0 : i32
    %c0_i32_0 = arith.constant 0 : i32
    %c0_i32_1 = arith.constant 0 : i32
    return %c0_i32, %c0_i32_0 : i32, i32
  }
  func.func @transform_1(%arg0: i32) -> (i32, i32) {
    %c0_i32 = arith.constant 0 : i32
    %c0_i32_0 = arith.constant 0 : i32
    %c0_i32_1 = arith.constant 0 : i32
    return %c0_i32, %c0_i32_0 : i32, i32
  }
  func.func @transform_2(%arg0: i32) -> (i32, i32) {
    %c0_i32 = arith.constant 0 : i32
    %c0_i32_0 = arith.constant 0 : i32
    %c0_i32_1 = arith.constant 0 : i32
    return %c0_i32, %c0_i32_0 : i32, i32
  }
  func.func @transform_3(%arg0: i32) -> (i32, i32) {
    %c0_i32 = arith.constant 0 : i32
    %c0_i32_0 = arith.constant 0 : i32
    %c0_i32_1 = arith.constant 0 : i32
    return %c0_i32, %c0_i32_0 : i32, i32
  }
  func.func @transform_4(%arg0: i32) -> (i32, i32) {
    %c0_i32 = arith.constant 0 : i32
    %c0_i32_0 = arith.constant 0 : i32
    %c0_i32_1 = arith.constant 0 : i32
    return %c0_i32, %c0_i32_0 : i32, i32
  }
  func.func @transform_5(%arg0: i32) -> i32 {
    %c0_i32 = arith.constant 0 : i32
    %c0_i32_0 = arith.constant 0 : i32
    return %c0_i32 : i32
  }
  func.func @transform_6(%arg0: i32) -> (i32, i32) {
    %c0_i32 = arith.constant 0 : i32
    %c0_i32_0 = arith.constant 0 : i32
    return %arg0, %c0_i32 : i32, i32
  }
  func.func @transform_7(%arg0: i32) -> (i32, i32) {
    %c0_i32 = arith.constant 0 : i32
    %c0_i32_0 = arith.constant 0 : i32
    return %arg0, %c0_i32 : i32, i32
  }
}

</mosaic_0001>

<bundles_post_ra>
// kernel: siamese_forward.3
= control target key start
LH: loop header
LB: loop body
LE: loop exit
PB: predicated region body
PF: predicated region fallthrough
CT: control target
= control target key end

     0   :  { %vm111_vm3 = vcmask 7168   ;;  %s196_s0 = inlined_call_operand.vmem [shape: f32[1,256], index: 0, kind: input, shape index: {}]   ;;  %s197_s1 = inlined_call_operand.vmem [shape: f32[1,256], index: 1, kind: input, shape index: {}]   ;;  %s198_s6 = inlined_call_operand.vmem [shape: f32[16,256], index: 6, kind: input, shape index: {}]   ;;  %s199_s2 = inlined_call_operand.vmem [shape: f32[1,256], index: 2, kind: input, shape index: {}]   ;;  %s200_s3 = inlined_call_operand.vmem [shape: f32[1,256], index: 3, kind: input, shape index: {}]   ;;  %s201_s4 = inlined_call_operand.vmem [shape: f32[1,256], index: 4, kind: input, shape index: {}]   ;;  %s202_s5 = inlined_call_operand.<no memory space> [shape: f32[1], index: 5, kind: input, shape index: {}]   ;;  %s203_s7 = inlined_call_operand.vmem [shape: f32[16,1], index: 7, kind: output, shape index: {}]  }
   0x1   :  { %v27_v0 = vld [vmem:[%s196_s0] sm:$0x3]  ;;  %v46_v16 = vld [vmem:[%s198_s6 + $0x8] sm:$0xff]  ;;  %v47_v17 = vld [vmem:[%s198_s6 + $0x10] sm:$0xff]  ;;  %v108_v58 = vstv %s202_s5 }
   0x2   :  { %v29_v1 = vld [vmem:[%s197_s1] sm:$0x3]  ;;  %v28_v2 = vmul.f32 0.5, %v27_v0  ;;  %v48_v18 = vld [vmem:[%s198_s6 + $0x18] sm:$0xff] }
   0x3   :  { %v30_v3 = vmul.f32 0.5, %v29_v1  ;;  %v45_v12 = vld [vmem:[%s198_s6] sm:$0xff] }
   0x4   :  { %v31_v4 = vmul.f32 %v28_v2, %v28_v2  ;;  %v50_v13 = vperm.slane %v28_v2, 0  ;;  %v51_v14 = vperm.slane %v28_v2, 1  ;;  %v67_v20 = vld [vmem:[%s199_s2] sm:$0x3] }
   0x5   :  { %v77_v23 = vld [vmem:[%s200_s3] sm:$0x3]  ;;  %v69_v29 = vperm.slane %v67_v20, 0  ;;  %v70_v30 = vperm.slane %v67_v20, 1 }
   0x6   :  { %v32_v5 = vsub.f32 %v30_v3, %v31_v4  ;;  %v54_v21 = vsub.f32 %v45_v12, %v50_v13  ;;  %v55_v22 = vsub.f32 %v46_v16, %v51_v14  ;;  %v56_v24 = vsub.f32 %v47_v17, %v50_v13  ;;  %v91_v35 = vld [vmem:[%s201_s4] sm:$0x3] }
   0x7   :  { %v57_v25 = vsub.f32 %v48_v18, %v51_v14  ;;  %v79_v31 = vperm.slane %v77_v23, 0  ;;  %v80_v32 = vperm.slane %v77_v23, 1  ;;  %v93_v42 = vperm.slane %v91_v35, 0 }
   0x8   :  { %v33_v6 = vmax.f32 %v32_v5, 0.0  ;;  %v94_v43 = vperm.slane %v91_v35, 1 }
   0xa   :  { %v34_v7 = vadd.f32 0.001, %v33_v6 }
   0xc   :  { %118 = vrsqrt.f32 %v34_v7  ;;  %vm41_vm0 = vweird.f32 %v34_v7 }
  0x12   :  { %v119_v8 = vpop.eup %118 }
  0x13   :  { %v36_v9 = vmul.f32 %v119_v8, %v34_v7  ;;  %vm42_vm1 = vweird.f32 %v119_v8 }
  0x14   :  { %vm43_vm2 = vmor %vm41_vm0, %vm42_vm1 }
  0x15   :  { %v37_v10 = vmul.f32 %v119_v8, %v36_v9 }
  0x17   :  { %v38_v11 = vmul.f32 0.5, %v37_v10 }
  0x19   :  { %v39_v15 = vsub.f32 1.5, %v38_v11 }
  0x1b   :  { %v40_v19 = vmul.f32 %v119_v8, %v39_v15 }
  0x1d   :  { %v44_v26 = vsel %vm43_vm2, %v119_v8, %v40_v19 }
  0x1e   :  { %v59_v27 = vperm.slane %v44_v26, 0  ;;  %v60_v28 = vperm.slane %v44_v26, 1 }
  0x20   :  { %v63_v33 = vmul.f32 %v59_v27, %v54_v21  ;;  %v64_v34 = vmul.f32 %v60_v28, %v55_v22  ;;  %v65_v36 = vmul.f32 %v59_v27, %v56_v24  ;;  %v66_v37 = vmul.f32 %v60_v28, %v57_v25 }
  0x22   :  { %v73_v38 = vmul.f32 %v69_v29, %v63_v33  ;;  %v74_v39 = vmul.f32 %v70_v30, %v64_v34  ;;  %v75_v40 = vmul.f32 %v69_v29, %v65_v36  ;;  %v76_v41 = vmul.f32 %v70_v30, %v66_v37 }
  0x24   :  { %v83_v44 = vadd.f32 %v79_v31, %v73_v38  ;;  %v84_v45 = vadd.f32 %v80_v32, %v74_v39  ;;  %v85_v46 = vadd.f32 %v79_v31, %v75_v40  ;;  %v86_v47 = vadd.f32 %v80_v32, %v76_v41 }
  0x26   :  { %v87_v48 = vmax.f32 %v83_v44, 0.0  ;;  %v88_v49 = vmax.f32 %v84_v45, 0.0  ;;  %v89_v52 = vmax.f32 %v85_v46, 0.0  ;;  %v90_v53 = vmax.f32 %v86_v47, 0.0 }
  0x28   :  { %v97_v50 = vmul.f32 %v93_v42, %v87_v48  ;;  %v98_v51 = vmul.f32 %v94_v43, %v88_v49  ;;  %v99_v55 = vmul.f32 %v93_v42, %v89_v52  ;;  %v100_v56 = vmul.f32 %v94_v43, %v90_v53 }
  0x2a   :  { %v101_v54 = vadd.f32 %v98_v51, %v97_v50  ;;  %v104_v57 = vadd.f32 %v100_v56, %v99_v55 }
  0x2c   :  { %102 = vadd.xlane.f32.xlu0 %v101_v54 }
  0x34   :  { %105 = vadd.xlane.f32.xlu0 %v104_v57 }
  0x9f   :  { %v103_v59 = vpop.xlane.xlu0 %102 }
  0xa0   :  { %v109_v60 = vadd.f32 %v108_v58, %v103_v59 }
  0xa2   :  { %112 = vst.msk [vmem:[%s203_s7] sm:$0xff] %vm111_vm3, %v109_v60 }
  0xa7   :  { %v106_v61 = vpop.xlane.xlu0 %105 }
  0xa8   :  { %v110_v62 = vadd.f32 %v108_v58, %v106_v61 }
  0xaa   :  { %113 = vst.msk [vmem:[%s203_s7 + $0x8] sm:$0xff] %vm111_vm3, %v110_v62 }

// kernel: siamese_forward.2
= control target key start
LH: loop header
LB: loop body
LE: loop exit
PB: predicated region body
PF: predicated region fallthrough
CT: control target
= control target key end

     0   :  { %vm3948_vm12 = vcmask 1040384   ;;  %vm3951_vm13 = vcmask 1041408   ;;  %s9618_s1 = inlined_call_operand.vmem [shape: bf16[768,512], index: 1, kind: input, shape index: {}]   ;;  %s9619_s0 = inlined_call_operand.vmem [shape: bf16[2,16,768], index: 0, kind: input, shape index: {}]   ;;  %s9620_s2 = inlined_call_operand.vmem [shape: bf16[2048,256], index: 2, kind: input, shape index: {}]   ;;  %s9621_s3 = inlined_call_operand.vmem [shape: f32[16,256], index: 3, kind: output, shape index: {0}]   ;;  %s9622_s4 = inlined_call_operand.vmem [shape: f32[1,8,256], index: 4, kind: output, shape index: {1}]  }
   0x1   :  { %v4126_v0 = vld [vmem:[%s9618_s1 + $0xe0] sm:$0xf]  ;;  %v5846_v1 = vld [vmem:[%s9618_s1 + $0xec] sm:$0xf0] }
   0x2   :  { %v4254_v2 = vld [vmem:[%s9618_s1 + $0x1e0] sm:$0xf]  ;;  %v4127_v3 = vor.u32 %v5846_v1, %v4126_v0  ;;  %v5878_v4 = vld [vmem:[%s9618_s1 + $0x1ec] sm:$0xf0] }
   0x3   :  { %v4382_v5 = vld [vmem:[%s9618_s1 + $0x2e0] sm:$0xf]  ;;  %v5910_v6 = vld [vmem:[%s9618_s1 + $0x2ec] sm:$0xf0]  ;;  %v4255_v7 = vor.u32 %v5878_v4, %v4254_v2 }
   0x4   :  { %v4383_v8 = vor.u32 %v5910_v6, %v4382_v5  ;;  %v4510_v9 = vld [vmem:[%s9618_s1 + $0x3e0] sm:$0xf]  ;;  %v5942_v10 = vld [vmem:[%s9618_s1 + $0x3ec] sm:$0xf0]  ;;  %1240 = vmatpush.bf16.msra.mxu0 %v4127_v3 }
   0x5   :  { %v4110_v11 = vld [vmem:[%s9618_s1 + $0xc0] sm:$0xf]  ;;  %v4511_v12 = vor.u32 %v5942_v10, %v4510_v9  ;;  %v5842_v13 = vld [vmem:[%s9618_s1 + $0xcc] sm:$0xf0]  ;;  %1259 = vmatpush.bf16.msra.mxu1 %v4255_v7 }
   0x6   :  { %v4238_v14 = vld [vmem:[%s9618_s1 + $0x1c0] sm:$0xf]  ;;  %v5874_v15 = vld [vmem:[%s9618_s1 + $0x1cc] sm:$0xf0]  ;;  %1278 = vmatpush.bf16.msra.mxu2 %v4383_v8  ;;  %v4111_v16 = vor.u32 %v5842_v13, %v4110_v11 }
   0x7   :  { %v4239_v17 = vor.u32 %v5874_v15, %v4238_v14  ;;  %v4366_v18 = vld [vmem:[%s9618_s1 + $0x2c0] sm:$0xf]  ;;  %v5906_v19 = vld [vmem:[%s9618_s1 + $0x2cc] sm:$0xf0]  ;;  %1297 = vmatpush.bf16.msra.mxu3 %v4511_v12 }
   0x8   :  { %v4494_v20 = vld [vmem:[%s9618_s1 + $0x3c0] sm:$0xf]  ;;  %v4367_v21 = vor.u32 %v5906_v19, %v4366_v18  ;;  %v5938_v22 = vld [vmem:[%s9618_s1 + $0x3cc] sm:$0xf0]  ;;  %1241 = vmatpush.bf16.msra.mxu0 %v4111_v16 }
   0x9   :  { %v4094_v23 = vld [vmem:[%s9618_s1 + $0xa0] sm:$0xf]  ;;  %v5838_v24 = vld [vmem:[%s9618_s1 + $0xac] sm:$0xf0]  ;;  %v4495_v25 = vor.u32 %v5938_v22, %v4494_v20  ;;  %1260 = vmatpush.bf16.msra.mxu1 %v4239_v17 }
   0xa   :  { %v4222_v26 = vld [vmem:[%s9618_s1 + $0x1a0] sm:$0xf]  ;;  %v5870_v27 = vld [vmem:[%s9618_s1 + $0x1ac] sm:$0xf0]  ;;  %v4095_v29 = vor.u32 %v5838_v24, %v4094_v23  ;;  %1279 = vmatpush.bf16.msra.mxu2 %v4367_v21 }
   0xb   :  { %v4350_v28 = vld [vmem:[%s9618_s1 + $0x2a0] sm:$0xf]  ;;  %v5902_v30 = vld [vmem:[%s9618_s1 + $0x2ac] sm:$0xf0]  ;;  %v4223_v33 = vor.u32 %v5870_v27, %v4222_v26  ;;  %1298 = vmatpush.bf16.msra.mxu3 %v4495_v25 }
   0xc   :  { %v4478_v31 = vld [vmem:[%s9618_s1 + $0x3a0] sm:$0xf]  ;;  %v5934_v32 = vld [vmem:[%s9618_s1 + $0x3ac] sm:$0xf0]  ;;  %v4351_v34 = vor.u32 %v5902_v30, %v4350_v28  ;;  %1242 = vmatpush.bf16.msra.mxu0 %v4095_v29  ;;  %v5807_v29 = vld [vmem:[%s9619_s0 + $0x14] sm:$0xf0] }
   0xd   :  { %v4078_v35 = vld [vmem:[%s9618_s1 + $0x80] sm:$0xf]  ;;  %v5834_v36 = vld [vmem:[%s9618_s1 + $0x8c] sm:$0xf0]  ;;  %v4479_v38 = vor.u32 %v5934_v32, %v4478_v31  ;;  %1261 = vmatpush.bf16.msra.mxu1 %v4223_v33  ;;  %v5804_v30 = vld [vmem:[%s9619_s0 + $0x4] sm:$0xf] }
   0xe   :  { %v4206_v37 = vld [vmem:[%s9618_s1 + $0x180] sm:$0xf]  ;;  %v5866_v39 = vld [vmem:[%s9618_s1 + $0x18c] sm:$0xf0]  ;;  %v4079_v44 = vor.u32 %v5834_v36, %v4078_v35  ;;  %1280 = vmatpush.bf16.msra.mxu2 %v4351_v34  ;;  %v3968_v31 = vld [vmem:[%s9619_s0 + $0x18] sm:$0xf0] }
   0xf   :  { %v4334_v40 = vld [vmem:[%s9618_s1 + $0x280] sm:$0xf]  ;;  %v5898_v41 = vld [vmem:[%s9618_s1 + $0x28c] sm:$0xf0]  ;;  %v4207_v45 = vor.u32 %v5866_v39, %v4206_v37  ;;  %1299 = vmatpush.bf16.msra.mxu3 %v4479_v38  ;;  %v3974_v35 = vld [vmem:[%s9619_s0 + $0x8] sm:$0xf] }
  0x10   :  { %v4462_v42 = vld [vmem:[%s9618_s1 + $0x380] sm:$0xf]  ;;  %v5930_v43 = vld [vmem:[%s9618_s1 + $0x38c] sm:$0xf0]  ;;  %v4335_v46 = vor.u32 %v5898_v41, %v4334_v40  ;;  %1243 = vmatpush.bf16.msra.mxu0 %v4079_v44  ;;  %v5805_v41 = vld [vmem:[%s9619_s0 + $0xc] sm:$0xf] }
  0x11   :  { %v4062_v47 = vld [vmem:[%s9618_s1 + $0x60] sm:$0xf]  ;;  %v5830_v48 = vld [vmem:[%s9618_s1 + $0x6c] sm:$0xf0]  ;;  %v4463_v50 = vor.u32 %v5930_v43, %v4462_v42  ;;  %1262 = vmatpush.bf16.msra.mxu1 %v4207_v45  ;;  %v3976_v42 = vld [vmem:[%s9619_s0 + $0x20] sm:$0xf0] }
  0x12   :  { %v4190_v49 = vld [vmem:[%s9618_s1 + $0x160] sm:$0xf]  ;;  %v5862_v51 = vld [vmem:[%s9618_s1 + $0x16c] sm:$0xf0]  ;;  %v4063_v56 = vor.u32 %v5830_v48, %v4062_v47  ;;  %1281 = vmatpush.bf16.msra.mxu2 %v4335_v46  ;;  %v5844_v45 = vld [vmem:[%s9618_s1 + $0xe4] sm:$0xf] }
  0x13   :  { %v4318_v52 = vld [vmem:[%s9618_s1 + $0x260] sm:$0xf]  ;;  %v5894_v53 = vld [vmem:[%s9618_s1 + $0x26c] sm:$0xf0]  ;;  %v4191_v57 = vor.u32 %v5862_v51, %v4190_v49  ;;  %1300 = vmatpush.bf16.msra.mxu3 %v4463_v50  ;;  %v4128_v46 = vld [vmem:[%s9618_s1 + $0xf0] sm:$0xf0] }
  0x14   :  { %v4446_v54 = vld [vmem:[%s9618_s1 + $0x360] sm:$0xf]  ;;  %v5926_v55 = vld [vmem:[%s9618_s1 + $0x36c] sm:$0xf0]  ;;  %v4319_v58 = vor.u32 %v5894_v53, %v4318_v52  ;;  %1244 = vmatpush.bf16.msra.mxu0 %v4063_v56  ;;  %v5876_v47 = vld [vmem:[%s9618_s1 + $0x1e4] sm:$0xf]  ;;  %v6545_v53 = vor.u32 %v5804_v30, %v3968_v31 }
  0x15   :  { %v4046_v59 = vld [vmem:[%s9618_s1 + $0x40] sm:$0xf]  ;;  %v5826_v60 = vld [vmem:[%s9618_s1 + $0x4c] sm:$0xf0]  ;;  %v4447_v62 = vor.u32 %v5926_v55, %v4446_v54  ;;  %1263 = vmatpush.bf16.msra.mxu1 %v4191_v57  ;;  %v4256_v50 = vld [vmem:[%s9618_s1 + $0x1f0] sm:$0xf0]  ;;  %v6555_v57 = vor.u32 %v5805_v41, %v3976_v42 }
  0x16   :  { %v4174_v61 = vld [vmem:[%s9618_s1 + $0x140] sm:$0xf]  ;;  %v5858_v63 = vld [vmem:[%s9618_s1 + $0x14c] sm:$0xf0]  ;;  %v4047_v4 = vor.u32 %v5826_v60, %v4046_v59  ;;  %1282 = vmatpush.bf16.msra.mxu2 %v4319_v58  ;;  %v4131_v58 = vor.u32 %v5844_v45, %v4128_v46  ;;  %v4259_v59 = vor.u32 %v5876_v47, %v4256_v50  ;;  %v5828_v41 = vld [vmem:[%s9618_s1 + $0x64] sm:$0xf] }
  0x17   :  { %v4302_v0 = vld [vmem:[%s9618_s1 + $0x240] sm:$0xf]  ;;  %v5890_v1 = vld [vmem:[%s9618_s1 + $0x24c] sm:$0xf0]  ;;  %v4175_v5 = vor.u32 %v5858_v63, %v4174_v61  ;;  %1301 = vmatpush.bf16.msra.mxu3 %v4447_v62  ;;  %v5840_v61 = vld [vmem:[%s9618_s1 + $0xc4] sm:$0xf] }
  0x18   :  { %v4430_v2 = vld [vmem:[%s9618_s1 + $0x340] sm:$0xf]  ;;  %v5922_v3 = vld [vmem:[%s9618_s1 + $0x34c] sm:$0xf0]  ;;  %v4303_v6 = vor.u32 %v5890_v1, %v4302_v0  ;;  %1245 = vmatpush.bf16.msra.mxu0 %v4047_v4  ;;  %v4112_v62 = vld [vmem:[%s9618_s1 + $0xd0] sm:$0xf0] }
  0x19   :  { %v4030_v7 = vld [vmem:[%s9618_s1 + $0x20] sm:$0xf]  ;;  %v5822_v8 = vld [vmem:[%s9618_s1 + $0x2c] sm:$0xf0]  ;;  %v4431_v10 = vor.u32 %v5922_v3, %v4430_v2  ;;  %1264 = vmatpush.bf16.msra.mxu1 %v4175_v5  ;;  %v5872_v63 = vld [vmem:[%s9618_s1 + $0x1c4] sm:$0xf] }
  0x1a   :  { %v4158_v9 = vld [vmem:[%s9618_s1 + $0x120] sm:$0xf]  ;;  %v5854_v11 = vld [vmem:[%s9618_s1 + $0x12c] sm:$0xf0]  ;;  %v4031_v17 = vor.u32 %v5822_v8, %v4030_v7  ;;  %1283 = vmatpush.bf16.msra.mxu2 %v4303_v6  ;;  %v4240_v1 = vld [vmem:[%s9618_s1 + $0x1d0] sm:$0xf0]  ;;  %v4115_v6 = vor.u32 %v5840_v61, %v4112_v62 }
  0x1b   :  { %v4286_v12 = vld [vmem:[%s9618_s1 + $0x220] sm:$0xf]  ;;  %v5886_v13 = vld [vmem:[%s9618_s1 + $0x22c] sm:$0xf0]  ;;  %v4159_v21 = vor.u32 %v5854_v11, %v4158_v9  ;;  %1302 = vmatpush.bf16.msra.mxu3 %v4431_v10  ;;  %v4243_v7 = vor.u32 %v5872_v63, %v4240_v1  ;;  %v5836_v9 = vld [vmem:[%s9618_s1 + $0xa4] sm:$0xf] }
  0x1c   :  { %v4414_v14 = vld [vmem:[%s9618_s1 + $0x320] sm:$0xf]  ;;  %v5918_v15 = vld [vmem:[%s9618_s1 + $0x32c] sm:$0xf0]  ;;  %v4287_v22 = vor.u32 %v5886_v13, %v4286_v12  ;;  %1246 = vmatpush.bf16.msra.mxu0 %v4031_v17  ;;  %v4096_v10 = vld [vmem:[%s9618_s1 + $0xb0] sm:$0xf0] }
  0x1d   :  { %v4014_v16 = vld [vmem:[%s9618_s1] sm:$0xf]  ;;  %v5818_v18 = vld [vmem:[%s9618_s1 + $0xc] sm:$0xf0]  ;;  %v4415_v26 = vor.u32 %v5918_v15, %v4414_v14  ;;  %1265 = vmatpush.bf16.msra.mxu1 %v4159_v21  ;;  %v5868_v11 = vld [vmem:[%s9618_s1 + $0x1a4] sm:$0xf] }
  0x1e   :  { %v4142_v19 = vld [vmem:[%s9618_s1 + $0x100] sm:$0xf]  ;;  %v5850_v20 = vld [vmem:[%s9618_s1 + $0x10c] sm:$0xf0]  ;;  %v4015_v34 = vor.u32 %v5818_v18, %v4014_v16  ;;  %1284 = vmatpush.bf16.msra.mxu2 %v4287_v22  ;;  %v4224_v13 = vld [vmem:[%s9618_s1 + $0x1b0] sm:$0xf0]  ;;  %v4099_v18 = vor.u32 %v5836_v9, %v4096_v10 }
  0x1f   :  { %v4270_v23 = vld [vmem:[%s9618_s1 + $0x200] sm:$0xf]  ;;  %v5882_v24 = vld [vmem:[%s9618_s1 + $0x20c] sm:$0xf0]  ;;  %v4143_v38 = vor.u32 %v5850_v20, %v4142_v19  ;;  %1303 = vmatpush.bf16.msra.mxu3 %v4415_v26  ;;  %v5832_v19 = vld [vmem:[%s9618_s1 + $0x84] sm:$0xf]  ;;  %v4227_v22 = vor.u32 %v5868_v11, %v4224_v13 }
  0x20   :  { %v4398_v25 = vld [vmem:[%s9618_s1 + $0x300] sm:$0xf]  ;;  %v5914_v27 = vld [vmem:[%s9618_s1 + $0x30c] sm:$0xf0]  ;;  %v4271_v39 = vor.u32 %v5882_v24, %v4270_v23  ;;  %1247 = vmatpush.bf16.msra.mxu0 %v4015_v34  ;;  %v4080_v20 = vld [vmem:[%s9618_s1 + $0x90] sm:$0xf0] }
  0x21   :  { %v3966_v28 = vld [vmem:[%s9619_s0] sm:$0xf]  ;;  %v5974_v33 = vld [vmem:[%s9618_s1 + $0x4ec] sm:$0xf0]  ;;  %v4399_v43 = vor.u32 %v5914_v27, %v4398_v25  ;;  %1266 = vmatpush.bf16.msra.mxu1 %v4143_v38  ;;  %v5864_v21 = vld [vmem:[%s9618_s1 + $0x184] sm:$0xf] }
  0x22   :  { %v4638_v32 = vld [vmem:[%s9618_s1 + $0x4e0] sm:$0xf]  ;;  %v6006_v37 = vld [vmem:[%s9618_s1 + $0x5ec] sm:$0xf0]  ;;  %v6534_v48 = vor.u32 %v5807_v29, %v3966_v28  ;;  %1285 = vmatpush.bf16.msra.mxu2 %v4271_v39  ;;  %v4208_v24 = vld [vmem:[%s9618_s1 + $0x190] sm:$0xf0] }
  0x23   :  { %v4766_v36 = vld [vmem:[%s9618_s1 + $0x5e0] sm:$0xf]  ;;  %v4639_v44 = vor.u32 %v5974_v33, %v4638_v32  ;;  %v5970_v52 = vld [vmem:[%s9618_s1 + $0x4cc] sm:$0xf0]  ;;  %1304 = vmatpush.bf16.msra.mxu3 %v4399_v43  ;;  %v5813_v26 = vld [vmem:[%s9619_s0 + $0x44] sm:$0xf0]  ;;  %v4211_v39 = vor.u32 %v5864_v21, %v4208_v24 }
  0x24   :  { %v5808_v40 = vld [vmem:[%s9619_s0 + $0x1c] sm:$0xf0]  ;;  %v4767_v49 = vor.u32 %v6006_v37, %v4766_v36  ;;  %v6002_v56 = vld [vmem:[%s9618_s1 + $0x5cc] sm:$0xf0]  ;;  %1248 = vmatmul.bf16.vlgmr.msra.gmra.mxu0 %v6534_v48  ;;  %1267 = vmatmul.bf16.vlgmr.msra.gmra.mxu1 %v6545_v53  ;;  %v5810_v28 = vld [vmem:[%s9619_s0 + $0x34] sm:$0xf] }
  0x25   :  { %v4622_v51 = vld [vmem:[%s9618_s1 + $0x4c0] sm:$0xf]  ;;  %v6547_v54 = vor.u32 %v5808_v40, %v3974_v35  ;;  %1316 = vmatpush.bf16.msrb.mxu0 %v4639_v44  ;;  %v5966_v3 = vld [vmem:[%s9618_s1 + $0x4ac] sm:$0xf0]  ;;  %v3992_v29 = vld [vmem:[%s9619_s0 + $0x48] sm:$0xf0]  ;;  %v4083_v35 = vor.u32 %v5832_v19, %v4080_v20 }
  0x26   :  { %v4750_v55 = vld [vmem:[%s9618_s1 + $0x5c0] sm:$0xf]  ;;  %v4623_v60 = vor.u32 %v5970_v52, %v4622_v51  ;;  %1335 = vmatpush.bf16.msrb.mxu1 %v4767_v49  ;;  %v5998_v5 = vld [vmem:[%s9618_s1 + $0x5ac] sm:$0xf0]  ;;  %1305 = vmatmul.bf16.vlgmr.msra.gmra.mxu3 %v6555_v57  ;;  %v3998_v32 = vld [vmem:[%s9619_s0 + $0x38] sm:$0xf]  ;;  %v6677_v50 = vor.u32 %v5810_v28, %v3992_v29 }
  0x27   :  { %v4751_v0 = vor.u32 %v6002_v56, %v4750_v55  ;;  %v4606_v2 = vld [vmem:[%s9618_s1 + $0x4a0] sm:$0xf]  ;;  %1286 = vmatmul.bf16.vlgmr.msra.gmra.mxu2 %v6547_v54  ;;  %1373 = vmatpush.bf16.msrb.mxu3 %v4259_v59  ;;  %v5962_v15 = vld [vmem:[%s9618_s1 + $0x48c] sm:$0xf0]  ;;  %v5811_v37 = vld [vmem:[%s9619_s0 + $0x3c] sm:$0xf] }
  0x28   :  { %v4734_v4 = vld [vmem:[%s9618_s1 + $0x5a0] sm:$0xf]  ;;  %1354 = vmatpush.bf16.msrb.mxu2 %v4131_v58  ;;  %v4607_v8 = vor.u32 %v5966_v3, %v4606_v2  ;;  %v5994_v17 = vld [vmem:[%s9618_s1 + $0x58c] sm:$0xf0]  ;;  %v4000_v38 = vld [vmem:[%s9619_s0 + $0x50] sm:$0xf0] }
  0x29   :  { %1317 = vmatpush.bf16.msrb.mxu0 %v4623_v60  ;;  %v4735_v12 = vor.u32 %v5998_v5, %v4734_v4  ;;  %v4590_v14 = vld [vmem:[%s9618_s1 + $0x480] sm:$0xf]  ;;  %v3990_v25 = vld [vmem:[%s9619_s0 + $0x30] sm:$0xf]  ;;  %v4064_v42 = vld [vmem:[%s9618_s1 + $0x70] sm:$0xf0]  ;;  %v6687_v56 = vor.u32 %v5811_v37, %v4000_v38 }
  0x2a   :  { %1336 = vmatpush.bf16.msrb.mxu1 %v4751_v0  ;;  %v4718_v16 = vld [vmem:[%s9618_s1 + $0x580] sm:$0xf]  ;;  %v4591_v23 = vor.u32 %v5962_v15, %v4590_v14  ;;  %v5958_v31 = vld [vmem:[%s9618_s1 + $0x46c] sm:$0xf0]  ;;  %v5860_v43 = vld [vmem:[%s9618_s1 + $0x164] sm:$0xf]  ;;  %v6666_v44 = vor.u32 %v5813_v26, %v3990_v25  ;;  %v4067_v58 = vor.u32 %v5828_v41, %v4064_v42 }
  0x2b   :  { %1374 = vmatpush.bf16.msrb.mxu3 %v4243_v7  ;;  %v4719_v27 = vor.u32 %v5994_v17, %v4718_v16  ;;  %v4574_v30 = vld [vmem:[%s9618_s1 + $0x460] sm:$0xf]  ;;  %v5990_v34 = vld [vmem:[%s9618_s1 + $0x56c] sm:$0xf0]  ;;  %v4192_v46 = vld [vmem:[%s9618_s1 + $0x170] sm:$0xf0] }
  0x2c   :  { %1355 = vmatpush.bf16.msrb.mxu2 %v4115_v6  ;;  %v4702_v33 = vld [vmem:[%s9618_s1 + $0x560] sm:$0xf]  ;;  %v5814_v36 = vld [vmem:[%s9619_s0 + $0x4c] sm:$0xf0]  ;;  %v4575_v40 = vor.u32 %v5958_v31, %v4574_v30  ;;  %v4195_v59 = vor.u32 %v5860_v43, %v4192_v46  ;;  %v5824_v61 = vld [vmem:[%s9618_s1 + $0x44] sm:$0xf] }
  0x2d   :  { %1318 = vmatpush.bf16.msrb.mxu0 %v4607_v8  ;;  %v4703_v45 = vor.u32 %v5990_v34, %v4702_v33  ;;  %v4558_v47 = vld [vmem:[%s9618_s1 + $0x440] sm:$0xf]  ;;  %v5954_v49 = vld [vmem:[%s9618_s1 + $0x44c] sm:$0xf0]  ;;  %v6679_v51 = vor.u32 %v5814_v36, %v3998_v32  ;;  %v4048_v62 = vld [vmem:[%s9618_s1 + $0x50] sm:$0xf0] }
  0x2e   :  { %1337 = vmatpush.bf16.msrb.mxu1 %v4735_v12  ;;  %v4686_v52 = vld [vmem:[%s9618_s1 + $0x540] sm:$0xf]  ;;  %v5986_v55 = vld [vmem:[%s9618_s1 + $0x54c] sm:$0xf0]  ;;  %v4559_v60 = vor.u32 %v5954_v49, %v4558_v47  ;;  %v5856_v63 = vld [vmem:[%s9618_s1 + $0x144] sm:$0xf]  ;;  %v4051_v6 = vor.u32 %v5824_v61, %v4048_v62 }
  0x2f   :  { %1375 = vmatpush.bf16.msrb.mxu3 %v4227_v22  ;;  %v4687_v0 = vor.u32 %v5986_v55, %v4686_v52  ;;  %v4176_v1 = vld [vmem:[%s9618_s1 + $0x150] sm:$0xf0]  ;;  %v4542_v2 = vld [vmem:[%s9618_s1 + $0x420] sm:$0xf]  ;;  %v5950_v3 = vld [vmem:[%s9618_s1 + $0x42c] sm:$0xf0] }
  0x30   :  { %1356 = vmatpush.bf16.msrb.mxu2 %v4099_v18  ;;  %v4670_v4 = vld [vmem:[%s9618_s1 + $0x520] sm:$0xf]  ;;  %v5982_v5 = vld [vmem:[%s9618_s1 + $0x52c] sm:$0xf0]  ;;  %v5820_v7 = vld [vmem:[%s9618_s1 + $0x24] sm:$0xf]  ;;  %v4179_v8 = vor.u32 %v5856_v63, %v4176_v1  ;;  %v4543_v9 = vor.u32 %v5950_v3, %v4542_v2 }
  0x31   :  { %1319 = vmatpush.bf16.msrb.mxu0 %v4591_v23  ;;  %v4032_v10 = vld [vmem:[%s9618_s1 + $0x30] sm:$0xf0]  ;;  %v5852_v11 = vld [vmem:[%s9618_s1 + $0x124] sm:$0xf]  ;;  %v4671_v13 = vor.u32 %v5982_v5, %v4670_v4  ;;  %v4526_v14 = vld [vmem:[%s9618_s1 + $0x400] sm:$0xf] }
  0x32   :  { %1338 = vmatpush.bf16.msrb.mxu1 %v4719_v27  ;;  %v4160_v12 = vld [vmem:[%s9618_s1 + $0x130] sm:$0xf0]  ;;  %v5946_v15 = vld [vmem:[%s9618_s1 + $0x40c] sm:$0xf0]  ;;  %v4654_v16 = vld [vmem:[%s9618_s1 + $0x500] sm:$0xf]  ;;  %v4035_v20 = vor.u32 %v5820_v7, %v4032_v10 }
  0x33   :  { %1376 = vmatpush.bf16.msrb.mxu3 %v4211_v39  ;;  %v5978_v17 = vld [vmem:[%s9618_s1 + $0x50c] sm:$0xf0]  ;;  %v5908_v18 = vld [vmem:[%s9618_s1 + $0x2e4] sm:$0xf]  ;;  %v4384_v19 = vld [vmem:[%s9618_s1 + $0x2f0] sm:$0xf0]  ;;  %v4163_v24 = vor.u32 %v5852_v11, %v4160_v12  ;;  %v4527_v25 = vor.u32 %v5946_v15, %v4526_v14 }
  0x34   :  { %1357 = vmatpush.bf16.msrb.mxu2 %v4083_v35  ;;  %1253 = vmatmul.bf16.gmra.mxu0 %v6666_v44  ;;  %v5816_v21 = vld [vmem:[%s9618_s1 + $0x4] sm:$0xf]  ;;  %v4512_v23 = vld [vmem:[%s9618_s1 + $0x3f0] sm:$0xf0]  ;;  %v4655_v29 = vor.u32 %v5978_v17, %v4654_v16  ;;  %v3982_v30 = vld [vmem:[%s9619_s0 + $0x10] sm:$0xf]  ;;  %v4387_v31 = vor.u32 %v5908_v18, %v4384_v19 }
  0x35   :  { %1320 = vmatpush.bf16.msrb.mxu0 %v4575_v40  ;;  %1272 = vmatmul.bf16.gmra.mxu1 %v6677_v50  ;;  %v5940_v22 = vld [vmem:[%s9618_s1 + $0x3e4] sm:$0xf]  ;;  %v4016_v26 = vld [vmem:[%s9618_s1 + $0x10] sm:$0xf0]  ;;  %v5809_v34 = vld [vmem:[%s9619_s0 + $0x24] sm:$0xf0] }
  0x36   :  { %1339 = vmatpush.bf16.msrb.mxu1 %v4703_v45  ;;  %1310 = vmatmul.bf16.gmra.mxu3 %v6687_v56  ;;  %v5848_v27 = vld [vmem:[%s9618_s1 + $0x104] sm:$0xf]  ;;  %v4144_v28 = vld [vmem:[%s9618_s1 + $0x110] sm:$0xf0]  ;;  %v4515_v35 = vor.u32 %v5940_v22, %v4512_v23  ;;  %v4019_v38 = vor.u32 %v5816_v21, %v4016_v26  ;;  %v3984_v40 = vld [vmem:[%s9619_s0 + $0x28] sm:$0xf0]  ;;  %v6798_v47 = vor.u32 %v5809_v34, %v3982_v30 }
  0x37   :  { %1291 = vmatmul.bf16.gmra.mxu2 %v6679_v51  ;;  %1377 = vmatpush.bf16.msrb.mxu3 %v4195_v59  ;;  %v5972_v32 = vld [vmem:[%s9618_s1 + $0x4e4] sm:$0xf]  ;;  %v4640_v33 = vld [vmem:[%s9618_s1 + $0x4f0] sm:$0xf0]  ;;  %v4147_v41 = vor.u32 %v5848_v27, %v4144_v28 }
  0x38   :  { %1358 = vmatpush.bf16.msrb.mxu2 %v4067_v58  ;;  %v6004_v36 = vld [vmem:[%s9618_s1 + $0x5e4] sm:$0xf]  ;;  %v4768_v37 = vld [vmem:[%s9618_s1 + $0x5f0] sm:$0xf0]  ;;  %v4643_v42 = vor.u32 %v5972_v32, %v4640_v33  ;;  %v5815_v33 = vld [vmem:[%s9619_s0 + $0x54] sm:$0xf0] }
  0x39   :  { %1321 = vmatpush.bf16.msrb.mxu0 %v4559_v60  ;;  %v5806_v39 = vld [vmem:[%s9619_s0 + $0x14] sm:$0xf]  ;;  %v5904_v43 = vld [vmem:[%s9618_s1 + $0x2c4] sm:$0xf]  ;;  %v4771_v49 = vor.u32 %v6004_v36, %v4768_v37  ;;  %v4008_v37 = vld [vmem:[%s9619_s0 + $0x58] sm:$0xf0] }
  0x3a   :  { %1340 = vmatpush.bf16.msrb.mxu1 %v4687_v0  ;;  %v4368_v45 = vld [vmem:[%s9618_s1 + $0x2d0] sm:$0xf0]  ;;  %v5936_v46 = vld [vmem:[%s9618_s1 + $0x3c4] sm:$0xf]  ;;  %v6809_v59 = vor.u32 %v5806_v39, %v3984_v40 }
  0x3b   :  { %1378 = vmatpush.bf16.msrb.mxu3 %v4179_v8  ;;  %v4496_v52 = vld [vmem:[%s9618_s1 + $0x3d0] sm:$0xf0]  ;;  %v5968_v55 = vld [vmem:[%s9618_s1 + $0x4c4] sm:$0xf]  ;;  %v4371_v62 = vor.u32 %v5904_v43, %v4368_v45 }
  0x3c   :  { %1359 = vmatpush.bf16.msrb.mxu2 %v4051_v6  ;;  %v4624_v58 = vld [vmem:[%s9618_s1 + $0x4d0] sm:$0xf0]  ;;  %v6000_v60 = vld [vmem:[%s9618_s1 + $0x5c4] sm:$0xf]  ;;  %v4499_v63 = vor.u32 %v5936_v46, %v4496_v52 }
  0x3d   :  { %1322 = vmatpush.bf16.msrb.mxu0 %v4543_v9  ;;  %v4752_v61 = vld [vmem:[%s9618_s1 + $0x5d0] sm:$0xf0]  ;;  %v4627_v0 = vor.u32 %v5968_v55, %v4624_v58  ;;  %v5900_v1 = vld [vmem:[%s9618_s1 + $0x2a4] sm:$0xf] }
  0x3e   :  { %1341 = vmatpush.bf16.msrb.mxu1 %v4671_v13  ;;  %v4352_v2 = vld [vmem:[%s9618_s1 + $0x2b0] sm:$0xf0]  ;;  %v5932_v3 = vld [vmem:[%s9618_s1 + $0x3a4] sm:$0xf]  ;;  %v4755_v4 = vor.u32 %v6000_v60, %v4752_v61 }
  0x3f   :  { %1379 = vmatpush.bf16.msrb.mxu3 %v4163_v24  ;;  %v4480_v5 = vld [vmem:[%s9618_s1 + $0x3b0] sm:$0xf0]  ;;  %v5964_v6 = vld [vmem:[%s9618_s1 + $0x4a4] sm:$0xf]  ;;  %v4355_v10 = vor.u32 %v5900_v1, %v4352_v2 }
  0x40   :  { %1360 = vmatpush.bf16.msrb.mxu2 %v4035_v20  ;;  %v4608_v7 = vld [vmem:[%s9618_s1 + $0x4b0] sm:$0xf0]  ;;  %v5996_v8 = vld [vmem:[%s9618_s1 + $0x5a4] sm:$0xf]  ;;  %v4483_v11 = vor.u32 %v5932_v3, %v4480_v5 }
  0x41   :  { %1323 = vmatpush.bf16.msrb.mxu0 %v4527_v25  ;;  %v4736_v9 = vld [vmem:[%s9618_s1 + $0x5b0] sm:$0xf0]  ;;  %v4611_v12 = vor.u32 %v5964_v6, %v4608_v7  ;;  %v5896_v13 = vld [vmem:[%s9618_s1 + $0x284] sm:$0xf]  ;;  %v4006_v25 = vld [vmem:[%s9619_s0 + $0x40] sm:$0xf] }
  0x42   :  { %1342 = vmatpush.bf16.msrb.mxu1 %v4655_v29  ;;  %v4336_v14 = vld [vmem:[%s9618_s1 + $0x290] sm:$0xf0]  ;;  %v5928_v15 = vld [vmem:[%s9618_s1 + $0x384] sm:$0xf]  ;;  %v4739_v16 = vor.u32 %v5996_v8, %v4736_v9  ;;  %v6914_v45 = vor.u32 %v5815_v33, %v4006_v25 }
  0x43   :  { %1380 = vmatpush.bf16.msrb.mxu3 %v4147_v41  ;;  %v4464_v17 = vld [vmem:[%s9618_s1 + $0x390] sm:$0xf0]  ;;  %v5960_v18 = vld [vmem:[%s9618_s1 + $0x484] sm:$0xf]  ;;  %v4339_v22 = vor.u32 %v5896_v13, %v4336_v14 }
  0x44   :  { %1361 = vmatpush.bf16.msrb.mxu2 %v4019_v38  ;;  %1324 = vmatmul.bf16.vlgmr.msrb.gmra.mxu0 %v6798_v47  ;;  %v4592_v19 = vld [vmem:[%s9618_s1 + $0x490] sm:$0xf0]  ;;  %v5992_v20 = vld [vmem:[%s9618_s1 + $0x584] sm:$0xf]  ;;  %v4467_v23 = vor.u32 %v5928_v15, %v4464_v17 }
  0x45   :  { %1392 = vmatpush.bf16.msra.mxu0 %v4387_v31  ;;  %1343 = vmatmul.bf16.vlgmr.msrb.gmra.mxu1 %v6809_v59  ;;  %v4720_v21 = vld [vmem:[%s9618_s1 + $0x590] sm:$0xf0]  ;;  %v4595_v24 = vor.u32 %v5960_v18, %v4592_v19  ;;  %v5892_v26 = vld [vmem:[%s9618_s1 + $0x264] sm:$0xf] }
  0x46   :  { %1411 = vmatpush.bf16.msra.mxu1 %v4515_v35  ;;  %1381 = vmatmul.bf16.vlgmr.msrb.gmra.mxu3 %v6545_v53  ;;  %v4320_v27 = vld [vmem:[%s9618_s1 + $0x270] sm:$0xf0]  ;;  %v5924_v28 = vld [vmem:[%s9618_s1 + $0x364] sm:$0xf]  ;;  %v4723_v29 = vor.u32 %v5992_v20, %v4720_v21 }
  0x47   :  { %1449 = vmatpush.bf16.msra.mxu3 %v4771_v49  ;;  %1362 = vmatmul.bf16.vlgmr.msrb.gmra.mxu2 %v6534_v48  ;;  %v4448_v30 = vld [vmem:[%s9618_s1 + $0x370] sm:$0xf0]  ;;  %v5956_v31 = vld [vmem:[%s9618_s1 + $0x464] sm:$0xf]  ;;  %v4323_v38 = vor.u32 %v5892_v26, %v4320_v27  ;;  %v5879_v26 = vld [vmem:[%s9618_s1 + $0x1f4] sm:$0xf0] }
  0x48   :  { %1430 = vmatpush.bf16.msra.mxu2 %v4643_v42  ;;  %v4576_v32 = vld [vmem:[%s9618_s1 + $0x470] sm:$0xf0]  ;;  %v5988_v34 = vld [vmem:[%s9618_s1 + $0x564] sm:$0xf]  ;;  %v4451_v39 = vor.u32 %v5924_v28, %v4448_v30  ;;  %v4390_v27 = vld [vmem:[%s9618_s1 + $0x2e8] sm:$0xf] }
  0x49   :  { %1393 = vmatpush.bf16.msra.mxu0 %v4371_v62  ;;  %v4704_v35 = vld [vmem:[%s9618_s1 + $0x570] sm:$0xf0]  ;;  %v5812_v36 = vld [vmem:[%s9619_s0 + $0x44] sm:$0xf]  ;;  %v4579_v40 = vor.u32 %v5956_v31, %v4576_v32  ;;  %v5911_v28 = vld [vmem:[%s9618_s1 + $0x2f4] sm:$0xf0] }
  0x4a   :  { %1412 = vmatpush.bf16.msra.mxu1 %v4499_v63  ;;  %v5888_v41 = vld [vmem:[%s9618_s1 + $0x244] sm:$0xf]  ;;  %v4304_v42 = vld [vmem:[%s9618_s1 + $0x250] sm:$0xf0]  ;;  %v4707_v46 = vor.u32 %v5988_v34, %v4704_v35  ;;  %v6925_v58 = vor.u32 %v5812_v36, %v4008_v37  ;;  %v4518_v31 = vld [vmem:[%s9618_s1 + $0x3e8] sm:$0xf]  ;;  %v4391_v36 = vor.u32 %v5911_v28, %v4390_v27 }
  0x4b   :  { %1450 = vmatpush.bf16.msra.mxu3 %v4755_v4  ;;  %v5920_v43 = vld [vmem:[%s9618_s1 + $0x344] sm:$0xf]  ;;  %v4432_v49 = vld [vmem:[%s9618_s1 + $0x350] sm:$0xf0]  ;;  %v4307_v62 = vor.u32 %v5888_v41, %v4304_v42  ;;  %v5943_v32 = vld [vmem:[%s9618_s1 + $0x3f4] sm:$0xf0] }
  0x4c   :  { %1431 = vmatpush.bf16.msra.mxu2 %v4627_v0  ;;  %v5952_v52 = vld [vmem:[%s9618_s1 + $0x444] sm:$0xf]  ;;  %v4560_v55 = vld [vmem:[%s9618_s1 + $0x450] sm:$0xf0]  ;;  %v4435_v63 = vor.u32 %v5920_v43, %v4432_v49  ;;  %v4519_v37 = vor.u32 %v5943_v32, %v4518_v31  ;;  %v5875_v41 = vld [vmem:[%s9618_s1 + $0x1d4] sm:$0xf0] }
  0x4d   :  { %1394 = vmatpush.bf16.msra.mxu0 %v4355_v10  ;;  %v5984_v60 = vld [vmem:[%s9618_s1 + $0x544] sm:$0xf]  ;;  %v4688_v61 = vld [vmem:[%s9618_s1 + $0x550] sm:$0xf0]  ;;  %v4563_v0 = vor.u32 %v5952_v52, %v4560_v55  ;;  %v4374_v42 = vld [vmem:[%s9618_s1 + $0x2c8] sm:$0xf] }
  0x4e   :  { %1413 = vmatpush.bf16.msra.mxu1 %v4483_v11  ;;  %v5884_v1 = vld [vmem:[%s9618_s1 + $0x224] sm:$0xf]  ;;  %v4288_v2 = vld [vmem:[%s9618_s1 + $0x230] sm:$0xf0]  ;;  %v4691_v4 = vor.u32 %v5984_v60, %v4688_v61  ;;  %v5907_v43 = vld [vmem:[%s9618_s1 + $0x2d4] sm:$0xf0] }
  0x4f   :  { %1451 = vmatpush.bf16.msra.mxu3 %v4739_v16  ;;  %v5916_v3 = vld [vmem:[%s9618_s1 + $0x324] sm:$0xf]  ;;  %v4416_v5 = vld [vmem:[%s9618_s1 + $0x330] sm:$0xf0]  ;;  %v4291_v10 = vor.u32 %v5884_v1, %v4288_v2  ;;  %v5939_v49 = vld [vmem:[%s9618_s1 + $0x3d4] sm:$0xf0]  ;;  %v4375_v60 = vor.u32 %v5907_v43, %v4374_v42 }
  0x50   :  { %1432 = vmatpush.bf16.msra.mxu2 %v4611_v12  ;;  %v5948_v6 = vld [vmem:[%s9618_s1 + $0x424] sm:$0xf]  ;;  %v4544_v7 = vld [vmem:[%s9618_s1 + $0x430] sm:$0xf0]  ;;  %v4419_v13 = vor.u32 %v5916_v3, %v4416_v5  ;;  %v4102_v61 = vld [vmem:[%s9618_s1 + $0xa8] sm:$0xf] }
  0x51   :  { %1395 = vmatpush.bf16.msra.mxu0 %v4339_v22  ;;  %v5980_v8 = vld [vmem:[%s9618_s1 + $0x524] sm:$0xf]  ;;  %v4672_v9 = vld [vmem:[%s9618_s1 + $0x530] sm:$0xf0]  ;;  %v4547_v14 = vor.u32 %v5948_v6, %v4544_v7  ;;  %v4134_v22 = vld [vmem:[%s9618_s1 + $0xe8] sm:$0xf] }
  0x52   :  { %1414 = vmatpush.bf16.msra.mxu1 %v4467_v23  ;;  %v5880_v11 = vld [vmem:[%s9618_s1 + $0x204] sm:$0xf]  ;;  %v4272_v12 = vld [vmem:[%s9618_s1 + $0x210] sm:$0xf0]  ;;  %v4675_v18 = vor.u32 %v5980_v8, %v4672_v9  ;;  %v5847_v23 = vld [vmem:[%s9618_s1 + $0xf4] sm:$0xf0] }
  0x53   :  { %1452 = vmatpush.bf16.msra.mxu3 %v4723_v29  ;;  %v5912_v15 = vld [vmem:[%s9618_s1 + $0x304] sm:$0xf]  ;;  %v4400_v16 = vld [vmem:[%s9618_s1 + $0x310] sm:$0xf0]  ;;  %v4275_v25 = vor.u32 %v5880_v11, %v4272_v12  ;;  %v4135_v34 = vor.u32 %v5847_v23, %v4134_v22  ;;  %v5871_v1 = vld [vmem:[%s9618_s1 + $0x1b4] sm:$0xf0] }
  0x54   :  { %1433 = vmatpush.bf16.msra.mxu2 %v4595_v24  ;;  %1329 = vmatmul.bf16.gmra.mxu0 %v6914_v45  ;;  %v5944_v17 = vld [vmem:[%s9618_s1 + $0x404] sm:$0xf]  ;;  %v4528_v19 = vld [vmem:[%s9618_s1 + $0x410] sm:$0xf0]  ;;  %v4262_v24 = vld [vmem:[%s9618_s1 + $0x1e8] sm:$0xf]  ;;  %v4403_v29 = vor.u32 %v5912_v15, %v4400_v16 }
  0x55   :  { %1396 = vmatpush.bf16.msra.mxu0 %v4323_v38  ;;  %1348 = vmatmul.bf16.gmra.mxu1 %v6925_v58  ;;  %v5976_v20 = vld [vmem:[%s9618_s1 + $0x504] sm:$0xf]  ;;  %v4656_v21 = vld [vmem:[%s9618_s1 + $0x510] sm:$0xf0]  ;;  %v4531_v30 = vor.u32 %v5944_v17, %v4528_v19  ;;  %v4263_v35 = vor.u32 %v5879_v26, %v4262_v24  ;;  %v4118_v38 = vld [vmem:[%s9618_s1 + $0xc8] sm:$0xf] }
  0x56   :  { %1415 = vmatpush.bf16.msra.mxu1 %v4451_v39  ;;  %1386 = vmatmul.bf16.gmra.mxu3 %v6677_v50  ;;  %v4659_v33 = vor.u32 %v5976_v20, %v4656_v21  ;;  %v5843_v39 = vld [vmem:[%s9618_s1 + $0xd4] sm:$0xf0]  ;;  %v4358_v2 = vld [vmem:[%s9618_s1 + $0x2a8] sm:$0xf] }
  0x57   :  { %1453 = vmatpush.bf16.msra.mxu3 %v4707_v46  ;;  %1367 = vmatmul.bf16.gmra.mxu2 %v6666_v44  ;;  %v4502_v46 = vld [vmem:[%s9618_s1 + $0x3c8] sm:$0xf]  ;;  %v4119_v52 = vor.u32 %v5843_v39, %v4118_v38  ;;  %v5903_v3 = vld [vmem:[%s9618_s1 + $0x2b4] sm:$0xf0] }
  0x58   :  { %1434 = vmatpush.bf16.msra.mxu2 %v4579_v40  ;;  %v4246_v40 = vld [vmem:[%s9618_s1 + $0x1c8] sm:$0xf]  ;;  %v5935_v5 = vld [vmem:[%s9618_s1 + $0x3b4] sm:$0xf0]  ;;  %v4359_v8 = vor.u32 %v5903_v3, %v4358_v2 }
  0x59   :  { %1397 = vmatpush.bf16.msra.mxu0 %v4307_v62  ;;  %v4247_v55 = vor.u32 %v5875_v41, %v4246_v40  ;;  %v5839_v62 = vld [vmem:[%s9618_s1 + $0xb4] sm:$0xf0]  ;;  %v4086_v9 = vld [vmem:[%s9618_s1 + $0x88] sm:$0xf] }
  0x5a   :  { %1416 = vmatpush.bf16.msra.mxu1 %v4435_v63  ;;  %v4230_v63 = vld [vmem:[%s9618_s1 + $0x1a8] sm:$0xf]  ;;  %v4103_v6 = vor.u32 %v5839_v62, %v4102_v61  ;;  %v5899_v15 = vld [vmem:[%s9618_s1 + $0x294] sm:$0xf0] }
  0x5b   :  { %1454 = vmatpush.bf16.msra.mxu3 %v4691_v4  ;;  %v4486_v4 = vld [vmem:[%s9618_s1 + $0x3a8] sm:$0xf]  ;;  %v4231_v7 = vor.u32 %v5871_v1, %v4230_v63  ;;  %v5931_v17 = vld [vmem:[%s9618_s1 + $0x394] sm:$0xf0] }
  0x5c   :  { %1435 = vmatpush.bf16.msra.mxu2 %v4563_v0  ;;  %v4503_v0 = vor.u32 %v5939_v49, %v4502_v46  ;;  %v4214_v11 = vld [vmem:[%s9618_s1 + $0x188] sm:$0xf]  ;;  %v4487_v12 = vor.u32 %v5935_v5, %v4486_v4  ;;  %v5831_v22 = vld [vmem:[%s9618_s1 + $0x74] sm:$0xf0] }
  0x5d   :  { %1398 = vmatpush.bf16.msra.mxu0 %v4291_v10  ;;  %v5835_v10 = vld [vmem:[%s9618_s1 + $0x94] sm:$0xf0]  ;;  %v4470_v16 = vld [vmem:[%s9618_s1 + $0x388] sm:$0xf] }
  0x5e   :  { %1417 = vmatpush.bf16.msra.mxu1 %v4419_v13  ;;  %v5867_v13 = vld [vmem:[%s9618_s1 + $0x194] sm:$0xf0]  ;;  %v4070_v21 = vld [vmem:[%s9618_s1 + $0x68] sm:$0xf]  ;;  %v4471_v24 = vor.u32 %v5931_v17, %v4470_v16 }
  0x5f   :  { %1455 = vmatpush.bf16.msra.mxu3 %v4675_v18  ;;  %v4087_v18 = vor.u32 %v5835_v10, %v4086_v9  ;;  %v4215_v19 = vor.u32 %v5867_v13, %v4214_v11  ;;  %v4198_v23 = vld [vmem:[%s9618_s1 + $0x168] sm:$0xf]  ;;  %v5895_v27 = vld [vmem:[%s9618_s1 + $0x274] sm:$0xf0] }
  0x60   :  { %1436 = vmatpush.bf16.msra.mxu2 %v4547_v14  ;;  %v4342_v14 = vld [vmem:[%s9618_s1 + $0x288] sm:$0xf]  ;;  %v5891_v39 = vld [vmem:[%s9618_s1 + $0x254] sm:$0xf0] }
  0x61   :  { %1399 = vmatpush.bf16.msra.mxu0 %v4275_v25  ;;  %v4343_v20 = vor.u32 %v5899_v15, %v4342_v14  ;;  %v5863_v25 = vld [vmem:[%s9618_s1 + $0x174] sm:$0xf0]  ;;  %v4326_v26 = vld [vmem:[%s9618_s1 + $0x268] sm:$0xf] }
  0x62   :  { %1418 = vmatpush.bf16.msra.mxu1 %v4403_v29  ;;  %v4454_v28 = vld [vmem:[%s9618_s1 + $0x368] sm:$0xf]  ;;  %v5927_v29 = vld [vmem:[%s9618_s1 + $0x374] sm:$0xf0]  ;;  %v4199_v31 = vor.u32 %v5863_v25, %v4198_v23  ;;  %v4327_v32 = vor.u32 %v5895_v27, %v4326_v26  ;;  %v5877_v23 = vld [vmem:[%s9618_s1 + $0x1ec] sm:$0xf] }
  0x63   :  { %1456 = vmatpush.bf16.msra.mxu3 %v4659_v33  ;;  %v4054_v33 = vld [vmem:[%s9618_s1 + $0x48] sm:$0xf]  ;;  %v5923_v41 = vld [vmem:[%s9618_s1 + $0x354] sm:$0xf0] }
  0x64   :  { %1437 = vmatpush.bf16.msra.mxu2 %v4531_v30  ;;  %1400 = vmatmul.bf16.vlgmr.msra.gmra.mxu0 %v6547_v54  ;;  %v4071_v30 = vor.u32 %v5831_v22, %v4070_v21  ;;  %v4310_v38 = vld [vmem:[%s9618_s1 + $0x248] sm:$0xf]  ;;  %v5855_v61 = vld [vmem:[%s9618_s1 + $0x134] sm:$0xf0] }
  0x65   :  { %1468 = vmatpush.bf16.msrb.mxu0 %v4135_v34  ;;  %1419 = vmatmul.bf16.vlgmr.msra.gmra.mxu1 %v6555_v57  ;;  %v5827_v34 = vld [vmem:[%s9618_s1 + $0x54] sm:$0xf0]  ;;  %v4438_v40 = vld [vmem:[%s9618_s1 + $0x348] sm:$0xf]  ;;  %v4311_v46 = vor.u32 %v5891_v39, %v4310_v38 }
  0x66   :  { %1487 = vmatpush.bf16.msrb.mxu1 %v4263_v35  ;;  %1457 = vmatmul.bf16.vlgmr.msra.gmra.mxu3 %v6809_v59  ;;  %v4182_v35 = vld [vmem:[%s9618_s1 + $0x148] sm:$0xf]  ;;  %v4055_v42 = vor.u32 %v5827_v34, %v4054_v33  ;;  %v5887_v63 = vld [vmem:[%s9618_s1 + $0x234] sm:$0xf0]  ;;  %v5841_v34 = vld [vmem:[%s9618_s1 + $0xcc] sm:$0xf] }
  0x67   :  { %1525 = vmatpush.bf16.msrb.mxu3 %v4519_v37  ;;  %1438 = vmatmul.bf16.vlgmr.msra.gmra.mxu2 %v6798_v47  ;;  %v5859_v37 = vld [vmem:[%s9618_s1 + $0x154] sm:$0xf0]  ;;  %v4038_v49 = vld [vmem:[%s9618_s1 + $0x28] sm:$0xf] }
  0x68   :  { %1506 = vmatpush.bf16.msrb.mxu2 %v4391_v36  ;;  %v4455_v36 = vor.u32 %v5927_v29, %v4454_v28  ;;  %v4183_v43 = vor.u32 %v5859_v37, %v4182_v35  ;;  %v4294_v62 = vld [vmem:[%s9618_s1 + $0x228] sm:$0xf]  ;;  %v5919_v1 = vld [vmem:[%s9618_s1 + $0x334] sm:$0xf0]  ;;  %v4120_v35 = vld [vmem:[%s9618_s1 + $0xd8] sm:$0xf0] }
  0x69   :  { %1469 = vmatpush.bf16.msrb.mxu0 %v4119_v52  ;;  %v5823_v52 = vld [vmem:[%s9618_s1 + $0x34] sm:$0xf0]  ;;  %v4022_v3 = vld [vmem:[%s9618_s1 + $0x8] sm:$0xf]  ;;  %v4248_v37 = vld [vmem:[%s9618_s1 + $0x1d8] sm:$0xf0] }
  0x6a   :  { %1488 = vmatpush.bf16.msrb.mxu1 %v4247_v55  ;;  %v4166_v55 = vld [vmem:[%s9618_s1 + $0x128] sm:$0xf]  ;;  %v4039_v2 = vor.u32 %v5823_v52, %v4038_v49  ;;  %v5819_v4 = vld [vmem:[%s9618_s1 + $0x14] sm:$0xf0]  ;;  %v5837_v52 = vld [vmem:[%s9618_s1 + $0xac] sm:$0xf] }
  0x6b   :  { %1526 = vmatpush.bf16.msrb.mxu3 %v4503_v0  ;;  %v4422_v0 = vld [vmem:[%s9618_s1 + $0x328] sm:$0xf]  ;;  %v4167_v5 = vor.u32 %v5855_v61, %v4166_v55  ;;  %v5883_v11 = vld [vmem:[%s9618_s1 + $0x214] sm:$0xf0]  ;;  %v4023_v17 = vor.u32 %v5819_v4, %v4022_v3  ;;  %v4104_v55 = vld [vmem:[%s9618_s1 + $0xb8] sm:$0xf0] }
  0x6c   :  { %1507 = vmatpush.bf16.msrb.mxu2 %v4375_v60  ;;  %v4439_v60 = vor.u32 %v5923_v41, %v4438_v40  ;;  %v4278_v9 = vld [vmem:[%s9618_s1 + $0x208] sm:$0xf]  ;;  %v4423_v10 = vor.u32 %v5919_v1, %v4422_v0  ;;  %v5915_v13 = vld [vmem:[%s9618_s1 + $0x314] sm:$0xf0]  ;;  %v4123_v40 = vor.u32 %v5841_v34, %v4120_v35  ;;  %v4232_v61 = vld [vmem:[%s9618_s1 + $0x1b8] sm:$0xf0]  ;;  %v4107_v0 = vor.u32 %v5837_v52, %v4104_v55 }
  0x6d   :  { %1470 = vmatpush.bf16.msrb.mxu0 %v4103_v6  ;;  %v4295_v6 = vor.u32 %v5887_v63, %v4294_v62  ;;  %v4646_v14 = vld [vmem:[%s9618_s1 + $0x4e8] sm:$0xf]  ;;  %v5975_v15 = vld [vmem:[%s9618_s1 + $0x4f4] sm:$0xf0]  ;;  %v4279_v22 = vor.u32 %v5883_v11, %v4278_v9  ;;  %v4216_v9 = vld [vmem:[%s9618_s1 + $0x198] sm:$0xf0] }
  0x6e   :  { %1489 = vmatpush.bf16.msrb.mxu1 %v4231_v7  ;;  %v4150_v7 = vld [vmem:[%s9618_s1 + $0x108] sm:$0xf]  ;;  %v4647_v26 = vor.u32 %v5975_v15, %v4646_v14  ;;  %v6003_v33 = vld [vmem:[%s9618_s1 + $0x5d4] sm:$0xf0] }
  0x6f   :  { %1527 = vmatpush.bf16.msrb.mxu3 %v4487_v12  ;;  %v4406_v12 = vld [vmem:[%s9618_s1 + $0x308] sm:$0xf]  ;;  %v5999_v49 = vld [vmem:[%s9618_s1 + $0x5b4] sm:$0xf0] }
  0x70   :  { %1508 = vmatpush.bf16.msrb.mxu2 %v4359_v8  ;;  %v5851_v8 = vld [vmem:[%s9618_s1 + $0x114] sm:$0xf0]  ;;  %v4774_v16 = vld [vmem:[%s9618_s1 + $0x5e8] sm:$0xf]  ;;  %v4407_v25 = vor.u32 %v5915_v13, %v4406_v12 }
  0x71   :  { %1471 = vmatpush.bf16.msrb.mxu0 %v4087_v18  ;;  %v6007_v18 = vld [vmem:[%s9618_s1 + $0x5f4] sm:$0xf0]  ;;  %v4151_v21 = vor.u32 %v5851_v8, %v4150_v7  ;;  %v4614_v41 = vld [vmem:[%s9618_s1 + $0x4a8] sm:$0xf]  ;;  %v4088_v7 = vld [vmem:[%s9618_s1 + $0x98] sm:$0xf0] }
  0x72   :  { %1490 = vmatpush.bf16.msrb.mxu1 %v4215_v19  ;;  %v5845_v19 = vld [vmem:[%s9618_s1 + $0xec] sm:$0xf]  ;;  %v4775_v27 = vor.u32 %v6007_v18, %v4774_v16  ;;  %v4598_v1 = vld [vmem:[%s9618_s1 + $0x488] sm:$0xf]  ;;  %v5959_v14 = vld [vmem:[%s9618_s1 + $0x474] sm:$0xf0] }
  0x73   :  { %1528 = vmatpush.bf16.msrb.mxu3 %v4471_v24  ;;  %v4264_v24 = vld [vmem:[%s9618_s1 + $0x1f8] sm:$0xf0]  ;;  %v4726_v3 = vld [vmem:[%s9618_s1 + $0x588] sm:$0xf]  ;;  %v5865_v8 = vld [vmem:[%s9618_s1 + $0x18c] sm:$0xf] }
  0x74   :  { %1509 = vmatpush.bf16.msrb.mxu2 %v4343_v20  ;;  %1405 = vmatmul.bf16.gmra.mxu0 %v6679_v51  ;;  %v4136_v20 = vld [vmem:[%s9618_s1 + $0xf8] sm:$0xf0]  ;;  %v4267_v29 = vor.u32 %v5877_v23, %v4264_v24  ;;  %v4582_v13 = vld [vmem:[%s9618_s1 + $0x468] sm:$0xf]  ;;  %v4219_v16 = vor.u32 %v5865_v8, %v4216_v9  ;;  %v5829_v18 = vld [vmem:[%s9618_s1 + $0x6c] sm:$0xf] }
  0x75   :  { %1472 = vmatpush.bf16.msrb.mxu0 %v4071_v30  ;;  %1424 = vmatmul.bf16.gmra.mxu1 %v6687_v56  ;;  %v4139_v28 = vor.u32 %v5845_v19, %v4136_v20  ;;  %v4630_v30 = vld [vmem:[%s9618_s1 + $0x4c8] sm:$0xf]  ;;  %v4072_v19 = vld [vmem:[%s9618_s1 + $0x78] sm:$0xf0]  ;;  %v5861_v20 = vld [vmem:[%s9618_s1 + $0x16c] sm:$0xf] }
  0x76   :  { %1491 = vmatpush.bf16.msrb.mxu1 %v4199_v31  ;;  %1462 = vmatmul.bf16.gmra.mxu3 %v6925_v58  ;;  %v5971_v31 = vld [vmem:[%s9618_s1 + $0x4d4] sm:$0xf0]  ;;  %v4710_v15 = vld [vmem:[%s9618_s1 + $0x568] sm:$0xf]  ;;  %v4075_v24 = vor.u32 %v5829_v18, %v4072_v19  ;;  %v5941_v8 = vld [vmem:[%s9618_s1 + $0x3ec] sm:$0xf] }
  0x77   :  { %1529 = vmatpush.bf16.msrb.mxu3 %v4455_v36  ;;  %1443 = vmatmul.bf16.gmra.mxu2 %v6914_v45  ;;  %v5873_v36 = vld [vmem:[%s9618_s1 + $0x1cc] sm:$0xf]  ;;  %v4631_v38 = vor.u32 %v5971_v31, %v4630_v30  ;;  %v4056_v31 = vld [vmem:[%s9618_s1 + $0x58] sm:$0xf0]  ;;  %v4534_v55 = vld [vmem:[%s9618_s1 + $0x408] sm:$0xf] }
  0x78   :  { %1510 = vmatpush.bf16.msrb.mxu2 %v4327_v32  ;;  %v4758_v32 = vld [vmem:[%s9618_s1 + $0x5c8] sm:$0xf]  ;;  %v5825_v30 = vld [vmem:[%s9618_s1 + $0x4c] sm:$0xf] }
  0x79   :  { %1473 = vmatpush.bf16.msrb.mxu0 %v4055_v42  ;;  %v4759_v39 = vor.u32 %v6003_v33, %v4758_v32  ;;  %v5967_v42 = vld [vmem:[%s9618_s1 + $0x4b4] sm:$0xf0]  ;;  %v5857_v32 = vld [vmem:[%s9618_s1 + $0x14c] sm:$0xf]  ;;  %v4184_v33 = vld [vmem:[%s9618_s1 + $0x158] sm:$0xf0] }
  0x7a   :  { %1492 = vmatpush.bf16.msrb.mxu1 %v4183_v43  ;;  %v4742_v43 = vld [vmem:[%s9618_s1 + $0x5a8] sm:$0xf]  ;;  %v4615_v62 = vor.u32 %v5967_v42, %v4614_v41  ;;  %v5983_v41 = vld [vmem:[%s9618_s1 + $0x534] sm:$0xf0]  ;;  %v5821_v42 = vld [vmem:[%s9618_s1 + $0x2c] sm:$0xf] }
  0x7b   :  { %1530 = vmatpush.bf16.msrb.mxu3 %v4439_v60  ;;  %v5869_v60 = vld [vmem:[%s9618_s1 + $0x1ac] sm:$0xf]  ;;  %v4743_v63 = vor.u32 %v5999_v49, %v4742_v43  ;;  %v4040_v43 = vld [vmem:[%s9618_s1 + $0x38] sm:$0xf0] }
  0x7c   :  { %1511 = vmatpush.bf16.msrb.mxu2 %v4311_v46  ;;  %v4251_v46 = vor.u32 %v5873_v36, %v4248_v37  ;;  %v4235_v4 = vor.u32 %v5869_v60, %v4232_v61  ;;  %v4059_v36 = vor.u32 %v5825_v30, %v4056_v31  ;;  %v4550_v37 = vld [vmem:[%s9618_s1 + $0x428] sm:$0xf]  ;;  %v4168_v49 = vld [vmem:[%s9618_s1 + $0x138] sm:$0xf0]  ;;  %v5947_v60 = vld [vmem:[%s9618_s1 + $0x414] sm:$0xf0] }
  0x7d   :  { %1474 = vmatpush.bf16.msrb.mxu0 %v4039_v2  ;;  %v5963_v2 = vld [vmem:[%s9618_s1 + $0x494] sm:$0xf0]  ;;  %v4535_v9 = vor.u32 %v5947_v60, %v4534_v55  ;;  %v4760_v30 = vld [vmem:[%s9618_s1 + $0x5d8] sm:$0xf0] }
  0x7e   :  { %1493 = vmatpush.bf16.msrb.mxu1 %v4167_v5  ;;  %v5995_v5 = vld [vmem:[%s9618_s1 + $0x594] sm:$0xf0]  ;;  %v4344_v60 = vld [vmem:[%s9618_s1 + $0x298] sm:$0xf0] }
  0x7f   :  { %1531 = vmatpush.bf16.msrb.mxu3 %v4423_v10  ;;  %v4599_v10 = vor.u32 %v5963_v2, %v4598_v1  ;;  %v4727_v11 = vor.u32 %v5995_v5, %v4726_v3  ;;  %v5817_v1 = vld [vmem:[%s9618_s1 + $0xc] sm:$0xf]  ;;  %v4024_v3 = vld [vmem:[%s9618_s1 + $0x18] sm:$0xf0] }
  0x80   :  { %1512 = vmatpush.bf16.msrb.mxu2 %v4295_v6  ;;  %v5833_v6 = vld [vmem:[%s9618_s1 + $0x8c] sm:$0xf]  ;;  %v4152_v5 = vld [vmem:[%s9618_s1 + $0x118] sm:$0xf0] }
  0x81   :  { %1475 = vmatpush.bf16.msrb.mxu0 %v4023_v17  ;;  %v4091_v12 = vor.u32 %v5833_v6, %v4088_v7  ;;  %v5991_v17 = vld [vmem:[%s9618_s1 + $0x574] sm:$0xf0]  ;;  %v5909_v6 = vld [vmem:[%s9618_s1 + $0x2ec] sm:$0xf]  ;;  %v4392_v7 = vld [vmem:[%s9618_s1 + $0x2f8] sm:$0xf0] }
  0x82   :  { %1494 = vmatpush.bf16.msrb.mxu1 %v4151_v21  ;;  %v4200_v21 = vld [vmem:[%s9618_s1 + $0x178] sm:$0xf0]  ;;  %v4711_v23 = vor.u32 %v5991_v17, %v4710_v15  ;;  %v6005_v15 = vld [vmem:[%s9618_s1 + $0x5ec] sm:$0xf]  ;;  %v4395_v18 = vor.u32 %v5909_v6, %v4392_v7 }
  0x83   :  { %1532 = vmatpush.bf16.msrb.mxu3 %v4407_v25  ;;  %v4566_v25 = vld [vmem:[%s9618_s1 + $0x448] sm:$0xf]  ;;  %v4728_v6 = vld [vmem:[%s9618_s1 + $0x598] sm:$0xf0] }
  0x84   :  { %1513 = vmatpush.bf16.msrb.mxu2 %v4279_v22  ;;  %1476 = vmatmul.bf16.vlgmr.msrb.gmra.mxu0 %v6534_v48  ;;  %v4583_v22 = vor.u32 %v5959_v14, %v4582_v13  ;;  %v4027_v14 = vor.u32 %v5817_v1, %v4024_v3  ;;  %v4600_v1 = vld [vmem:[%s9618_s1 + $0x498] sm:$0xf0] }
  0x85   :  { %1544 = vmatpush.bf16.msra.mxu0 %v4647_v26  ;;  %1495 = vmatmul.bf16.vlgmr.msrb.gmra.mxu1 %v6545_v53  ;;  %v5955_v26 = vld [vmem:[%s9618_s1 + $0x454] sm:$0xf0] }
  0x86   :  { %1563 = vmatpush.bf16.msra.mxu1 %v4775_v27  ;;  %1533 = vmatmul.bf16.vlgmr.msrb.gmra.mxu3 %v6555_v57  ;;  %v4694_v27 = vld [vmem:[%s9618_s1 + $0x548] sm:$0xf]  ;;  %v4567_v34 = vor.u32 %v5955_v26, %v4566_v25  ;;  %v4504_v25 = vld [vmem:[%s9618_s1 + $0x3d8] sm:$0xf0]  ;;  %v5969_v26 = vld [vmem:[%s9618_s1 + $0x4cc] sm:$0xf] }
  0x87   :  { %1601 = vmatpush.bf16.msra.mxu3 %v4267_v29  ;;  %1514 = vmatmul.bf16.vlgmr.msrb.gmra.mxu2 %v6547_v54  ;;  %v5987_v29 = vld [vmem:[%s9618_s1 + $0x554] sm:$0xf0] }
  0x88   :  { %1582 = vmatpush.bf16.msra.mxu2 %v4139_v28  ;;  %v4203_v28 = vor.u32 %v5861_v20, %v4200_v21  ;;  %v4695_v35 = vor.u32 %v5987_v29, %v4694_v27  ;;  %v4632_v27 = vld [vmem:[%s9618_s1 + $0x4d8] sm:$0xf0]  ;;  %v6001_v29 = vld [vmem:[%s9618_s1 + $0x5cc] sm:$0xf] }
  0x89   :  { %1545 = vmatpush.bf16.msra.mxu0 %v4631_v38  ;;  %v5951_v38 = vld [vmem:[%s9618_s1 + $0x434] sm:$0xf0] }
  0x8a   :  { %1564 = vmatpush.bf16.msra.mxu1 %v4759_v39  ;;  %v4678_v39 = vld [vmem:[%s9618_s1 + $0x528] sm:$0xf]  ;;  %v4551_v52 = vor.u32 %v5951_v38, %v4550_v37  ;;  %v4360_v37 = vld [vmem:[%s9618_s1 + $0x2b8] sm:$0xf0]  ;;  %v5933_v38 = vld [vmem:[%s9618_s1 + $0x3ac] sm:$0xf] }
  0x8b   :  { %1602 = vmatpush.bf16.msra.mxu3 %v4251_v46  ;;  %v5853_v46 = vld [vmem:[%s9618_s1 + $0x12c] sm:$0xf]  ;;  %v4679_v61 = vor.u32 %v5983_v41, %v4678_v39  ;;  %v4763_v39 = vor.u32 %v6001_v29, %v4760_v30  ;;  %v4440_v29 = vld [vmem:[%s9618_s1 + $0x358] sm:$0xf0] }
  0x8c   :  { %1583 = vmatpush.bf16.msra.mxu2 %v4123_v40  ;;  %v4187_v40 = vor.u32 %v5857_v32, %v4184_v33  ;;  %v4171_v2 = vor.u32 %v5853_v46, %v4168_v49  ;;  %v5965_v41 = vld [vmem:[%s9618_s1 + $0x4ac] sm:$0xf]  ;;  %v4744_v46 = vld [vmem:[%s9618_s1 + $0x5b8] sm:$0xf0] }
  0x8d   :  { %1546 = vmatpush.bf16.msra.mxu0 %v4615_v62  ;;  %v4043_v62 = vor.u32 %v5821_v42, %v4040_v43  ;;  %v4616_v42 = vld [vmem:[%s9618_s1 + $0x4b8] sm:$0xf0]  ;;  %v5997_v43 = vld [vmem:[%s9618_s1 + $0x5ac] sm:$0xf] }
  0x8e   :  { %1565 = vmatpush.bf16.msra.mxu1 %v4743_v63  ;;  %v4662_v63 = vld [vmem:[%s9618_s1 + $0x508] sm:$0xf]  ;;  %v4619_v55 = vor.u32 %v5965_v41, %v4616_v42  ;;  %v5953_v30 = vld [vmem:[%s9618_s1 + $0x44c] sm:$0xf]  ;;  %v4296_v42 = vld [vmem:[%s9618_s1 + $0x238] sm:$0xf0] }
  0x8f   :  { %1603 = vmatpush.bf16.msra.mxu3 %v4235_v4  ;;  %v5849_v4 = vld [vmem:[%s9618_s1 + $0x10c] sm:$0xf] }
  0x90   :  { %1584 = vmatpush.bf16.msra.mxu2 %v4107_v0  ;;  %v5979_v0 = vld [vmem:[%s9618_s1 + $0x514] sm:$0xf0]  ;;  %v4155_v17 = vor.u32 %v5849_v4, %v4152_v5  ;;  %v5993_v5 = vld [vmem:[%s9618_s1 + $0x58c] sm:$0xf] }
  0x91   :  { %1547 = vmatpush.bf16.msra.mxu0 %v4599_v10  ;;  %v4520_v10 = vld [vmem:[%s9618_s1 + $0x3f8] sm:$0xf0]  ;;  %v4663_v13 = vor.u32 %v5979_v0, %v4662_v63  ;;  %v5961_v0 = vld [vmem:[%s9618_s1 + $0x48c] sm:$0xf] }
  0x92   :  { %1566 = vmatpush.bf16.msra.mxu1 %v4727_v11  ;;  %v5973_v11 = vld [vmem:[%s9618_s1 + $0x4ec] sm:$0xf]  ;;  %v4523_v19 = vor.u32 %v5941_v8, %v4520_v10  ;;  %v4472_v63 = vld [vmem:[%s9618_s1 + $0x398] sm:$0xf0] }
  0x93   :  { %1604 = vmatpush.bf16.msra.mxu3 %v4219_v16  ;;  %v4776_v16 = vld [vmem:[%s9618_s1 + $0x5f8] sm:$0xf0]  ;;  %v5885_v41 = vld [vmem:[%s9618_s1 + $0x22c] sm:$0xf] }
  0x94   :  { %1585 = vmatpush.bf16.msra.mxu2 %v4091_v12  ;;  %1481 = vmatmul.bf16.gmra.mxu0 %v6666_v44  ;;  %v4648_v12 = vld [vmem:[%s9618_s1 + $0x4f8] sm:$0xf0]  ;;  %v4779_v21 = vor.u32 %v6005_v15, %v4776_v16  ;;  %v4731_v15 = vor.u32 %v5993_v5, %v4728_v6 }
  0x95   :  { %1548 = vmatpush.bf16.msra.mxu0 %v4583_v22  ;;  %1500 = vmatmul.bf16.gmra.mxu1 %v6677_v50  ;;  %v4651_v20 = vor.u32 %v5973_v11, %v4648_v12  ;;  %v5905_v22 = vld [vmem:[%s9618_s1 + $0x2cc] sm:$0xf]  ;;  %v4603_v11 = vor.u32 %v5961_v0, %v4600_v1  ;;  %v4456_v16 = vld [vmem:[%s9618_s1 + $0x378] sm:$0xf0] }
  0x96   :  { %1567 = vmatpush.bf16.msra.mxu1 %v4711_v23  ;;  %1538 = vmatmul.bf16.gmra.mxu3 %v6687_v56  ;;  %v4376_v23 = vld [vmem:[%s9618_s1 + $0x2d8] sm:$0xf0]  ;;  %v5893_v12 = vld [vmem:[%s9618_s1 + $0x26c] sm:$0xf] }
  0x97   :  { %1605 = vmatpush.bf16.msra.mxu3 %v4203_v28  ;;  %1519 = vmatmul.bf16.gmra.mxu2 %v6679_v51  ;;  %v4379_v32 = vor.u32 %v5905_v22, %v4376_v23  ;;  %v5913_v0 = vld [vmem:[%s9618_s1 + $0x30c] sm:$0xf]  ;;  %v4536_v5 = vld [vmem:[%s9618_s1 + $0x418] sm:$0xf0] }
  0x98   :  { %1586 = vmatpush.bf16.msra.mxu2 %v4075_v24  ;;  %v5937_v24 = vld [vmem:[%s9618_s1 + $0x3cc] sm:$0xf] }
  0x99   :  { %1549 = vmatpush.bf16.msra.mxu0 %v4567_v34  ;;  %v4507_v34 = vor.u32 %v5937_v24, %v4504_v25  ;;  %v5889_v24 = vld [vmem:[%s9618_s1 + $0x24c] sm:$0xf]  ;;  %v4312_v25 = vld [vmem:[%s9618_s1 + $0x258] sm:$0xf0] }
  0x9a   :  { %1568 = vmatpush.bf16.msra.mxu1 %v4695_v35  ;;  %v4635_v35 = vor.u32 %v5969_v26, %v4632_v27  ;;  %v5921_v26 = vld [vmem:[%s9618_s1 + $0x34c] sm:$0xf] }
  0x9b   :  { %1606 = vmatpush.bf16.msra.mxu3 %v4187_v40  ;;  %v4488_v40 = vld [vmem:[%s9618_s1 + $0x3b8] sm:$0xf0] }
  0x9c   :  { %1587 = vmatpush.bf16.msra.mxu2 %v4059_v36  ;;  %v5901_v36 = vld [vmem:[%s9618_s1 + $0x2ac] sm:$0xf] }
  0x9d   :  { %1550 = vmatpush.bf16.msra.mxu0 %v4551_v52  ;;  %v4363_v49 = vor.u32 %v5901_v36, %v4360_v37  ;;  %v4491_v52 = vor.u32 %v5933_v38, %v4488_v40  ;;  %v4315_v37 = vor.u32 %v5889_v24, %v4312_v25 }
  0x9e   :  { %1569 = vmatpush.bf16.msra.mxu1 %v4679_v61  ;;  %v5929_v61 = vld [vmem:[%s9618_s1 + $0x38c] sm:$0xf] }
  0x9f   :  { %1607 = vmatpush.bf16.msra.mxu3 %v4171_v2  ;;  %v4475_v10 = vor.u32 %v5929_v61, %v4472_v63  ;;  %v4299_v61 = vor.u32 %v5885_v41, %v4296_v42  ;;  %v4280_v63 = vld [vmem:[%s9618_s1 + $0x218] sm:$0xf0] }
  0xa0   :  { %1588 = vmatpush.bf16.msra.mxu2 %v4043_v62 }
  0xa1   :  { %1551 = vmatpush.bf16.msra.mxu0 %v4535_v9  ;;  %v1249_v28 = vpop.f32.mrf.mxu0  ;;  %v1268_v31 = vpop.f32.mrf.mxu1 }
  0xa2   :  { %1570 = vmatpush.bf16.msra.mxu1 %v4663_v13  ;;  %v1269_v33 = vadd.f32 %v1268_v31, %v1249_v28  ;;  %v4328_v13 = vld [vmem:[%s9618_s1 + $0x278] sm:$0xf0] }
  0xa3   :  { %1608 = vmatpush.bf16.msra.mxu3 %v4155_v17  ;;  %v5957_v17 = vld [vmem:[%s9618_s1 + $0x46c] sm:$0xf]  ;;  %v4568_v31 = vld [vmem:[%s9618_s1 + $0x458] sm:$0xf0] }
  0xa4   :  { %1589 = vmatpush.bf16.msra.mxu2 %v4027_v14  ;;  %1552 = vmatmul.bf16.vlgmr.msra.gmra.mxu0 %v6798_v47  ;;  %v5925_v14 = vld [vmem:[%s9618_s1 + $0x36c] sm:$0xf]  ;;  %v4571_v40 = vor.u32 %v5953_v30, %v4568_v31 }
  0xa5   :  { %1620 = vmatpush.bf16.msrb.mxu0 %v4395_v18  ;;  %1571 = vmatmul.bf16.vlgmr.msra.gmra.mxu1 %v6809_v59  ;;  %v4584_v18 = vld [vmem:[%s9618_s1 + $0x478] sm:$0xf0]  ;;  %v4459_v22 = vor.u32 %v5925_v14, %v4456_v16 }
  0xa6   :  { %1639 = vmatpush.bf16.msrb.mxu1 %v4523_v19  ;;  %1609 = vmatmul.bf16.vlgmr.msra.gmra.mxu3 %v6545_v53  ;;  %v4747_v53 = vor.u32 %v5997_v43, %v4744_v46  ;;  %v5989_v19 = vld [vmem:[%s9618_s1 + $0x56c] sm:$0xf]  ;;  %v4587_v23 = vor.u32 %v5957_v17, %v4584_v18 }
  0xa7   :  { %1677 = vmatpush.bf16.msrb.mxu3 %v4779_v21  ;;  %1590 = vmatmul.bf16.vlgmr.msra.gmra.mxu2 %v6534_v48  ;;  %v5897_v48 = vld [vmem:[%s9618_s1 + $0x28c] sm:$0xf]  ;;  %v4331_v21 = vor.u32 %v5893_v12, %v4328_v13  ;;  %v4664_v12 = vld [vmem:[%s9618_s1 + $0x518] sm:$0xf0] }
  0xa8   :  { %1658 = vmatpush.bf16.msrb.mxu2 %v4651_v20  ;;  %v4347_v8 = vor.u32 %v5897_v48, %v4344_v60  ;;  %v4712_v20 = vld [vmem:[%s9618_s1 + $0x578] sm:$0xf0]  ;;  %v5917_v43 = vld [vmem:[%s9618_s1 + $0x32c] sm:$0xf] }
  0xa9   :  { %1621 = vmatpush.bf16.msrb.mxu0 %v4379_v32  ;;  %v1306_v3 = vpop.f32.mrf.mxu3  ;;  %v7479_v4 = vpop.f32.mrf.mxu0  ;;  %v4715_v28 = vor.u32 %v5989_v19, %v4712_v20  ;;  %v5981_v48 = vld [vmem:[%s9618_s1 + $0x52c] sm:$0xf]  ;;  %v4680_v60 = vld [vmem:[%s9618_s1 + $0x538] sm:$0xf0] }
  0xaa   :  { %1640 = vmatpush.bf16.msrb.mxu1 %v4507_v34  ;;  %v1287_v62 = vpop.f32.mrf.mxu2  ;;  %v7487_v7 = vpop.f32.mrf.mxu1  ;;  %v5985_v34 = vld [vmem:[%s9618_s1 + $0x54c] sm:$0xf] }
  0xab   :  { %1678 = vmatpush.bf16.msrb.mxu3 %v4763_v39  ;;  %v1288_v2 = vadd.f32 %v1287_v62, %v1269_v33  ;;  %v4443_v39 = vor.u32 %v5921_v26, %v4440_v29 }
  0xac   :  { %1659 = vmatpush.bf16.msrb.mxu2 %v4635_v35  ;;  %v4696_v35 = vld [vmem:[%s9618_s1 + $0x558] sm:$0xf0] }
  0xad   :  { %1622 = vmatpush.bf16.msrb.mxu0 %v4363_v49  ;;  %v7489_v9 = vadd.f32 %v1306_v3, %v1288_v2  ;;  %v4699_v46 = vor.u32 %v5985_v34, %v4696_v35  ;;  %v4424_v49 = vld [vmem:[%s9618_s1 + $0x338] sm:$0xf0]  ;;  %v5945_v3 = vld [vmem:[%s9618_s1 + $0x40c] sm:$0xf] }
  0xae   :  { %1641 = vmatpush.bf16.msrb.mxu1 %v4491_v52  ;;  %v5949_v52 = vld [vmem:[%s9618_s1 + $0x42c] sm:$0xf]  ;;  %v4427_v62 = vor.u32 %v5917_v43, %v4424_v49  ;;  %v4408_v2 = vld [vmem:[%s9618_s1 + $0x318] sm:$0xf0]  ;;  %v4539_v17 = vor.u32 %v5945_v3, %v4536_v5 }
  0xaf   :  { %1679 = vmatpush.bf16.msrb.mxu3 %v4747_v53  ;;  %v4411_v16 = vor.u32 %v5913_v0, %v4408_v2 }
  0xb0   :  { %1660 = vmatpush.bf16.msrb.mxu2 %v4619_v55  ;;  %v4552_v55 = vld [vmem:[%s9618_s1 + $0x438] sm:$0xf0] }
  0xb1   :  { %1623 = vmatpush.bf16.msrb.mxu0 %v4347_v8  ;;  %v7535_v32 = vpop.f32.mrf.mxu3  ;;  %v1254_v33 = vpop.f32.mrf.mxu0  ;;  %v4555_v53 = vor.u32 %v5949_v52, %v4552_v55 }
  0xb2   :  { %1642 = vmatpush.bf16.msrb.mxu1 %v4475_v10  ;;  %v7524_v27 = vpop.f32.mrf.mxu2  ;;  %v1273_v36 = vpop.f32.mrf.mxu1 }
  0xb3   :  { %1680 = vmatpush.bf16.msrb.mxu3 %v4731_v15  ;;  %v1274_v38 = vadd.f32 %v1273_v36, %v1254_v33 }
  0xb4   :  { %1661 = vmatpush.bf16.msrb.mxu2 %v4603_v11  ;;  %1557 = vmatmul.bf16.gmra.mxu0 %v6914_v45  ;;  %v5977_v11 = vld [vmem:[%s9618_s1 + $0x50c] sm:$0xf] }
  0xb5   :  { %1624 = vmatpush.bf16.msrb.mxu0 %v4331_v21  ;;  %1576 = vmatmul.bf16.gmra.mxu1 %v6925_v58  ;;  %v4667_v18 = vor.u32 %v5977_v11, %v4664_v12 }
  0xb6   :  { %1643 = vmatpush.bf16.msrb.mxu1 %v4459_v22  ;;  %1614 = vmatmul.bf16.gmra.mxu3 %v6677_v50  ;;  %v4683_v50 = vor.u32 %v5981_v48, %v4680_v60 }
  0xb7   :  { %1681 = vmatpush.bf16.msrb.mxu3 %v4715_v28  ;;  %1595 = vmatmul.bf16.gmra.mxu2 %v6666_v44  ;;  %v5881_v44 = vld [vmem:[%s9618_s1 + $0x20c] sm:$0xf] }
  0xb8   :  { %1662 = vmatpush.bf16.msrb.mxu2 %v4587_v23  ;;  %v4283_v14 = vor.u32 %v5881_v44, %v4280_v63 }
  0xb9   :  { %1625 = vmatpush.bf16.msrb.mxu0 %v4315_v37  ;;  %v1311_v8 = vpop.f32.mrf.mxu3  ;;  %v7589_v10 = vpop.f32.mrf.mxu0 }
  0xba   :  { %1644 = vmatpush.bf16.msrb.mxu1 %v4443_v39  ;;  %v1292_v1 = vpop.f32.mrf.mxu2  ;;  %v7597_v13 = vpop.f32.mrf.mxu1 }
  0xbb   :  { %1682 = vmatpush.bf16.msrb.mxu3 %v4699_v46  ;;  %v1293_v6 = vadd.f32 %v1292_v1, %v1274_v38 }
  0xbc   :  { %1663 = vmatpush.bf16.msrb.mxu2 %v4571_v40 }
  0xbd   :  { %1626 = vmatpush.bf16.msrb.mxu0 %v4299_v61  ;;  %v1312_v15 = vadd.f32 %v1311_v8, %v1293_v6 }
  0xbe   :  { %1645 = vmatpush.bf16.msrb.mxu1 %v4427_v62 }
  0xbf   :  { %1683 = vmatpush.bf16.msrb.mxu3 %v4683_v50 }
  0xc0   :  { %1664 = vmatpush.bf16.msrb.mxu2 %v4555_v53 }
  0xc1   :  { %1627 = vmatpush.bf16.msrb.mxu0 %v4283_v14  ;;  %v7601_v20 = vpop.f32.mrf.mxu3  ;;  %v1325_v21 = vpop.f32.mrf.mxu0 }
  0xc2   :  { %1646 = vmatpush.bf16.msrb.mxu1 %v4411_v16  ;;  %v7599_v19 = vpop.f32.mrf.mxu2  ;;  %v1326_v22 = vadd.f32 %v1325_v21, %v7489_v9  ;;  %v1344_v23 = vpop.f32.mrf.mxu1 }
  0xc3   :  { %1684 = vmatpush.bf16.msrb.mxu3 %v4667_v18 }
  0xc4   :  { %1665 = vmatpush.bf16.msrb.mxu2 %v4539_v17  ;;  %v7604_v24 = vadd.f32 %v1344_v23, %v1326_v22  ;;  %1628 = vmatmul.bf16.vlgmr.msrb.gmra.mxu0 %v6547_v54 }
  0xc5   :  { %1647 = vmatmul.bf16.vlgmr.msrb.gmra.mxu1 %v6555_v57 }
  0xc6   :  { %1685 = vmatmul.bf16.vlgmr.msrb.gmra.mxu3 %v6809_v59 }
  0xc7   :  { %1666 = vmatmul.bf16.vlgmr.msrb.gmra.mxu2 %v6798_v47 }
  0xc9   :  { %v1382_v26 = vpop.f32.mrf.mxu3  ;;  %v7610_v28 = vpop.f32.mrf.mxu0 }
  0xca   :  { %v1363_v25 = vpop.f32.mrf.mxu2  ;;  %v7612_v30 = vpop.f32.mrf.mxu1 }
  0xcb   :  { %v1383_v29 = vadd.f32 %v1382_v26, %v1363_v25 }
  0xd1   :  { %v7616_v9 = vpop.f32.mrf.mxu3  ;;  %v1330_v33 = vpop.f32.mrf.mxu0 }
  0xd2   :  { %v7614_v31 = vpop.f32.mrf.mxu2  ;;  %v1331_v34 = vadd.f32 %v1330_v33, %v1312_v15  ;;  %v1349_v54 = vpop.f32.mrf.mxu1 }
  0xd4   :  { %v7618_v35 = vadd.f32 %v1349_v54, %v1331_v34  ;;  %1633 = vmatmul.bf16.gmra.mxu0 %v6679_v51 }
  0xd5   :  { %1652 = vmatmul.bf16.gmra.mxu1 %v6687_v56 }
  0xd6   :  { %9624 = vst [vmem:[#allocation2_spill] sm:$0xff] %v7618_v35  ;;  %1690 = vmatmul.bf16.gmra.mxu3 %v6925_v58 }
  0xd7   :  { %1671 = vmatmul.bf16.gmra.mxu2 %v6914_v45 }
  0xd9   :  { %v1387_v47 = vpop.f32.mrf.mxu3  ;;  %v7624_v59 = vpop.f32.mrf.mxu0 }
  0xda   :  { %v1368_v57 = vpop.f32.mrf.mxu2  ;;  %9625 = vst [vmem:[#allocation3_spill] sm:$0xff] %v7624_v59  ;;  %v7626_v37 = vpop.f32.mrf.mxu1 }
  0xdb   :  { %v1388_v36 = vadd.f32 %v1387_v47, %v1368_v57  ;;  %9626 = vst [vmem:[#allocation4_spill] sm:$0xff] %v7626_v37 }
  0xe1   :  { %v7630_v39 = vpop.f32.mrf.mxu3  ;;  %v1401_v40 = vpop.f32.mrf.mxu0 }
  0xe2   :  { %v7628_v38 = vpop.f32.mrf.mxu2  ;;  %v1402_v41 = vadd.f32 %v1401_v40, %v1383_v29  ;;  %v1420_v51 = vpop.f32.mrf.mxu1 }
  0xe4   :  { %v1421_v42 = vadd.f32 %v1420_v51, %v1402_v41 }
  0xe9   :  { %v1458_v45 = vpop.f32.mrf.mxu3  ;;  %v1403_v46 = vpop.f32.mrf.mxu0 }
  0xea   :  { %v1439_v56 = vpop.f32.mrf.mxu2  ;;  %v1422_v58 = vpop.f32.mrf.mxu1 }
  0xeb   :  { %v1440_v43 = vadd.f32 %v1439_v56, %v1421_v42 }
  0xed   :  { %v7632_v49 = vadd.f32 %v1458_v45, %v1440_v43 }
  0xf1   :  { %v7636_v55 = vpop.f32.mrf.mxu3  ;;  %v1406_v48 = vpop.f32.mrf.mxu0 }
  0xf2   :  { %v7634_v52 = vpop.f32.mrf.mxu2  ;;  %v1407_v60 = vadd.f32 %v1406_v48, %v1388_v36  ;;  %v1425_v61 = vpop.f32.mrf.mxu1 }
  0xf4   :  { %v1426_v62 = vadd.f32 %v1425_v61, %v1407_v60 }
  0xf9   :  { %v1463_v63 = vpop.f32.mrf.mxu3  ;;  %v7638_v0 = vpop.f32.mrf.mxu0 }
  0xfa   :  { %v1444_v53 = vpop.f32.mrf.mxu2  ;;  %v7640_v1 = vpop.f32.mrf.mxu1 }
  0xfb   :  { %v1445_v44 = vadd.f32 %v1444_v53, %v1426_v62  ;;  %v1385_v62 = vadd.f32 %v7616_v9, %v7614_v31 }
  0xfd   :  { %v7642_v50 = vadd.f32 %v1463_v63, %v1445_v44  ;;  %v1271_v44 = vadd.f32 %v7487_v7, %v7479_v4  ;;  %v1404_v63 = vadd.f32 %v1403_v46, %v1385_v62  ;;  %v1697_v4 = vmul.f32 %v7632_v49, %v7632_v49 }
 0x101   :  { %v7646_v3 = vpop.f32.mrf.mxu3  ;;  %v1477_v5 = vpop.f32.mrf.mxu0 }
 0x102   :  { %v7644_v2 = vpop.f32.mrf.mxu2  ;;  %9627 = vst [vmem:[#allocation5_spill] sm:$0xff] %v7646_v3  ;;  %v1496_v6 = vpop.f32.mrf.mxu1 }
 0x103   :  { %v1497_v43 = vadd.f32 %v1496_v6, %v1477_v5 }
 0x109   :  { %v1534_v11 = vpop.f32.mrf.mxu3  ;;  %v1479_v12 = vpop.f32.mrf.mxu0 }
 0x10a   :  { %v1515_v8 = vpop.f32.mrf.mxu2  ;;  %v1498_v14 = vpop.f32.mrf.mxu1 }
 0x10b   :  { %v1516_v61 = vadd.f32 %v1515_v8, %v1497_v43  ;;  %v1499_v3 = vadd.f32 %v1498_v14, %v1479_v12  ;;  %v1696_v12 = vmul.f32 %v7604_v24, %v7604_v24 }
 0x10d   :  { %v1535_v53 = vadd.f32 %v1534_v11, %v1516_v61  ;;  %v6071_v61 = vld [vmem:[%s9620_s2 + $0x1f4] sm:$0xf0] }
 0x111   :  { %v1536_v16 = vpop.f32.mrf.mxu3  ;;  %v1482_v17 = vpop.f32.mrf.mxu0 }
 0x112   :  { %v1517_v15 = vpop.f32.mrf.mxu2  ;;  %v1501_v18 = vpop.f32.mrf.mxu1 }
 0x113   :  { %v1518_v8 = vadd.f32 %v1517_v15, %v1499_v3  ;;  %v1502_v14 = vadd.f32 %v1501_v18, %v1482_v17 }
 0x115   :  { %v1537_v46 = vadd.f32 %v1536_v16, %v1518_v8  ;;  %v6023_v16 = vld [vmem:[%s9620_s2 + $0x74] sm:$0xf0]  ;;  %v1390_v8 = vadd.f32 %v7630_v39, %v7628_v38 }
 0x119   :  { %v7648_v22 = vpop.f32.mrf.mxu3  ;;  %v7650_v23 = vpop.f32.mrf.mxu0 }
 0x11a   :  { %v1520_v21 = vpop.f32.mrf.mxu2  ;;  %v7652_v25 = vpop.f32.mrf.mxu1 }
 0x11b   :  { %v1521_v18 = vadd.f32 %v1520_v21, %v1502_v14 }
 0x121   :  { %v7656_v29 = vpop.f32.mrf.mxu3  ;;  %v1553_v33 = vpop.f32.mrf.mxu0 }
 0x122   :  { %v7654_v26 = vpop.f32.mrf.mxu2  ;;  %9628 = vst [vmem:[#allocation6_spill] sm:$0xff] %v7656_v29  ;;  %v1572_v34 = vpop.f32.mrf.mxu1  ;;  %v1554_v59 = vadd.f32 %v1553_v33, %v1535_v53  ;;  %v1423_v29 = vadd.f32 %v1422_v58, %v1404_v63 }
 0x124   :  { %v7681_v31 = vadd.f32 %v1572_v34, %v1554_v59  ;;  %v1442_v7 = vadd.f32 %v7634_v52, %v1423_v29  ;;  %v4838_v52 = vld [vmem:[%s9620_s2 + $0x70] sm:$0xf]  ;;  %v1712_v34 = vadd.f32 %v1697_v4, %v1696_v12 }
 0x126   :  { %v7702_v17 = vadd.f32 %v7636_v55, %v1442_v7 }
 0x129   :  { %v1610_v57 = vpop.f32.mrf.mxu3  ;;  %v1555_v47 = vpop.f32.mrf.mxu0 }
 0x12a   :  { %v1591_v54 = vpop.f32.mrf.mxu2  ;;  %v7658_v36 = vpop.f32.mrf.mxu1  ;;  %v1556_v59 = vadd.f32 %v1555_v47, %v1537_v46  ;;  %v4966_v47 = vld [vmem:[%s9620_s2 + $0x170] sm:$0xf]  ;;  %v1409_v46 = vadd.f32 %v7638_v0, %v1390_v8 }
 0x12b   :  { %v1611_v5 = vadd.f32 %v1610_v57, %v1591_v54  ;;  %v4839_v54 = vor.u32 %v6023_v16, %v4838_v52  ;;  %v6039_v57 = vld [vmem:[%s9620_s2 + $0xf4] sm:$0xf0]  ;;  %v9632_v16 = vld [vmem:[#allocation2_spill] sm:$0xff] }
 0x12d   :  { %3464 = vmatpush.bf16.msra.mxu0 %v4839_v54 }
 0x131   :  { %v1612_v41 = vpop.f32.mrf.mxu3  ;;  %v7660_v51 = vpop.f32.mrf.mxu0 }
 0x132   :  { %v1593_v40 = vpop.f32.mrf.mxu2  ;;  %v7662_v42 = vpop.f32.mrf.mxu1 }
 0x133   :  { %v1613_v58 = vadd.f32 %v1612_v41, %v1593_v40  ;;  %v6055_v40 = vld [vmem:[%s9620_s2 + $0x174] sm:$0xf0] }
 0x134   :  { %v4967_v21 = vor.u32 %v6055_v40, %v4966_v47  ;;  %v9635_v40 = vld [vmem:[#allocation5_spill] sm:$0xff] }
 0x136   :  { %3492 = vmatpush.bf16.msra.mxu2 %v4967_v21 }
 0x139   :  { %v7666_v45 = vpop.f32.mrf.mxu3  ;;  %v7668_v48 = vpop.f32.mrf.mxu0 }
 0x13a   :  { %v7664_v56 = vpop.f32.mrf.mxu2  ;;  %9629 = vst [vmem:[#allocation7_spill] sm:$0xff] %v7668_v48  ;;  %v7670_v60 = vpop.f32.mrf.mxu1  ;;  %v1290_v48 = vadd.f32 %v7524_v27, %v1271_v44  ;;  %v7725_v44 = vadd.f32 %v7658_v36, %v1556_v59  ;;  %v1276_v36 = vadd.f32 %v7597_v13, %v7589_v10  ;;  %v1428_v59 = vadd.f32 %v7640_v1, %v1409_v46 }
 0x13b   :  { %9630 = vst [vmem:[#allocation8_spill] sm:$0xff] %v7670_v60  ;;  %v1704_v1 = vmul.f32 %v9632_v16, %v9632_v16 }
 0x13c   :  { %v1309_v9 = vadd.f32 %v7535_v32, %v1290_v48  ;;  %v1702_v39 = vmul.f32 %v7725_v44, %v7725_v44  ;;  %v1295_v13 = vadd.f32 %v7599_v19, %v1276_v36  ;;  %v1705_v19 = vmul.f32 %v7642_v50, %v7642_v50 }
 0x13e   :  { %v1328_v27 = vadd.f32 %v7610_v28, %v1309_v9  ;;  %v4902_v28 = vld [vmem:[%s9620_s2 + $0xf0] sm:$0xf] }
 0x13f   :  { %v4903_v48 = vor.u32 %v6039_v57, %v4902_v28 }
 0x140   :  { %v7722_v62 = vadd.f32 %v7612_v30, %v1328_v27  ;;  %v1540_v30 = vadd.f32 %v7648_v22, %v1521_v18  ;;  %v1616_v22 = vadd.f32 %v7666_v45, %v7664_v56 }
 0x141   :  { %v7678_v6 = vpop.f32.mrf.mxu3  ;;  %v1629_v35 = vpop.f32.mrf.mxu0  ;;  %3478 = vmatpush.bf16.msra.mxu1 %v4903_v48 }
 0x142   :  { %v7676_v37 = vpop.f32.mrf.mxu2  ;;  %v1648_v60 = vpop.f32.mrf.mxu1  ;;  %v1630_v43 = vadd.f32 %v1629_v35, %v1611_v5  ;;  %v1698_v35 = vmul.f32 %v7681_v31, %v7681_v31  ;;  %v1700_v7 = vmul.f32 %v7722_v62, %v7722_v62  ;;  %v1559_v12 = vadd.f32 %v7660_v51, %v1540_v30 }
 0x143   :  { %v1618_v54 = vadd.f32 %v7678_v6, %v7676_v37 }
 0x144   :  { %v1649_v11 = vadd.f32 %v1648_v60, %v1630_v43  ;;  %v5030_v60 = vld [vmem:[%s9620_s2 + $0x1f0] sm:$0xf]  ;;  %v1713_v5 = vadd.f32 %v1712_v34, %v1698_v35  ;;  %v1701_v43 = vmul.f32 %v7702_v17, %v7702_v17  ;;  %v7752_v51 = vadd.f32 %v7662_v42, %v1559_v12  ;;  %v9633_v42 = vld [vmem:[#allocation3_spill] sm:$0xff] }
 0x145   :  { %v5031_v53 = vor.u32 %v6071_v61, %v5030_v60  ;;  %v9634_v34 = vld [vmem:[#allocation7_spill] sm:$0xff]  ;;  %v1722_v60 = vadd.f32 %v1705_v19, %v1704_v1  ;;  %v9636_v61 = vld [vmem:[#allocation4_spill] sm:$0xff] }
 0x146   :  { %v4950_v1 = vld [vmem:[%s9620_s2 + $0x150] sm:$0xf] }
 0x147   :  { %3506 = vmatpush.bf16.msra.mxu3 %v5031_v53 }
 0x149   :  { %v1686_v15 = vpop.f32.mrf.mxu3  ;;  %v1631_v33 = vpop.f32.mrf.mxu0 }
 0x14a   :  { %v1667_v3 = vpop.f32.mrf.mxu2  ;;  %v1650_v29 = vpop.f32.mrf.mxu1  ;;  %v1632_v55 = vadd.f32 %v1631_v33, %v1613_v58  ;;  %v1314_v58 = vadd.f32 %v7601_v20, %v1295_v13  ;;  %v4894_v13 = vld [vmem:[%s9620_s2 + $0xe0] sm:$0xf] }
 0x14b   :  { %v1668_v32 = vadd.f32 %v1667_v3, %v1649_v11  ;;  %v1504_v11 = vadd.f32 %v7652_v25, %v7650_v23  ;;  %v1717_v25 = vadd.f32 %v1701_v43, %v1700_v7 }
 0x14c   :  { %v1651_v9 = vadd.f32 %v1650_v29, %v1632_v55  ;;  %v1333_v28 = vadd.f32 %v9633_v42, %v1314_v58  ;;  %v1706_v29 = vmul.f32 %v7752_v51, %v7752_v51  ;;  %v6069_v58 = vld [vmem:[%s9620_s2 + $0x1e4] sm:$0xf0]  ;;  %v6051_v42 = vld [vmem:[%s9620_s2 + $0x154] sm:$0xf0] }
 0x14d   :  { %v7713_v41 = vadd.f32 %v1686_v15, %v1668_v32  ;;  %v1523_v0 = vadd.f32 %v7654_v26, %v1504_v11  ;;  %v1718_v45 = vadd.f32 %v1717_v25, %v1702_v39  ;;  %v1447_v26 = vadd.f32 %v7644_v2, %v1428_v59  ;;  %v9631_v32 = vld [vmem:[#allocation6_spill] sm:$0xff] }
 0x14e   :  { %v7775_v53 = vadd.f32 %v9636_v61, %v1333_v28  ;;  %v1723_v6 = vadd.f32 %v1722_v60, %v1706_v29  ;;  %v4958_v25 = vld [vmem:[%s9620_s2 + $0x160] sm:$0xf]  ;;  %v5014_v29 = vld [vmem:[%s9620_s2 + $0x1d0] sm:$0xf]  ;;  %v6049_v60 = vld [vmem:[%s9620_s2 + $0x144] sm:$0xf0] }
 0x14f   :  { %v1699_v63 = vmul.f32 %v7713_v41, %v7713_v41  ;;  %v1542_v15 = vadd.f32 %v9631_v32, %v1523_v0  ;;  %v7770_v55 = vadd.f32 %v9635_v40, %v1447_v26  ;;  %v4822_v26 = vld [vmem:[%s9620_s2 + $0x50] sm:$0xf]  ;;  %v6019_v32 = vld [vmem:[%s9620_s2 + $0x54] sm:$0xf0]  ;;  %v6033_v40 = vld [vmem:[%s9620_s2 + $0xc4] sm:$0xf0] }
 0x150   :  { %v1708_v36 = vmul.f32 %v7775_v53, %v7775_v53 }
 0x151   :  { %v1714_v4 = vadd.f32 %v1713_v5, %v1699_v63  ;;  %v1688_v14 = vpop.f32.mrf.mxu3  ;;  %v1634_v10 = vpop.f32.mrf.mxu0  ;;  %v1561_v20 = vadd.f32 %v9634_v34, %v1542_v15  ;;  %v9637_v63 = vld [vmem:[#allocation8_spill] sm:$0xff]  ;;  %v1709_v43 = vmul.f32 %v7770_v55, %v7770_v55  ;;  %v6067_v34 = vld [vmem:[%s9620_s2 + $0x1d4] sm:$0xf0] }
 0x152   :  { %v1669_v38 = vpop.f32.mrf.mxu2  ;;  %v1635_v23 = vadd.f32 %v1634_v10, %v1616_v22  ;;  %v1653_v35 = vpop.f32.mrf.mxu1  ;;  %v6021_v10 = vld [vmem:[%s9620_s2 + $0x64] sm:$0xf0]  ;;  %v4886_v15 = vld [vmem:[%s9620_s2 + $0xd0] sm:$0xf] }
 0x153   :  { %v1670_v27 = vadd.f32 %v1669_v38, %v1651_v9  ;;  %1715 = vadd.xlane.f32.xlu0 %v1714_v4  ;;  %v7778_v5 = vadd.f32 %v9637_v63, %v1561_v20  ;;  %v1727_v39 = vadd.f32 %v1709_v43, %v1708_v36  ;;  %v5015_v20 = vor.u32 %v6067_v34, %v5014_v29  ;;  %v4806_v43 = vld [vmem:[%s9620_s2 + $0x30] sm:$0xf]  ;;  %v6031_v36 = vld [vmem:[%s9620_s2 + $0xb4] sm:$0xf0] }
 0x154   :  { %v1654_v33 = vadd.f32 %v1653_v35, %v1635_v23  ;;  %v6037_v23 = vld [vmem:[%s9620_s2 + $0xe4] sm:$0xf0]  ;;  %v4982_v29 = vld [vmem:[%s9620_s2 + $0x190] sm:$0xf]  ;;  %v6059_v34 = vld [vmem:[%s9620_s2 + $0x194] sm:$0xf0] }
 0x155   :  { %v7748_v3 = vadd.f32 %v1688_v14, %v1670_v27  ;;  %v1710_v7 = vmul.f32 %v7778_v5, %v7778_v5  ;;  %v4830_v14 = vld [vmem:[%s9620_s2 + $0x60] sm:$0xf]  ;;  %v6053_v35 = vld [vmem:[%s9620_s2 + $0x164] sm:$0xf0]  ;;  %v4895_v59 = vor.u32 %v6037_v23, %v4894_v13 }
 0x156   :  { %v4831_v0 = vor.u32 %v6021_v10, %v4830_v14  ;;  %v4798_v14 = vld [vmem:[%s9620_s2 + $0x20] sm:$0xf]  ;;  %v6013_v10 = vld [vmem:[%s9620_s2 + $0x24] sm:$0xf0] }
 0x157   :  { %v1703_v56 = vmul.f32 %v7748_v3, %v7748_v3  ;;  %v1728_v22 = vadd.f32 %v1727_v39, %v1710_v7  ;;  %3479 = vmatpush.bf16.msra.mxu1 %v4895_v59  ;;  %v4934_v7 = vld [vmem:[%s9620_s2 + $0x130] sm:$0xf]  ;;  %v4862_v13 = vld [vmem:[%s9620_s2 + $0xa0] sm:$0xf]  ;;  %v6029_v23 = vld [vmem:[%s9620_s2 + $0xa4] sm:$0xf0] }
 0x158   :  { %3465 = vmatpush.bf16.msra.mxu0 %v4831_v0  ;;  %v4799_v0 = vor.u32 %v6013_v10, %v4798_v14  ;;  %v4863_v59 = vor.u32 %v6029_v23, %v4862_v13  ;;  %v6135_v14 = vld [vmem:[%s9620_s2 + $0x3f4] sm:$0xf0]  ;;  %v5086_v10 = vld [vmem:[%s9620_s2 + $0x260] sm:$0xf] }
 0x159   :  { %v1719_v52 = vadd.f32 %v1718_v45, %v1703_v56  ;;  %v1691_v2 = vpop.f32.mrf.mxu3  ;;  %v1636_v47 = vpop.f32.mrf.mxu0  ;;  %v4959_v56 = vor.u32 %v6053_v35, %v4958_v25  ;;  %v5022_v45 = vld [vmem:[%s9620_s2 + $0x1e0] sm:$0xf]  ;;  %v6045_v35 = vld [vmem:[%s9620_s2 + $0x124] sm:$0xf0] }
 0x15a   :  { %v1672_v18 = vpop.f32.mrf.mxu2  ;;  %v1637_v21 = vadd.f32 %v1636_v47, %v1618_v54  ;;  %v1655_v8 = vpop.f32.mrf.mxu1  ;;  %v5023_v19 = vor.u32 %v6069_v58, %v5022_v45  ;;  %v4814_v54 = vld [vmem:[%s9620_s2 + $0x40] sm:$0xf]  ;;  %v6061_v58 = vld [vmem:[%s9620_s2 + $0x1a4] sm:$0xf0] }
 0x15b   :  { %v1673_v57 = vadd.f32 %v1672_v18, %v1654_v33  ;;  %1720 = vadd.xlane.f32.xlu0 %v1719_v52  ;;  %3493 = vmatpush.bf16.msra.mxu2 %v4959_v56  ;;  %v4823_v33 = vor.u32 %v6019_v32, %v4822_v26  ;;  %v6035_v52 = vld [vmem:[%s9620_s2 + $0xd4] sm:$0xf0]  ;;  %v4951_v18 = vor.u32 %v6051_v42, %v4950_v1  ;;  %v4926_v25 = vld [vmem:[%s9620_s2 + $0x120] sm:$0xf]  ;;  %v4790_v26 = vld [vmem:[%s9620_s2 + $0x10] sm:$0xf] }
 0x15c   :  { %v1656_v30 = vadd.f32 %v1655_v8, %v1637_v21  ;;  %3507 = vmatpush.bf16.msra.mxu3 %v5023_v19  ;;  %v4887_v28 = vor.u32 %v6035_v52, %v4886_v15  ;;  %v4942_v21 = vld [vmem:[%s9620_s2 + $0x140] sm:$0xf]  ;;  %v4927_v56 = vor.u32 %v6045_v35, %v4926_v25  ;;  %v6011_v32 = vld [vmem:[%s9620_s2 + $0x14] sm:$0xf0]  ;;  %v4854_v15 = vld [vmem:[%s9620_s2 + $0x90] sm:$0xf] }
 0x15d   :  { %v7772_v48 = vadd.f32 %v1691_v2, %v1673_v57  ;;  %3466 = vmatpush.bf16.msra.mxu0 %v4823_v33  ;;  %v6017_v57 = vld [vmem:[%s9620_s2 + $0x44] sm:$0xf0]  ;;  %v4878_v2 = vld [vmem:[%s9620_s2 + $0xc0] sm:$0xf]  ;;  %v4943_v63 = vor.u32 %v6049_v60, %v4942_v21  ;;  %v4791_v33 = vor.u32 %v6011_v32, %v4790_v26  ;;  %v6027_v52 = vld [vmem:[%s9620_s2 + $0x94] sm:$0xf0] }
 0x15e   :  { %3480 = vmatpush.bf16.msra.mxu1 %v4887_v28  ;;  %v4815_v47 = vor.u32 %v6017_v57, %v4814_v54  ;;  %v4879_v61 = vor.u32 %v6033_v40, %v4878_v2  ;;  %v4990_v45 = vld [vmem:[%s9620_s2 + $0x1a0] sm:$0xf]  ;;  %v4918_v1 = vld [vmem:[%s9620_s2 + $0x110] sm:$0xf]  ;;  %v6043_v42 = vld [vmem:[%s9620_s2 + $0x114] sm:$0xf0]  ;;  %v4855_v28 = vor.u32 %v6027_v52, %v4854_v15 }
 0x15f   :  { %v1707_v37 = vmul.f32 %v7772_v48, %v7772_v48  ;;  %3494 = vmatpush.bf16.msra.mxu2 %v4951_v18  ;;  %v4991_v19 = vor.u32 %v6061_v58, %v4990_v45  ;;  %v4919_v18 = vor.u32 %v6043_v42, %v4918_v1  ;;  %v4782_v54 = vld [vmem:[%s9620_s2] sm:$0xf]  ;;  %v6009_v57 = vld [vmem:[%s9620_s2 + $0x4] sm:$0xf0]  ;;  %v5078_v15 = vld [vmem:[%s9620_s2 + $0x250] sm:$0xf] }
 0x160   :  { %3508 = vmatpush.bf16.msra.mxu3 %v5015_v20  ;;  %v4983_v20 = vor.u32 %v6059_v34, %v4982_v29  ;;  %v4846_v2 = vld [vmem:[%s9620_s2 + $0x80] sm:$0xf]  ;;  %v6025_v40 = vld [vmem:[%s9620_s2 + $0x84] sm:$0xf0]  ;;  %v5142_v52 = vld [vmem:[%s9620_s2 + $0x2d0] sm:$0xf] }
 0x161   :  { %v1724_v9 = vadd.f32 %v1723_v6, %v1707_v37  ;;  %v1693_v11 = vpop.f32.mrf.mxu3  ;;  %v5006_v37 = vld [vmem:[%s9620_s2 + $0x1c0] sm:$0xf]  ;;  %v6065_v6 = vld [vmem:[%s9620_s2 + $0x1c4] sm:$0xf0]  ;;  %3467 = vmatpush.bf16.msra.mxu0 %v4815_v47  ;;  %v4783_v47 = vor.u32 %v6009_v57, %v4782_v54  ;;  %v6099_v42 = vld [vmem:[%s9620_s2 + $0x2d4] sm:$0xf0] }
 0x162   :  { %v1674_v4 = vpop.f32.mrf.mxu2  ;;  %v5007_v8 = vor.u32 %v6065_v6, %v5006_v37  ;;  %3481 = vmatpush.bf16.msra.mxu1 %v4879_v61  ;;  %v4910_v21 = vld [vmem:[%s9620_s2 + $0x100] sm:$0xf]  ;;  %v6041_v60 = vld [vmem:[%s9620_s2 + $0x104] sm:$0xf0]  ;;  %v4847_v61 = vor.u32 %v6025_v40, %v4846_v2  ;;  %v5143_v29 = vor.u32 %v6099_v42, %v5142_v52  ;;  %v6131_v54 = vld [vmem:[%s9620_s2 + $0x3d4] sm:$0xf0] }
 0x163   :  { %v1675_v46 = vadd.f32 %v1674_v4, %v1656_v30  ;;  %1725 = vadd.xlane.f32.xlu1 %v1724_v9  ;;  %3495 = vmatpush.bf16.msra.mxu2 %v4943_v63  ;;  %v6015_v30 = vld [vmem:[%s9620_s2 + $0x34] sm:$0xf0]  ;;  %v4870_v9 = vld [vmem:[%s9620_s2 + $0xb0] sm:$0xf]  ;;  %v4911_v63 = vor.u32 %v6041_v60, %v4910_v21  ;;  %v4974_v37 = vld [vmem:[%s9620_s2 + $0x180] sm:$0xf] }
 0x164   :  { %3509 = vmatpush.bf16.msra.mxu3 %v5007_v8  ;;  %v4807_v4 = vor.u32 %v6015_v30, %v4806_v43  ;;  %v6057_v6 = vld [vmem:[%s9620_s2 + $0x184] sm:$0xf0]  ;;  %v5094_v8 = vld [vmem:[%s9620_s2 + $0x270] sm:$0xf]  ;;  %v6087_v30 = vld [vmem:[%s9620_s2 + $0x274] sm:$0xf0] }
 0x165   :  { %v7788_v38 = vadd.f32 %v1693_v11, %v1675_v46  ;;  %v6047_v46 = vld [vmem:[%s9620_s2 + $0x134] sm:$0xf0]  ;;  %v4871_v11 = vor.u32 %v6031_v36, %v4870_v9  ;;  %v4975_v43 = vor.u32 %v6057_v6, %v4974_v37  ;;  %v5158_v9 = vld [vmem:[%s9620_s2 + $0x2f0] sm:$0xf]  ;;  %v5150_v23 = vld [vmem:[%s9620_s2 + $0x2e0] sm:$0xf] }
 0x166   :  { %v4935_v39 = vor.u32 %v6047_v46, %v4934_v7  ;;  %3468 = vmatpush.bf16.msra.mxu0 %v4807_v4  ;;  %v6103_v4 = vld [vmem:[%s9620_s2 + $0x2f4] sm:$0xf0]  ;;  %v5095_v7 = vor.u32 %v6087_v30, %v5094_v8  ;;  %v6101_v25 = vld [vmem:[%s9620_s2 + $0x2e4] sm:$0xf0]  ;;  %v5278_v58 = vld [vmem:[%s9620_s2 + $0x3e0] sm:$0xf] }
 0x167   :  { %v1711_v12 = vmul.f32 %v7788_v38, %v7788_v38  ;;  %3482 = vmatpush.bf16.msra.mxu1 %v4871_v11  ;;  %v5159_v46 = vor.u32 %v6103_v4, %v5158_v9  ;;  %v5222_v11 = vld [vmem:[%s9620_s2 + $0x370] sm:$0xf]  ;;  %v6117_v45 = vld [vmem:[%s9620_s2 + $0x364] sm:$0xf0]  ;;  %v5070_v40 = vld [vmem:[%s9620_s2 + $0x240] sm:$0xf] }
 0x168   :  { %3496 = vmatpush.bf16.msra.mxu2 %v4935_v39  ;;  %v6119_v39 = vld [vmem:[%s9620_s2 + $0x374] sm:$0xf0]  ;;  %v6133_v26 = vld [vmem:[%s9620_s2 + $0x3e4] sm:$0xf0]  ;;  %v5198_v37 = vld [vmem:[%s9620_s2 + $0x340] sm:$0xf] }
 0x169   :  { %v1729_v27 = vadd.f32 %v1728_v22, %v1711_v12  ;;  %v4998_v12 = vld [vmem:[%s9620_s2 + $0x1b0] sm:$0xf]  ;;  %v6063_v22 = vld [vmem:[%s9620_s2 + $0x1b4] sm:$0xf0]  ;;  %v5279_v32 = vor.u32 %v6133_v26, %v5278_v58  ;;  %v6081_v21 = vld [vmem:[%s9620_s2 + $0x244] sm:$0xf0] }
 0x16a   :  { %3469 = vmatpush.bf16.msra.mxu0 %v4799_v0  ;;  %v6085_v0 = vld [vmem:[%s9620_s2 + $0x264] sm:$0xf0]  ;;  %v5071_v60 = vor.u32 %v6081_v21, %v5070_v40  ;;  %v5262_v30 = vld [vmem:[%s9620_s2 + $0x3c0] sm:$0xf]  ;;  %v5174_v40 = vld [vmem:[%s9620_s2 + $0x310] sm:$0xf] }
 0x16b   :  { %1730 = vadd.xlane.f32.xlu1 %v1729_v27  ;;  %v4999_v27 = vor.u32 %v6063_v22, %v4998_v12  ;;  %3483 = vmatpush.bf16.msra.mxu1 %v4863_v59  ;;  %v5286_v12 = vld [vmem:[%s9620_s2 + $0x3f0] sm:$0xf]  ;;  %v5087_v35 = vor.u32 %v6085_v0, %v5086_v10  ;;  %v5151_v59 = vor.u32 %v6101_v25, %v5150_v23  ;;  %v6129_v4 = vld [vmem:[%s9620_s2 + $0x3c4] sm:$0xf0]  ;;  %v6127_v23 = vld [vmem:[%s9620_s2 + $0x3b4] sm:$0xf0] }
 0x16c   :  { %3497 = vmatpush.bf16.msra.mxu2 %v4927_v56  ;;  %v5287_v13 = vor.u32 %v6135_v14, %v5286_v12  ;;  %v5214_v56 = vld [vmem:[%s9620_s2 + $0x360] sm:$0xf]  ;;  %v5190_v14 = vld [vmem:[%s9620_s2 + $0x330] sm:$0xf]  ;;  %v6109_v42 = vld [vmem:[%s9620_s2 + $0x324] sm:$0xf0] }
 0x16d   :  { %3510 = vmatpush.bf16.msra.mxu3 %v4999_v27  ;;  %v5223_v27 = vor.u32 %v6119_v39, %v5222_v11  ;;  %v5126_v11 = vld [vmem:[%s9620_s2 + $0x2b0] sm:$0xf]  ;;  %v5054_v58 = vld [vmem:[%s9620_s2 + $0x220] sm:$0xf] }
 0x16e   :  { %3470 = vmatpush.bf16.msra.mxu0 %v4791_v33  ;;  %v6083_v33 = vld [vmem:[%s9620_s2 + $0x254] sm:$0xf0]  ;;  %v5254_v0 = vld [vmem:[%s9620_s2 + $0x3b0] sm:$0xf]  ;;  %v5182_v52 = vld [vmem:[%s9620_s2 + $0x320] sm:$0xf] }
 0x16f   :  { %3484 = vmatpush.bf16.msra.mxu1 %v4855_v28  ;;  %v5079_v1 = vor.u32 %v6083_v33, %v5078_v15  ;;  %v5206_v28 = vld [vmem:[%s9620_s2 + $0x350] sm:$0xf]  ;;  %v5118_v15 = vld [vmem:[%s9620_s2 + $0x2a0] sm:$0xf]  ;;  %v6093_v33 = vld [vmem:[%s9620_s2 + $0x2a4] sm:$0xf0] }
 0x170   :  { %3498 = vmatpush.bf16.msra.mxu2 %v4919_v18  ;;  %v6115_v18 = vld [vmem:[%s9620_s2 + $0x354] sm:$0xf0] }
 0x171   :  { %3511 = vmatpush.bf16.msra.mxu3 %v4991_v19  ;;  %v5215_v19 = vor.u32 %v6117_v45, %v5214_v56  ;;  %v5207_v34 = vor.u32 %v6115_v18, %v5206_v28  ;;  %v5246_v28 = vld [vmem:[%s9620_s2 + $0x3a0] sm:$0xf] }
 0x172   :  { %3471 = vmatpush.bf16.msra.mxu0 %v4783_v47 }
 0x173   :  { %3485 = vmatpush.bf16.msra.mxu1 %v4847_v61  ;;  %v5134_v61 = vld [vmem:[%s9620_s2 + $0x2c0] sm:$0xf] }
 0x174   :  { %3499 = vmatpush.bf16.msra.mxu2 %v4911_v63  ;;  %v6097_v63 = vld [vmem:[%s9620_s2 + $0x2c4] sm:$0xf0] }
 0x175   :  { %3512 = vmatpush.bf16.msra.mxu3 %v4983_v20  ;;  %v5270_v20 = vld [vmem:[%s9620_s2 + $0x3d0] sm:$0xf]  ;;  %v5135_v8 = vor.u32 %v6097_v63, %v5134_v61 }
 0x176   :  { %3520 = vmatpush.bf16.msrb.mxu0 %v5095_v7  ;;  %v5271_v2 = vor.u32 %v6131_v54, %v5270_v20  ;;  %v5062_v7 = vld [vmem:[%s9620_s2 + $0x230] sm:$0xf]  ;;  %v6075_v54 = vld [vmem:[%s9620_s2 + $0x214] sm:$0xf0] }
 0x177   :  { %3534 = vmatpush.bf16.msrb.mxu1 %v5159_v46  ;;  %v6079_v46 = vld [vmem:[%s9620_s2 + $0x234] sm:$0xf0]  ;;  %v5046_v20 = vld [vmem:[%s9620_s2 + $0x210] sm:$0xf] }
 0x178   :  { %3548 = vmatpush.bf16.msrb.mxu2 %v5223_v27  ;;  %v5063_v12 = vor.u32 %v6079_v46, %v5062_v7  ;;  %v6095_v27 = vld [vmem:[%s9620_s2 + $0x2b4] sm:$0xf0]  ;;  %v5047_v61 = vor.u32 %v6075_v54, %v5046_v20 }
 0x179   :  { %3513 = vmatpush.bf16.msra.mxu3 %v4975_v43  ;;  %v6113_v43 = vld [vmem:[%s9620_s2 + $0x344] sm:$0xf0]  ;;  %v5127_v10 = vor.u32 %v6095_v27, %v5126_v11  ;;  %v5102_v11 = vld [vmem:[%s9620_s2 + $0x280] sm:$0xf] }
 0x17a   :  { %3521 = vmatpush.bf16.msrb.mxu0 %v5087_v35  ;;  %v5199_v9 = vor.u32 %v6113_v43, %v5198_v37  ;;  %v6107_v37 = vld [vmem:[%s9620_s2 + $0x314] sm:$0xf0] }
 0x17b   :  { %3535 = vmatpush.bf16.msrb.mxu1 %v5151_v59  ;;  %v5255_v59 = vor.u32 %v6127_v23, %v5254_v0  ;;  %v5175_v43 = vor.u32 %v6107_v37, %v5174_v40 }
 0x17c   :  { %3549 = vmatpush.bf16.msrb.mxu2 %v5215_v19  ;;  %v6077_v19 = vld [vmem:[%s9620_s2 + $0x224] sm:$0xf0] }
 0x17d   :  { %3562 = vmatpush.bf16.msrb.mxu3 %v5287_v13  ;;  %v6111_v13 = vld [vmem:[%s9620_s2 + $0x334] sm:$0xf0] }
 0x17e   :  { %3522 = vmatpush.bf16.msrb.mxu0 %v5079_v1  ;;  %v5191_v35 = vor.u32 %v6111_v13, %v5190_v14  ;;  %v5119_v1 = vor.u32 %v6093_v33, %v5118_v15  ;;  %v5166_v14 = vld [vmem:[%s9620_s2 + $0x300] sm:$0xf] }
 0x17f   :  { %3536 = vmatpush.bf16.msrb.mxu1 %v5143_v29  ;;  %v5183_v29 = vor.u32 %v6109_v42, %v5182_v52 }
 0x180   :  { %3550 = vmatpush.bf16.msrb.mxu2 %v5207_v34  ;;  %v6125_v34 = vld [vmem:[%s9620_s2 + $0x3a4] sm:$0xf0] }
 0x181   :  { %3563 = vmatpush.bf16.msrb.mxu3 %v5279_v32  ;;  %v5055_v32 = vor.u32 %v6077_v19, %v5054_v58 }
 0x182   :  { %3523 = vmatpush.bf16.msrb.mxu0 %v5071_v60  ;;  %v5247_v60 = vor.u32 %v6125_v34, %v5246_v28 }
 0x183   :  { %3537 = vmatpush.bf16.msrb.mxu1 %v5135_v8  ;;  %v5238_v8 = vld [vmem:[%s9620_s2 + $0x390] sm:$0xf] }
 0x184   :  { %3551 = vmatpush.bf16.msrb.mxu2 %v5199_v9  ;;  %v5038_v9 = vld [vmem:[%s9620_s2 + $0x200] sm:$0xf] }
 0x185   :  { %3564 = vmatpush.bf16.msrb.mxu3 %v5271_v2  ;;  %v6091_v2 = vld [vmem:[%s9620_s2 + $0x294] sm:$0xf0] }
 0x186   :  { %3524 = vmatpush.bf16.msrb.mxu0 %v5063_v12 }
 0x187   :  { %3538 = vmatpush.bf16.msrb.mxu1 %v5127_v10  ;;  %v6105_v10 = vld [vmem:[%s9620_s2 + $0x304] sm:$0xf0] }
 0x188   :  { %3552 = vmatpush.bf16.msrb.mxu2 %v5191_v35  ;;  %v6121_v35 = vld [vmem:[%s9620_s2 + $0x384] sm:$0xf0]  ;;  %v5167_v58 = vor.u32 %v6105_v10, %v5166_v14 }
 0x18a   :  { %3525 = vmatpush.bf16.msrb.mxu0 %v5055_v32 }
 0x18b   :  { %3539 = vmatpush.bf16.msrb.mxu1 %v5119_v1 }
 0x18c   :  { %3553 = vmatpush.bf16.msrb.mxu2 %v5183_v29 }
 0x18e   :  { %3526 = vmatpush.bf16.msrb.mxu0 %v5047_v61 }
 0x190   :  { %3554 = vmatpush.bf16.msrb.mxu2 %v5175_v43 }
 0x194   :  { %3555 = vmatpush.bf16.msrb.mxu2 %v5167_v58 }
 0x1c6   :  { %v1716_v36 = vpop.xlane.xlu0 %1715 }
 0x1c7   :  { %v7981_v22 = vadd.f32 1e-12, %v1716_v36  ;;  %v5263_v36 = vor.u32 %v6129_v4, %v5262_v30  ;;  %v6123_v30 = vld [vmem:[%s9620_s2 + $0x394] sm:$0xf0]  ;;  %v6073_v4 = vld [vmem:[%s9620_s2 + $0x204] sm:$0xf0] }
 0x1c8   :  { %v5239_v46 = vor.u32 %v6123_v30, %v5238_v8  ;;  %v5039_v0 = vor.u32 %v6073_v4, %v5038_v9 }
 0x1c9   :  { %6264 = vrsqrt.f32 %v7981_v22  ;;  %3565 = vmatpush.bf16.msrb.mxu3 %v5263_v36  ;;  %vm1742_vm2 = vweird.f32 %v7981_v22 }
 0x1ca   :  { %3527 = vmatpush.bf16.msrb.mxu0 %v5039_v0 }
 0x1cd   :  { %3566 = vmatpush.bf16.msrb.mxu3 %v5255_v59 }
 0x1ce   :  { %v1721_v57 = vpop.xlane.xlu0 %1720 }
 0x1cf   :  { %v8035_v47 = vadd.f32 1e-12, %v1721_v57  ;;  %v8052_v6 = vpop.eup %6264  ;;  %v5110_v57 = vld [vmem:[%s9620_s2 + $0x290] sm:$0xf] }
 0x1d0   :  { %v1737_v39 = vmul.f32 %v8052_v6, %v7981_v22  ;;  %v5111_v63 = vor.u32 %v6091_v2, %v5110_v57  ;;  %vm1743_vm0 = vweird.f32 %v8052_v6 }
 0x1d1   :  { %6266 = vrsqrt.f32 %v8035_v47  ;;  %3567 = vmatpush.bf16.msrb.mxu3 %v5247_v60  ;;  %vm1744_vm3 = vmor %vm1742_vm2, %vm1743_vm0  ;;  %vm1752_vm7 = vweird.f32 %v8035_v47 }
 0x1d2   :  { %v1738_v26 = vmul.f32 %v8052_v6, %v1737_v39  ;;  %v6089_v39 = vld [vmem:[%s9620_s2 + $0x284] sm:$0xf0]  ;;  %3540 = vmatpush.bf16.msrb.mxu1 %v5111_v63 }
 0x1d3   :  { %v5103_v23 = vor.u32 %v6089_v39, %v5102_v11 }
 0x1d4   :  { %v1739_v21 = vmul.f32 0.5, %v1738_v26 }
 0x1d5   :  { %3568 = vmatpush.bf16.msrb.mxu3 %v5239_v46 }
 0x1d6   :  { %v1726_v25 = vpop.xlane.xlu1 %1725  ;;  %v1740_v59 = vsub.f32 1.5, %v1739_v21  ;;  %3541 = vmatpush.bf16.msrb.mxu1 %v5103_v23 }
 0x1d7   :  { %v8090_v56 = vpop.eup %6266  ;;  %v8092_v45 = vadd.f32 1e-12, %v1726_v25  ;;  %v5230_v25 = vld [vmem:[%s9620_s2 + $0x380] sm:$0xf] }
 0x1d8   :  { %v1747_v18 = vmul.f32 %v8090_v56, %v8035_v47  ;;  %v5231_v32 = vor.u32 %v6121_v35, %v5230_v25  ;;  %v1741_v33 = vmul.f32 %v8052_v6, %v1740_v59  ;;  %vm1753_vm6 = vweird.f32 %v8090_v56  ;;  %v5350_v35 = vld [vmem:[%s9620_s2 + $0x470] sm:$0xf] }
 0x1d9   :  { %6268 = vrsqrt.f32 %v8092_v45  ;;  %vm1762_vm4 = vweird.f32 %v8092_v45  ;;  %vm1754_vm8 = vmor %vm1752_vm7, %vm1753_vm6 }
 0x1da   :  { %v1748_v36 = vmul.f32 %v8090_v56, %v1747_v18  ;;  %3569 = vmatpush.bf16.msrb.mxu3 %v5231_v32  ;;  %v1745_v29 = vsel %vm1744_vm3, %v8052_v6, %v1741_v33  ;;  %v6167_v32 = vld [vmem:[%s9620_s2 + $0x4f4] sm:$0xf0] }
 0x1db   :  { %v8196_v6 = vmul.f32 %v1745_v29, %v7604_v24  ;;  %v8200_v21 = vmul.f32 %v1745_v29, %v7632_v49 }
 0x1dc   :  { %v1749_v19 = vmul.f32 0.5, %v1748_v36 }
 0x1de   :  { %v1731_v7 = vpop.xlane.xlu1 %1730  ;;  %v1750_v52 = vsub.f32 1.5, %v1749_v19  ;;  %v6151_v19 = vld [vmem:[%s9620_s2 + $0x474] sm:$0xf0] }
 0x1df   :  { %v6269_v12 = vpop.eup %6268  ;;  %v8159_v27 = vadd.f32 1e-12, %v1731_v7 }
 0x1e0   :  { %v1757_v13 = vmul.f32 %v6269_v12, %v8092_v45  ;;  %vm1763_vm1 = vweird.f32 %v6269_v12  ;;  %v1751_v34 = vmul.f32 %v8090_v56, %v1750_v52 }
 0x1e1   :  { %6270 = vrsqrt.f32 %v8159_v27  ;;  %vm1764_vm5 = vmor %vm1762_vm4, %vm1763_vm1  ;;  %vm1772_vm10 = vweird.f32 %v8159_v27 }
 0x1e2   :  { %v1758_v26 = vmul.f32 %v6269_v12, %v1757_v13 }
 0x1e4   :  { %v1759_v15 = vmul.f32 0.5, %v1758_v26  ;;  %v5414_v26 = vld [vmem:[%s9620_s2 + $0x4f0] sm:$0xf] }
 0x1e6   :  { %v1760_v1 = vsub.f32 1.5, %v1759_v15 }
 0x1e7   :  { %v6271_v42 = vpop.eup %6270 }
 0x1e8   :  { %v1761_v28 = vmul.f32 %v6269_v12, %v1760_v1  ;;  %v1767_v18 = vmul.f32 %v6271_v42, %v8159_v27  ;;  %vm1773_vm9 = vweird.f32 %v6271_v42 }
 0x1e9   :  { %vm1774_vm11 = vmor %vm1772_vm10, %vm1773_vm9 }
 0x1ea   :  { %v1765_v20 = vsel %vm1764_vm5, %v6269_v12, %v1761_v28  ;;  %v1768_v54 = vmul.f32 %v6271_v42, %v1767_v18 }
 0x1eb   :  { %v8184_v57 = vmul.f32 %v1765_v20, %v9632_v16  ;;  %v8187_v22 = vmul.f32 %v1765_v20, %v7642_v50  ;;  %v8190_v2 = vmul.f32 %v1765_v20, %v7752_v51  ;;  %v8193_v45 = vmul.f32 %v1765_v20, %v7772_v48  ;;  %v6183_v20 = vld [vmem:[%s9620_s2 + $0x574] sm:$0xf0] }
 0x1ec   :  { %v1769_v40 = vmul.f32 0.5, %v1768_v54  ;;  %v8203_v16 = vmul.f32 %v1745_v29, %v7681_v31  ;;  %v8206_v50 = vmul.f32 %v1745_v29, %v7713_v41  ;;  %v1755_v51 = vsel %vm1754_vm8, %v8090_v56, %v1751_v34  ;;  %v5542_v54 = vld [vmem:[%s9620_s2 + $0x5f0] sm:$0xf] }
 0x1ed   :  { %v8211_v48 = vsub.f32 %v8196_v6, %v8184_v57  ;;  %v8215_v24 = vsub.f32 %v8200_v21, %v8187_v22  ;;  %v8227_v41 = vadd.f32 %v8184_v57, %v8196_v6  ;;  %v8231_v47 = vadd.f32 %v8187_v22, %v8200_v21 }
 0x1ee   :  { %v8219_v49 = vsub.f32 %v8203_v16, %v8190_v2  ;;  %v8223_v31 = vsub.f32 %v8206_v50, %v8193_v45  ;;  %v8235_v56 = vadd.f32 %v8190_v2, %v8203_v16  ;;  %v8239_v60 = vadd.f32 %v8193_v45, %v8206_v50 }
 0x1ef   :  { %v1770_v61 = vsub.f32 1.5, %v1769_v40  ;;  %v8242_v63 = vmul.f32 %v1755_v51, %v7722_v62  ;;  %v8246_v8 = vmul.f32 %v1755_v51, %v7702_v17  ;;  %v8249_v43 = vmul.f32 %v1755_v51, %v7725_v44  ;;  %v6199_v40 = vld [vmem:[%s9620_s2 + $0x5f4] sm:$0xf0] }
 0x1f0   :  { %v8252_v30 = vmul.f32 %v1755_v51, %v7748_v3  ;;  %v1808_v9 = vmul.f32 %v8227_v41, %v8211_v48  ;;  %v1809_v62 = vmul.f32 %v8231_v47, %v8215_v24  ;;  %v1810_v36 = vmul.f32 %v8235_v56, %v8219_v49 }
 0x1f1   :  { %v1771_v37 = vmul.f32 %v6271_v42, %v1770_v61  ;;  %v1811_v17 = vmul.f32 %v8239_v60, %v8223_v31  ;;  %v5351_v51 = vor.u32 %v6151_v19, %v5350_v35  ;;  %v5415_v61 = vor.u32 %v6167_v32, %v5414_v26 }
 0x1f2   :  { %v1832_v14 = vpack.c.bf16 %v1809_v62, %v1808_v9  ;;  %v6149_v9 = vld [vmem:[%s9620_s2 + $0x464] sm:$0xf0] }
 0x1f3   :  { %v1775_v4 = vsel %vm1774_vm11, %v6271_v42, %v1771_v37  ;;  %v1833_v10 = vpack.c.bf16 %v1811_v17, %v1810_v36  ;;  %v5478_v42 = vld [vmem:[%s9620_s2 + $0x570] sm:$0xf]  ;;  %v5342_v37 = vld [vmem:[%s9620_s2 + $0x460] sm:$0xf] }
 0x1f4   :  { %v8264_v44 = vmul.f32 %v1775_v4, %v7775_v53  ;;  %v8267_v3 = vmul.f32 %v1775_v4, %v7770_v55  ;;  %v8270_v7 = vmul.f32 %v1775_v4, %v7778_v5  ;;  %v8273_v46 = vmul.f32 %v1775_v4, %v7788_v38  ;;  %v5406_v4 = vld [vmem:[%s9620_s2 + $0x4e0] sm:$0xf] }
 0x1f5   :  { %v1852_v15 = vunpack.c.l.b16 %v1832_v14  ;;  %v1853_v33 = vunpack.c.h.b16 %v1832_v14  ;;  %v1854_v52 = vunpack.c.l.b16 %v1833_v10  ;;  %v1855_v1 = vunpack.c.h.b16 %v1833_v10  ;;  %v6165_v10 = vld [vmem:[%s9620_s2 + $0x4e4] sm:$0xf0] }
 0x1f6   :  { %v1796_v11 = vsub.f32 %v8242_v63, %v8264_v44  ;;  %v1797_v39 = vsub.f32 %v8246_v8, %v8267_v3  ;;  %v1798_v12 = vsub.f32 %v8249_v43, %v8270_v7  ;;  %v1799_v53 = vsub.f32 %v8252_v30, %v8273_v46 }
 0x1f7   :  { %v8285_v55 = vadd.f32 %v8264_v44, %v8242_v63  ;;  %v8289_v5 = vadd.f32 %v8267_v3, %v8246_v8  ;;  %v8293_v38 = vadd.f32 %v8270_v7, %v8249_v43  ;;  %v8297_v27 = vadd.f32 %v8273_v46, %v8252_v30 }
 0x1f8   :  { %v5343_v35 = vor.u32 %v6149_v9, %v5342_v37  ;;  %v1820_v19 = vmul.f32 %v1796_v11, %v1796_v11  ;;  %v1821_v26 = vmul.f32 %v1797_v39, %v1797_v39  ;;  %v5407_v32 = vor.u32 %v6165_v10, %v5406_v4  ;;  %v6161_v37 = vld [vmem:[%s9620_s2 + $0x4c4] sm:$0xf0]  ;;  %v5454_v9 = vld [vmem:[%s9620_s2 + $0x540] sm:$0xf] }
 0x1f9   :  { %v1812_v13 = vmul.f32 %v8285_v55, %v1796_v11  ;;  %v1813_v0 = vmul.f32 %v8289_v5, %v1797_v39  ;;  %v1814_v23 = vmul.f32 %v8293_v38, %v1798_v12  ;;  %v1815_v25 = vmul.f32 %v8297_v27, %v1799_v53  ;;  %v6147_v11 = vld [vmem:[%s9620_s2 + $0x454] sm:$0xf0]  ;;  %v6177_v4 = vld [vmem:[%s9620_s2 + $0x544] sm:$0xf0] }
 0x1fa   :  { %v1817_v39 = vmul.f32 %v8215_v24, %v8215_v24  ;;  %v1818_v24 = vmul.f32 %v8219_v49, %v8219_v49  ;;  %v5326_v49 = vld [vmem:[%s9620_s2 + $0x440] sm:$0xf] }
 0x1fb   :  { %v1834_v59 = vpack.c.bf16 %v1813_v0, %v1812_v13  ;;  %v1835_v58 = vpack.c.bf16 %v1815_v25, %v1814_v23  ;;  %v5470_v13 = vld [vmem:[%s9620_s2 + $0x560] sm:$0xf]  ;;  %v6181_v0 = vld [vmem:[%s9620_s2 + $0x564] sm:$0xf0]  ;;  %v5479_v23 = vor.u32 %v6183_v20, %v5478_v42  ;;  %v5543_v25 = vor.u32 %v6199_v40, %v5542_v54  ;;  %v6195_v20 = vld [vmem:[%s9620_s2 + $0x5d4] sm:$0xf0] }
 0x1fc   :  { %v1823_v42 = vmul.f32 %v1799_v53, %v1799_v53  ;;  %v6179_v53 = vld [vmem:[%s9620_s2 + $0x554] sm:$0xf0]  ;;  %v1838_v54 = vpack.c.bf16 %v1821_v26, %v1820_v19  ;;  %v5318_v19 = vld [vmem:[%s9620_s2 + $0x430] sm:$0xf] }
 0x1fd   :  { %v1856_v28 = vunpack.c.l.b16 %v1834_v59  ;;  %v1857_v18 = vunpack.c.h.b16 %v1834_v59  ;;  %v1858_v29 = vunpack.c.l.b16 %v1835_v58  ;;  %v1859_v34 = vunpack.c.h.b16 %v1835_v58  ;;  %v5534_v59 = vld [vmem:[%s9620_s2 + $0x5e0] sm:$0xf]  ;;  %v6197_v58 = vld [vmem:[%s9620_s2 + $0x5e4] sm:$0xf0]  ;;  %v6143_v26 = vld [vmem:[%s9620_s2 + $0x434] sm:$0xf0] }
 0x1ff   :  { %v8336_v62 = vpack.c.b16 %v1856_v28, %v1852_v15  ;;  %v8338_v36 = vpack.c.b16 %v1857_v18, %v1853_v33  ;;  %v8340_v17 = vpack.c.b16 %v1858_v29, %v1854_v52  ;;  %v8342_v14 = vpack.c.b16 %v1859_v34, %v1855_v1  ;;  %v5334_v52 = vld [vmem:[%s9620_s2 + $0x450] sm:$0xf]  ;;  %v6163_v18 = vld [vmem:[%s9620_s2 + $0x4d4] sm:$0xf0] }
 0x200   :  { %v5471_v15 = vor.u32 %v6181_v0, %v5470_v13  ;;  %v1816_v33 = vmul.f32 %v8211_v48, %v8211_v48  ;;  %v1822_v1 = vmul.f32 %v1798_v12, %v1798_v12  ;;  %v5535_v28 = vor.u32 %v6197_v58, %v5534_v59  ;;  %v5398_v48 = vld [vmem:[%s9620_s2 + $0x4d0] sm:$0xf] }
 0x201   :  { %3472 = vmatmul.bf16.vlgmr.msra.gmra.mxu0 %v8336_v62  ;;  %3486 = vmatmul.bf16.vlgmr.msra.gmra.mxu1 %v8338_v36  ;;  %v5462_v29 = vld [vmem:[%s9620_s2 + $0x550] sm:$0xf]  ;;  %v1819_v12 = vmul.f32 %v8223_v31, %v8223_v31  ;;  %v5335_v40 = vor.u32 %v6147_v11, %v5334_v52  ;;  %v6145_v31 = vld [vmem:[%s9620_s2 + $0x444] sm:$0xf0]  ;;  %v1876_v58 = vunpack.c.l.b16 %v1838_v54  ;;  %v5455_v52 = vor.u32 %v6177_v4, %v5454_v9 }
 0x202   :  { %3500 = vmatmul.bf16.vlgmr.msra.gmra.mxu2 %v8340_v17  ;;  %3514 = vmatmul.bf16.vlgmr.msra.gmra.mxu3 %v8342_v14  ;;  %v5526_v34 = vld [vmem:[%s9620_s2 + $0x5d0] sm:$0xf]  ;;  %v1836_v10 = vpack.c.bf16 %v1817_v39, %v1816_v33  ;;  %v1839_v13 = vpack.c.bf16 %v1823_v42, %v1822_v1  ;;  %v5463_v0 = vor.u32 %v6179_v53, %v5462_v29  ;;  %v1877_v11 = vunpack.c.h.b16 %v1838_v54  ;;  %v6159_v39 = vld [vmem:[%s9620_s2 + $0x4b4] sm:$0xf0] }
 0x203   :  { %3576 = vmatpush.bf16.msra.mxu0 %v5351_v51  ;;  %3590 = vmatpush.bf16.msra.mxu1 %v5415_v61  ;;  %v5390_v51 = vld [vmem:[%s9620_s2 + $0x4c0] sm:$0xf]  ;;  %v5399_v61 = vor.u32 %v6163_v18, %v5398_v48  ;;  %v1837_v59 = vpack.c.bf16 %v1819_v12, %v1818_v24  ;;  %v5446_v1 = vld [vmem:[%s9620_s2 + $0x530] sm:$0xf]  ;;  %v6175_v42 = vld [vmem:[%s9620_s2 + $0x534] sm:$0xf0]  ;;  %v1845_v9 = vpack.c.bf16 %v8239_v60, %v8235_v56 }
 0x204   :  { %3604 = vmatpush.bf16.msra.mxu2 %v5479_v23  ;;  %3618 = vmatpush.bf16.msra.mxu3 %v5543_v25  ;;  %v5527_v23 = vor.u32 %v6195_v20, %v5526_v34  ;;  %v5518_v25 = vld [vmem:[%s9620_s2 + $0x5c0] sm:$0xf]  ;;  %v5391_v33 = vor.u32 %v6161_v37, %v5390_v51  ;;  %v1872_v48 = vunpack.c.l.b16 %v1836_v10  ;;  %v1878_v18 = vunpack.c.l.b16 %v1839_v13  ;;  %v5510_v20 = vld [vmem:[%s9620_s2 + $0x5b0] sm:$0xf]  ;;  %v6191_v54 = vld [vmem:[%s9620_s2 + $0x5b4] sm:$0xf0] }
 0x205   :  { %v1879_v29 = vunpack.c.h.b16 %v1839_v13  ;;  %v1873_v24 = vunpack.c.h.b16 %v1836_v10  ;;  %v1874_v12 = vunpack.c.l.b16 %v1837_v59  ;;  %v1875_v53 = vunpack.c.h.b16 %v1837_v59  ;;  %v5374_v56 = vld [vmem:[%s9620_s2 + $0x4a0] sm:$0xf]  ;;  %v6157_v60 = vld [vmem:[%s9620_s2 + $0x4a4] sm:$0xf0] }
 0x206   :  { %v5319_v34 = vor.u32 %v6143_v26, %v5318_v19  ;;  %v1844_v51 = vpack.c.bf16 %v8231_v47, %v8227_v41  ;;  %v1846_v37 = vpack.c.bf16 %v8289_v5, %v8285_v55  ;;  %v1847_v4 = vpack.c.bf16 %v8297_v27, %v8293_v38  ;;  %v5310_v41 = vld [vmem:[%s9620_s2 + $0x420] sm:$0xf]  ;;  %v6141_v47 = vld [vmem:[%s9620_s2 + $0x424] sm:$0xf0] }
 0x207   :  { %3577 = vmatpush.bf16.msra.mxu0 %v5343_v35  ;;  %3591 = vmatpush.bf16.msra.mxu1 %v5407_v32  ;;  %v6193_v35 = vld [vmem:[%s9620_s2 + $0x5c4] sm:$0xf0]  ;;  %v5382_v32 = vld [vmem:[%s9620_s2 + $0x4b0] sm:$0xf]  ;;  %v8455_v10 = vpack.c.b16 %v1878_v18, %v1874_v12  ;;  %v8457_v13 = vpack.c.b16 %v1879_v29, %v1875_v53  ;;  %v5438_v55 = vld [vmem:[%s9620_s2 + $0x520] sm:$0xf]  ;;  %v1828_v53 = vmul.f32 %v8264_v44, %v8242_v63 }
 0x208   :  { %3605 = vmatpush.bf16.msra.mxu2 %v5471_v15  ;;  %3619 = vmatpush.bf16.msra.mxu3 %v5535_v28  ;;  %v5327_v15 = vor.u32 %v6145_v31, %v5326_v49  ;;  %v5519_v28 = vor.u32 %v6193_v35, %v5518_v25  ;;  %v5383_v49 = vor.u32 %v6159_v39, %v5382_v32  ;;  %v1912_v5 = vunpack.c.l.b16 %v1844_v51  ;;  %v6173_v25 = vld [vmem:[%s9620_s2 + $0x524] sm:$0xf0]  ;;  %v5502_v35 = vld [vmem:[%s9620_s2 + $0x5a0] sm:$0xf]  ;;  %v5302_v39 = vld [vmem:[%s9620_s2 + $0x410] sm:$0xf] }
 0x209   :  { %v5447_v31 = vor.u32 %v6175_v42, %v5446_v1  ;;  %v1916_v38 = vunpack.c.l.b16 %v1846_v37  ;;  %v1913_v27 = vunpack.c.h.b16 %v1844_v51  ;;  %v6189_v59 = vld [vmem:[%s9620_s2 + $0x5a4] sm:$0xf0]  ;;  %v1918_v19 = vunpack.c.l.b16 %v1847_v4  ;;  %v6139_v1 = vld [vmem:[%s9620_s2 + $0x414] sm:$0xf0]  ;;  %v5366_v18 = vld [vmem:[%s9620_s2 + $0x490] sm:$0xf] }
 0x20a   :  { %v1919_v26 = vunpack.c.h.b16 %v1847_v4  ;;  %v6155_v29 = vld [vmem:[%s9620_s2 + $0x494] sm:$0xf0]  ;;  %v1825_v63 = vmul.f32 %v8187_v22, %v8200_v21  ;;  %v1831_v44 = vmul.f32 %v8273_v46, %v8252_v30  ;;  %v1826_v51 = vmul.f32 %v8190_v2, %v8203_v16  ;;  %v6137_v22 = vld [vmem:[%s9620_s2 + $0x404] sm:$0xf0]  ;;  %v5422_v30 = vld [vmem:[%s9620_s2 + $0x500] sm:$0xf] }
 0x20b   :  { %3578 = vmatpush.bf16.msra.mxu0 %v5335_v40  ;;  %3592 = vmatpush.bf16.msra.mxu1 %v5399_v61  ;;  %v8443_v40 = vpack.c.b16 %v1876_v58, %v1872_v48  ;;  %v8447_v61 = vpack.c.b16 %v1877_v11, %v1873_v24  ;;  %v1914_v58 = vunpack.c.l.b16 %v1845_v9  ;;  %v8487_v32 = vpack.c.b16 %v1916_v38, %v1912_v5  ;;  %v5430_v24 = vld [vmem:[%s9620_s2 + $0x510] sm:$0xf]  ;;  %v6153_v21 = vld [vmem:[%s9620_s2 + $0x484] sm:$0xf0]  ;;  %v5486_v46 = vld [vmem:[%s9620_s2 + $0x580] sm:$0xf] }
 0x20c   :  { %3606 = vmatpush.bf16.msra.mxu2 %v5463_v0  ;;  %3620 = vmatpush.bf16.msra.mxu3 %v5527_v23  ;;  %v5511_v0 = vor.u32 %v6191_v54, %v5510_v20  ;;  %v1917_v23 = vunpack.c.h.b16 %v1846_v37  ;;  %v5375_v11 = vor.u32 %v6157_v60, %v5374_v56  ;;  %v5503_v48 = vor.u32 %v6189_v59, %v5502_v35  ;;  %v6171_v20 = vld [vmem:[%s9620_s2 + $0x514] sm:$0xf0]  ;;  %v5494_v54 = vld [vmem:[%s9620_s2 + $0x590] sm:$0xf] }
 0x20d   :  { %v8497_v42 = vpack.c.b16 %v1918_v19, %v1914_v58  ;;  %v5303_v37 = vor.u32 %v6139_v1, %v5302_v39  ;;  %v5431_v2 = vor.u32 %v6171_v20, %v5430_v24  ;;  %v6247_v5 = vld [vmem:[%s9620_s2 + $0x774] sm:$0xf0]  ;;  %v5798_v38 = vld [vmem:[%s9620_s2 + $0x7f0] sm:$0xf]  ;;  %v5598_v58 = vld [vmem:[%s9620_s2 + $0x660] sm:$0xf] }
 0x20e   :  { %v5662_v39 = vld [vmem:[%s9620_s2 + $0x6e0] sm:$0xf]  ;;  %v6229_v1 = vld [vmem:[%s9620_s2 + $0x6e4] sm:$0xf0] }
 0x20f   :  { %3579 = vmatpush.bf16.msra.mxu0 %v5327_v15  ;;  %3593 = vmatpush.bf16.msra.mxu1 %v5391_v33  ;;  %v8489_v15 = vpack.c.b16 %v1917_v23, %v1913_v27  ;;  %v1915_v33 = vunpack.c.h.b16 %v1845_v9  ;;  %v6215_v9 = vld [vmem:[%s9620_s2 + $0x674] sm:$0xf0]  ;;  %v5726_v24 = vld [vmem:[%s9620_s2 + $0x760] sm:$0xf] }
 0x210   :  { %3607 = vmatpush.bf16.msra.mxu2 %v5455_v52  ;;  %3621 = vmatpush.bf16.msra.mxu3 %v5519_v28  ;;  %v5311_v52 = vor.u32 %v6141_v47, %v5310_v41  ;;  %v5439_v28 = vor.u32 %v6173_v25, %v5438_v55  ;;  %v6231_v41 = vld [vmem:[%s9620_s2 + $0x6f4] sm:$0xf0]  ;;  %v5734_v47 = vld [vmem:[%s9620_s2 + $0x770] sm:$0xf] }
 0x211   :  { %3528 = vmatmul.bf16.vlgmr.msrb.gmra.mxu0 %v8443_v40  ;;  %3542 = vmatmul.bf16.vlgmr.msrb.gmra.mxu1 %v8447_v61  ;;  %v8508_v12 = vpack.c.b16 %v1919_v26, %v1915_v33  ;;  %v6263_v27 = vld [vmem:[%s9620_s2 + $0x7f4] sm:$0xf0] }
 0x212   :  { %3556 = vmatmul.bf16.vlgmr.msrb.gmra.mxu2 %v8455_v10  ;;  %3570 = vmatmul.bf16.vlgmr.msrb.gmra.mxu3 %v8457_v13 }
 0x213   :  { %3580 = vmatpush.bf16.msra.mxu0 %v5319_v34  ;;  %3594 = vmatpush.bf16.msra.mxu1 %v5383_v49  ;;  %v1829_v34 = vmul.f32 %v8267_v3, %v8246_v8  ;;  %v6187_v49 = vld [vmem:[%s9620_s2 + $0x594] sm:$0xf0]  ;;  %v1830_v8 = vmul.f32 %v8270_v7, %v8249_v43  ;;  %v5294_v3 = vld [vmem:[%s9620_s2 + $0x400] sm:$0xf]  ;;  %v1827_v43 = vmul.f32 %v8193_v45, %v8206_v50  ;;  %v6169_v7 = vld [vmem:[%s9620_s2 + $0x504] sm:$0xf0] }
 0x214   :  { %3608 = vmatpush.bf16.msra.mxu2 %v5447_v31  ;;  %3622 = vmatpush.bf16.msra.mxu3 %v5511_v0  ;;  %v1824_v31 = vmul.f32 %v8184_v57, %v8196_v6  ;;  %v5367_v57 = vor.u32 %v6155_v29, %v5366_v18  ;;  %v5358_v6 = vld [vmem:[%s9620_s2 + $0x480] sm:$0xf]  ;;  %v5495_v16 = vor.u32 %v6187_v49, %v5494_v54  ;;  %v6185_v45 = vld [vmem:[%s9620_s2 + $0x584] sm:$0xf0]  ;;  %v5606_v50 = vld [vmem:[%s9620_s2 + $0x670] sm:$0xf] }
 0x215   :  { %v1842_v4 = vpack.c.bf16 %v1829_v34, %v1828_v53  ;;  %v5670_v0 = vld [vmem:[%s9620_s2 + $0x6f0] sm:$0xf]  ;;  %v1843_v56 = vpack.c.bf16 %v1831_v44, %v1830_v8  ;;  %v5295_v60 = vor.u32 %v6137_v22, %v5294_v3  ;;  %v5359_v55 = vor.u32 %v6153_v21, %v5358_v6  ;;  %v6245_v53 = vld [vmem:[%s9620_s2 + $0x764] sm:$0xf0]  ;;  %v5790_v54 = vld [vmem:[%s9620_s2 + $0x7e0] sm:$0xf] }
 0x216   :  { %v1840_v23 = vpack.c.bf16 %v1825_v63, %v1824_v31  ;;  %v5423_v25 = vor.u32 %v6169_v7, %v5422_v30  ;;  %v5487_v35 = vor.u32 %v6185_v45, %v5486_v46  ;;  %v1841_v59 = vpack.c.bf16 %v1827_v43, %v1826_v51  ;;  %v6261_v49 = vld [vmem:[%s9620_s2 + $0x7e4] sm:$0xf0]  ;;  %v6211_v22 = vld [vmem:[%s9620_s2 + $0x654] sm:$0xf0]  ;;  %v5718_v30 = vld [vmem:[%s9620_s2 + $0x750] sm:$0xf] }
 0x217   :  { %3581 = vmatpush.bf16.msra.mxu0 %v5311_v52  ;;  %3595 = vmatpush.bf16.msra.mxu1 %v5375_v11  ;;  %v5607_v19 = vor.u32 %v6215_v9, %v5606_v50  ;;  %v5671_v26 = vor.u32 %v6231_v41, %v5670_v0  ;;  %v1896_v33 = vunpack.c.l.b16 %v1842_v4  ;;  %v1897_v52 = vunpack.c.h.b16 %v1842_v4  ;;  %v6213_v11 = vld [vmem:[%s9620_s2 + $0x664] sm:$0xf0]  ;;  %v6243_v7 = vld [vmem:[%s9620_s2 + $0x754] sm:$0xf0]  ;;  %v5782_v46 = vld [vmem:[%s9620_s2 + $0x7d0] sm:$0xf] }
 0x218   :  { %3609 = vmatpush.bf16.msra.mxu2 %v5439_v28  ;;  %3623 = vmatpush.bf16.msra.mxu3 %v5503_v48  ;;  %v5735_v28 = vor.u32 %v6247_v5, %v5734_v47  ;;  %v5799_v48 = vor.u32 %v6263_v27, %v5798_v38  ;;  %v1898_v18 = vunpack.c.l.b16 %v1843_v56  ;;  %v1899_v29 = vunpack.c.h.b16 %v1843_v56  ;;  %v6259_v45 = vld [vmem:[%s9620_s2 + $0x7d4] sm:$0xf0]  ;;  %v5582_v4 = vld [vmem:[%s9620_s2 + $0x640] sm:$0xf]  ;;  %v6209_v0 = vld [vmem:[%s9620_s2 + $0x644] sm:$0xf0] }
 0x219   :  { %v1892_v34 = vunpack.c.l.b16 %v1840_v23  ;;  %v1893_v20 = vunpack.c.h.b16 %v1840_v23  ;;  %v1894_v31 = vunpack.c.l.b16 %v1841_v59  ;;  %v1895_v63 = vunpack.c.h.b16 %v1841_v59  ;;  %v5646_v56 = vld [vmem:[%s9620_s2 + $0x6c0] sm:$0xf]  ;;  %v6241_v5 = vld [vmem:[%s9620_s2 + $0x744] sm:$0xf0]  ;;  %v6207_v59 = vld [vmem:[%s9620_s2 + $0x634] sm:$0xf0] }
 0x21a   :  { %v5599_v8 = vor.u32 %v6213_v11, %v5598_v58  ;;  %v5663_v44 = vor.u32 %v6229_v1, %v5662_v39  ;;  %v5791_v43 = vor.u32 %v6261_v49, %v5790_v54  ;;  %v5719_v41 = vor.u32 %v6243_v7, %v5718_v30  ;;  %v5774_v38 = vld [vmem:[%s9620_s2 + $0x7c0] sm:$0xf]  ;;  %v6257_v27 = vld [vmem:[%s9620_s2 + $0x7c4] sm:$0xf0]  ;;  %v6239_v11 = vld [vmem:[%s9620_s2 + $0x734] sm:$0xf0] }
 0x21b   :  { %3582 = vmatpush.bf16.msra.mxu0 %v5303_v37  ;;  %3596 = vmatpush.bf16.msra.mxu1 %v5367_v57  ;;  %v8607_v3 = vpack.c.b16 %v1896_v33, %v1892_v34  ;;  %v8609_v51 = vpack.c.b16 %v1897_v52, %v1893_v20  ;;  %v5727_v37 = vor.u32 %v6245_v53, %v5726_v24  ;;  %v5590_v57 = vld [vmem:[%s9620_s2 + $0x650] sm:$0xf]  ;;  %v6223_v33 = vld [vmem:[%s9620_s2 + $0x6b4] sm:$0xf0]  ;;  %v5630_v34 = vld [vmem:[%s9620_s2 + $0x6a0] sm:$0xf] }
 0x21c   :  { %3610 = vmatpush.bf16.msra.mxu2 %v5431_v2  ;;  %3624 = vmatpush.bf16.msra.mxu3 %v5495_v16  ;;  %v8617_v6 = vpack.c.b16 %v1898_v18, %v1894_v31  ;;  %v8619_v21 = vpack.c.b16 %v1899_v29, %v1895_v63  ;;  %v5654_v2 = vld [vmem:[%s9620_s2 + $0x6d0] sm:$0xf]  ;;  %v6227_v16 = vld [vmem:[%s9620_s2 + $0x6d4] sm:$0xf0]  ;;  %v5591_v50 = vor.u32 %v6211_v22, %v5590_v57  ;;  %v5566_v18 = vld [vmem:[%s9620_s2 + $0x620] sm:$0xf] }
 0x21d   :  { %v5655_v9 = vor.u32 %v6227_v16, %v5654_v2  ;;  %v5783_v47 = vor.u32 %v6259_v45, %v5782_v46  ;;  %v5583_v23 = vor.u32 %v6209_v0, %v5582_v4  ;;  %v5702_v52 = vld [vmem:[%s9620_s2 + $0x730] sm:$0xf]  ;;  %v6255_v1 = vld [vmem:[%s9620_s2 + $0x7b4] sm:$0xf0]  ;;  %v6205_v29 = vld [vmem:[%s9620_s2 + $0x624] sm:$0xf0] }
 0x21e   :  { %v5766_v39 = vld [vmem:[%s9620_s2 + $0x7b0] sm:$0xf]  ;;  %v5703_v24 = vor.u32 %v6239_v11, %v5702_v52  ;;  %v6221_v20 = vld [vmem:[%s9620_s2 + $0x6a4] sm:$0xf0]  ;;  %v5694_v54 = vld [vmem:[%s9620_s2 + $0x720] sm:$0xf] }
 0x21f   :  { %3583 = vmatpush.bf16.msra.mxu0 %v5295_v60  ;;  %3597 = vmatpush.bf16.msra.mxu1 %v5359_v55  ;;  %v6225_v60 = vld [vmem:[%s9620_s2 + $0x6c4] sm:$0xf0]  ;;  %v5710_v55 = vld [vmem:[%s9620_s2 + $0x740] sm:$0xf]  ;;  %v5767_v53 = vor.u32 %v6255_v1, %v5766_v39  ;;  %v6203_v57 = vld [vmem:[%s9620_s2 + $0x614] sm:$0xf0] }
 0x220   :  { %3611 = vmatpush.bf16.msra.mxu2 %v5423_v25  ;;  %3625 = vmatpush.bf16.msra.mxu3 %v5487_v35  ;;  %v5647_v25 = vor.u32 %v6225_v60, %v5646_v56  ;;  %v5574_v35 = vld [vmem:[%s9620_s2 + $0x630] sm:$0xf]  ;;  %v5711_v58 = vor.u32 %v6241_v5, %v5710_v55  ;;  %v6237_v49 = vld [vmem:[%s9620_s2 + $0x724] sm:$0xf0]  ;;  %v5758_v31 = vld [vmem:[%s9620_s2 + $0x7a0] sm:$0xf] }
 0x221   :  { %v6253_v63 = vld [vmem:[%s9620_s2 + $0x7a4] sm:$0xf0]  ;;  %v5695_v22 = vor.u32 %v6237_v49, %v5694_v54  ;;  %v5622_v2 = vld [vmem:[%s9620_s2 + $0x690] sm:$0xf]  ;;  %v6219_v16 = vld [vmem:[%s9620_s2 + $0x694] sm:$0xf0] }
 0x222   :  { %3584 = vmatmul.bf16.vlgmr.msra.gmra.mxu0 %v8607_v3  ;;  %3598 = vmatmul.bf16.vlgmr.msra.gmra.mxu1 %v8609_v51  ;;  %v5686_v30 = vld [vmem:[%s9620_s2 + $0x710] sm:$0xf]  ;;  %v6235_v7 = vld [vmem:[%s9620_s2 + $0x714] sm:$0xf0]  ;;  %v5623_v4 = vor.u32 %v6219_v16, %v5622_v2  ;;  %v6201_v0 = vld [vmem:[%s9620_s2 + $0x604] sm:$0xf0] }
 0x223   :  { %3632 = vmatpush.bf16.msrb.mxu0 %v5607_v19  ;;  %3646 = vmatpush.bf16.msrb.mxu1 %v5671_v26  ;;  %v5775_v19 = vor.u32 %v6257_v27, %v5774_v38  ;;  %v5638_v26 = vld [vmem:[%s9620_s2 + $0x6b0] sm:$0xf]  ;;  %v6251_v45 = vld [vmem:[%s9620_s2 + $0x794] sm:$0xf0]  ;;  %v5687_v56 = vor.u32 %v6235_v7, %v5686_v30  ;;  %v5678_v55 = vld [vmem:[%s9620_s2 + $0x700] sm:$0xf] }
 0x224   :  { %3660 = vmatpush.bf16.msrb.mxu2 %v5735_v28  ;;  %3674 = vmatpush.bf16.msrb.mxu3 %v5799_v48  ;;  %v5575_v28 = vor.u32 %v6207_v59, %v5574_v35  ;;  %v5639_v48 = vor.u32 %v6223_v33, %v5638_v26  ;;  %v5750_v46 = vld [vmem:[%s9620_s2 + $0x790] sm:$0xf]  ;;  %v6233_v5 = vld [vmem:[%s9620_s2 + $0x704] sm:$0xf0]  ;;  %v5742_v38 = vld [vmem:[%s9620_s2 + $0x780] sm:$0xf] }
 0x225   :  { %3612 = vmatmul.bf16.vlgmr.msra.gmra.mxu2 %v8617_v6  ;;  %3626 = vmatmul.bf16.vlgmr.msra.gmra.mxu3 %v8619_v21  ;;  %v5751_v60 = vor.u32 %v6251_v45, %v5750_v46  ;;  %v6249_v27 = vld [vmem:[%s9620_s2 + $0x784] sm:$0xf0]  ;;  %v6038_v35 = vld [vmem:[%s9620_s2 + $0xf4] sm:$0xf]  ;;  %v4904_v59 = vld [vmem:[%s9620_s2 + $0xf8] sm:$0xf0]  ;;  %v5679_v39 = vor.u32 %v6233_v5, %v5678_v55 }
 0x226   :  { %v4968_v33 = vld [vmem:[%s9620_s2 + $0x178] sm:$0xf0]  ;;  %v6070_v52 = vld [vmem:[%s9620_s2 + $0x1f4] sm:$0xf]  ;;  %v5743_v1 = vor.u32 %v6249_v27, %v5742_v38  ;;  %v6052_v54 = vld [vmem:[%s9620_s2 + $0x164] sm:$0xf] }
 0x227   :  { %3633 = vmatpush.bf16.msrb.mxu0 %v5599_v8  ;;  %3647 = vmatpush.bf16.msrb.mxu1 %v5663_v44  ;;  %v5567_v8 = vor.u32 %v6205_v29, %v5566_v18  ;;  %v5631_v44 = vor.u32 %v6221_v20, %v5630_v34  ;;  %v5032_v11 = vld [vmem:[%s9620_s2 + $0x1f8] sm:$0xf0]  ;;  %v6020_v18 = vld [vmem:[%s9620_s2 + $0x64] sm:$0xf]  ;;  %v4832_v29 = vld [vmem:[%s9620_s2 + $0x68] sm:$0xf0] }
 0x228   :  { %3661 = vmatpush.bf16.msrb.mxu2 %v5727_v37  ;;  %3675 = vmatpush.bf16.msrb.mxu3 %v5791_v43  ;;  %v5558_v37 = vld [vmem:[%s9620_s2 + $0x610] sm:$0xf]  ;;  %v5759_v43 = vor.u32 %v6253_v63, %v5758_v31  ;;  %v6036_v34 = vld [vmem:[%s9620_s2 + $0xe4] sm:$0xf]  ;;  %v4896_v20 = vld [vmem:[%s9620_s2 + $0xe8] sm:$0xf0] }
 0x229   :  { %v4960_v49 = vld [vmem:[%s9620_s2 + $0x168] sm:$0xf0]  ;;  %v6068_v31 = vld [vmem:[%s9620_s2 + $0x1e4] sm:$0xf]  ;;  %v6034_v2 = vld [vmem:[%s9620_s2 + $0xd4] sm:$0xf] }
 0x22a   :  { %v5024_v63 = vld [vmem:[%s9620_s2 + $0x1e8] sm:$0xf0]  ;;  %v4888_v16 = vld [vmem:[%s9620_s2 + $0xd8] sm:$0xf0]  ;;  %v6050_v30 = vld [vmem:[%s9620_s2 + $0x154] sm:$0xf] }
 0x22b   :  { %3634 = vmatpush.bf16.msrb.mxu0 %v5591_v50  ;;  %3648 = vmatpush.bf16.msrb.mxu1 %v5655_v9  ;;  %v5550_v50 = vld [vmem:[%s9620_s2 + $0x600] sm:$0xf]  ;;  %v5559_v9 = vor.u32 %v6203_v57, %v5558_v37  ;;  %v6018_v37 = vld [vmem:[%s9620_s2 + $0x54] sm:$0xf]  ;;  %v4824_v57 = vld [vmem:[%s9620_s2 + $0x58] sm:$0xf0] }
 0x22c   :  { %3662 = vmatpush.bf16.msrb.mxu2 %v5719_v41  ;;  %3676 = vmatpush.bf16.msrb.mxu3 %v5783_v47  ;;  %v5614_v41 = vld [vmem:[%s9620_s2 + $0x680] sm:$0xf]  ;;  %v6217_v47 = vld [vmem:[%s9620_s2 + $0x684] sm:$0xf0]  ;;  %v4952_v7 = vld [vmem:[%s9620_s2 + $0x158] sm:$0xf0] }
 0x22d   :  { %v5615_v26 = vor.u32 %v6217_v47, %v5614_v41  ;;  %v6066_v46 = vld [vmem:[%s9620_s2 + $0x1d4] sm:$0xf]  ;;  %v5016_v45 = vld [vmem:[%s9620_s2 + $0x1d8] sm:$0xf0]  ;;  %v4955_v41 = vor.u32 %v6050_v30, %v4952_v7  ;;  %v6048_v55 = vld [vmem:[%s9620_s2 + $0x144] sm:$0xf] }
 0x22e   :  { %v5019_v47 = vor.u32 %v6066_v46, %v5016_v45  ;;  %v4944_v5 = vld [vmem:[%s9620_s2 + $0x148] sm:$0xf0]  ;;  %v6064_v38 = vld [vmem:[%s9620_s2 + $0x1c4] sm:$0xf]  ;;  %v6042_v30 = vld [vmem:[%s9620_s2 + $0x114] sm:$0xf] }
 0x22f   :  { %3635 = vmatpush.bf16.msrb.mxu0 %v5583_v23  ;;  %3649 = vmatpush.bf16.msrb.mxu1 %v5647_v25  ;;  %v6022_v23 = vld [vmem:[%s9620_s2 + $0x74] sm:$0xf]  ;;  %v4840_v25 = vld [vmem:[%s9620_s2 + $0x78] sm:$0xf0]  ;;  %v5008_v27 = vld [vmem:[%s9620_s2 + $0x1c8] sm:$0xf0] }
 0x230   :  { %3663 = vmatpush.bf16.msrb.mxu2 %v5711_v58  ;;  %3677 = vmatpush.bf16.msrb.mxu3 %v5775_v19  ;;  %v6054_v58 = vld [vmem:[%s9620_s2 + $0x174] sm:$0xf]  ;;  %v5551_v19 = vor.u32 %v6201_v0, %v5550_v50  ;;  %v4827_v50 = vor.u32 %v6018_v37, %v4824_v57  ;;  %v4816_v0 = vld [vmem:[%s9620_s2 + $0x48] sm:$0xf0]  ;;  %v4792_v57 = vld [vmem:[%s9620_s2 + $0x18] sm:$0xf0] }
 0x231   :  { %v6010_v37 = vld [vmem:[%s9620_s2 + $0x14] sm:$0xf]  ;;  %v4920_v7 = vld [vmem:[%s9620_s2 + $0x118] sm:$0xf0] }
 0x232   :  { %v6058_v46 = vld [vmem:[%s9620_s2 + $0x194] sm:$0xf]  ;;  %v4984_v45 = vld [vmem:[%s9620_s2 + $0x198] sm:$0xf0] }
 0x233   :  { %3636 = vmatpush.bf16.msrb.mxu0 %v5575_v28  ;;  %3650 = vmatpush.bf16.msrb.mxu1 %v5639_v48  ;;  %v4843_v28 = vor.u32 %v6022_v23, %v4840_v25  ;;  %v4907_v48 = vor.u32 %v6038_v35, %v4904_v59  ;;  %v6014_v35 = vld [vmem:[%s9620_s2 + $0x34] sm:$0xf]  ;;  %v4808_v59 = vld [vmem:[%s9620_s2 + $0x38] sm:$0xf0] }
 0x234   :  { %3664 = vmatpush.bf16.msrb.mxu2 %v5703_v24  ;;  %3678 = vmatpush.bf16.msrb.mxu3 %v5767_v53  ;;  %v4971_v24 = vor.u32 %v6054_v58, %v4968_v33  ;;  %v5035_v53 = vor.u32 %v6070_v52, %v5032_v11  ;;  %v4947_v58 = vor.u32 %v6048_v55, %v4944_v5  ;;  %v4872_v33 = vld [vmem:[%s9620_s2 + $0xb8] sm:$0xf0]  ;;  %v6046_v52 = vld [vmem:[%s9620_s2 + $0x134] sm:$0xf]  ;;  %v6040_v55 = vld [vmem:[%s9620_s2 + $0x104] sm:$0xf] }
 0x235   :  { %v4936_v11 = vld [vmem:[%s9620_s2 + $0x138] sm:$0xf0]  ;;  %v4912_v5 = vld [vmem:[%s9620_s2 + $0x108] sm:$0xf0] }
 0x237   :  { %3637 = vmatpush.bf16.msrb.mxu0 %v5567_v8  ;;  %3651 = vmatpush.bf16.msrb.mxu1 %v5631_v44  ;;  %v4835_v8 = vor.u32 %v6020_v18, %v4832_v29  ;;  %v4899_v44 = vor.u32 %v6036_v34, %v4896_v20  ;;  %v6012_v18 = vld [vmem:[%s9620_s2 + $0x24] sm:$0xf]  ;;  %v4800_v29 = vld [vmem:[%s9620_s2 + $0x28] sm:$0xf0] }
 0x238   :  { %3665 = vmatpush.bf16.msrb.mxu2 %v5695_v22  ;;  %3679 = vmatpush.bf16.msrb.mxu3 %v5759_v43  ;;  %v4963_v22 = vor.u32 %v6052_v54, %v4960_v49  ;;  %v5027_v43 = vor.u32 %v6068_v31, %v5024_v63  ;;  %v6028_v34 = vld [vmem:[%s9620_s2 + $0xa4] sm:$0xf]  ;;  %v4864_v20 = vld [vmem:[%s9620_s2 + $0xa8] sm:$0xf0] }
 0x239   :  { %v6044_v54 = vld [vmem:[%s9620_s2 + $0x124] sm:$0xf]  ;;  %v4928_v49 = vld [vmem:[%s9620_s2 + $0x128] sm:$0xf0] }
 0x23a   :  { %v6060_v31 = vld [vmem:[%s9620_s2 + $0x1a4] sm:$0xf]  ;;  %v4992_v63 = vld [vmem:[%s9620_s2 + $0x1a8] sm:$0xf0] }
 0x23b   :  { %3638 = vmatpush.bf16.msrb.mxu0 %v5559_v9  ;;  %3652 = vmatpush.bf16.msrb.mxu1 %v5623_v4  ;;  %v4891_v9 = vor.u32 %v6034_v2, %v4888_v16  ;;  %v6016_v4 = vld [vmem:[%s9620_s2 + $0x44] sm:$0xf]  ;;  %v6026_v2 = vld [vmem:[%s9620_s2 + $0x94] sm:$0xf]  ;;  %v4856_v16 = vld [vmem:[%s9620_s2 + $0x98] sm:$0xf0] }
 0x23c   :  { %3666 = vmatpush.bf16.msrb.mxu2 %v5687_v56  ;;  %3680 = vmatpush.bf16.msrb.mxu3 %v5751_v60  ;;  %v6032_v56 = vld [vmem:[%s9620_s2 + $0xc4] sm:$0xf]  ;;  %v4880_v60 = vld [vmem:[%s9620_s2 + $0xc8] sm:$0xf0]  ;;  %v4819_v23 = vor.u32 %v6016_v4, %v4816_v0  ;;  %v4859_v4 = vor.u32 %v6026_v2, %v4856_v16  ;;  %v6098_v2 = vld [vmem:[%s9620_s2 + $0x2d4] sm:$0xf] }
 0x23d   :  { %v4883_v25 = vor.u32 %v6032_v56, %v4880_v60  ;;  %v4784_v0 = vld [vmem:[%s9620_s2 + $0x8] sm:$0xf0]  ;;  %v4923_v56 = vor.u32 %v6042_v30, %v4920_v7  ;;  %v4987_v60 = vor.u32 %v6058_v46, %v4984_v45  ;;  %v5144_v16 = vld [vmem:[%s9620_s2 + $0x2d8] sm:$0xf0]  ;;  %v6114_v30 = vld [vmem:[%s9620_s2 + $0x354] sm:$0xf] }
 0x23e   :  { %v5208_v7 = vld [vmem:[%s9620_s2 + $0x358] sm:$0xf0]  ;;  %v6130_v46 = vld [vmem:[%s9620_s2 + $0x3d4] sm:$0xf] }
 0x23f   :  { %3639 = vmatpush.bf16.msrb.mxu0 %v5551_v19  ;;  %3653 = vmatpush.bf16.msrb.mxu1 %v5615_v26  ;;  %v5011_v19 = vor.u32 %v6064_v38, %v5008_v27  ;;  %v6030_v26 = vld [vmem:[%s9620_s2 + $0xb4] sm:$0xf]  ;;  %v6056_v38 = vld [vmem:[%s9620_s2 + $0x184] sm:$0xf]  ;;  %v4976_v27 = vld [vmem:[%s9620_s2 + $0x188] sm:$0xf0] }
 0x240   :  { %3667 = vmatpush.bf16.msrb.mxu2 %v5679_v39  ;;  %3681 = vmatpush.bf16.msrb.mxu3 %v5743_v1  ;;  %v6062_v39 = vld [vmem:[%s9620_s2 + $0x1b4] sm:$0xf]  ;;  %v5000_v1 = vld [vmem:[%s9620_s2 + $0x1b8] sm:$0xf0] }
 0x241   :  { %v5272_v45 = vld [vmem:[%s9620_s2 + $0x3d8] sm:$0xf0] }
 0x242   :  { %3640 = vmatmul.bf16.vlgmr.msrb.gmra.mxu0 %v8487_v32  ;;  %3654 = vmatmul.bf16.vlgmr.msrb.gmra.mxu1 %v8489_v15 }
 0x243   :  { %3688 = vmatpush.bf16.msra.mxu0 %v4843_v28  ;;  %3702 = vmatpush.bf16.msra.mxu1 %v4907_v48  ;;  %v4811_v28 = vor.u32 %v6014_v35, %v4808_v59  ;;  %v4875_v48 = vor.u32 %v6030_v26, %v4872_v33  ;;  %v6102_v35 = vld [vmem:[%s9620_s2 + $0x2f4] sm:$0xf]  ;;  %v5160_v59 = vld [vmem:[%s9620_s2 + $0x2f8] sm:$0xf0] }
 0x244   :  { %3716 = vmatpush.bf16.msra.mxu2 %v4971_v24  ;;  %3730 = vmatpush.bf16.msra.mxu3 %v5035_v53  ;;  %v4939_v24 = vor.u32 %v6046_v52, %v4936_v11  ;;  %v5003_v53 = vor.u32 %v6062_v39, %v5000_v1  ;;  %v5224_v33 = vld [vmem:[%s9620_s2 + $0x378] sm:$0xf0]  ;;  %v6134_v52 = vld [vmem:[%s9620_s2 + $0x3f4] sm:$0xf]  ;;  %v4915_v39 = vor.u32 %v6040_v55, %v4912_v5 }
 0x245   :  { %3668 = vmatmul.bf16.vlgmr.msrb.gmra.mxu2 %v8497_v42  ;;  %3682 = vmatmul.bf16.vlgmr.msrb.gmra.mxu3 %v8508_v12  ;;  %v5288_v11 = vld [vmem:[%s9620_s2 + $0x3f8] sm:$0xf0]  ;;  %v4979_v1 = vor.u32 %v6056_v38, %v4976_v27  ;;  %v6078_v38 = vld [vmem:[%s9620_s2 + $0x234] sm:$0xf] }
 0x246   :  { %v5064_v27 = vld [vmem:[%s9620_s2 + $0x238] sm:$0xf0] }
 0x247   :  { %3689 = vmatpush.bf16.msra.mxu0 %v4835_v8  ;;  %3703 = vmatpush.bf16.msra.mxu1 %v4899_v44  ;;  %v4803_v8 = vor.u32 %v6012_v18, %v4800_v29  ;;  %v4867_v44 = vor.u32 %v6028_v34, %v4864_v20  ;;  %v6084_v18 = vld [vmem:[%s9620_s2 + $0x264] sm:$0xf]  ;;  %v5088_v29 = vld [vmem:[%s9620_s2 + $0x268] sm:$0xf0] }
 0x248   :  { %3717 = vmatpush.bf16.msra.mxu2 %v4963_v22  ;;  %3731 = vmatpush.bf16.msra.mxu3 %v5027_v43  ;;  %v4931_v22 = vor.u32 %v6044_v54, %v4928_v49  ;;  %v4995_v43 = vor.u32 %v6060_v31, %v4992_v63  ;;  %v6100_v34 = vld [vmem:[%s9620_s2 + $0x2e4] sm:$0xf]  ;;  %v5152_v20 = vld [vmem:[%s9620_s2 + $0x2e8] sm:$0xf0] }
 0x249   :  { %v6116_v54 = vld [vmem:[%s9620_s2 + $0x364] sm:$0xf]  ;;  %v5216_v49 = vld [vmem:[%s9620_s2 + $0x368] sm:$0xf0] }
 0x24a   :  { %v6132_v31 = vld [vmem:[%s9620_s2 + $0x3e4] sm:$0xf]  ;;  %v5280_v63 = vld [vmem:[%s9620_s2 + $0x3e8] sm:$0xf0] }
 0x24b   :  { %3690 = vmatpush.bf16.msra.mxu0 %v4827_v50  ;;  %3704 = vmatpush.bf16.msra.mxu1 %v4891_v9  ;;  %v6008_v50 = vld [vmem:[%s9620_s2 + $0x4] sm:$0xf]  ;;  %v4795_v9 = vor.u32 %v6010_v37, %v4792_v57  ;;  %v6082_v37 = vld [vmem:[%s9620_s2 + $0x254] sm:$0xf]  ;;  %v5080_v57 = vld [vmem:[%s9620_s2 + $0x258] sm:$0xf0] }
 0x24c   :  { %3718 = vmatpush.bf16.msra.mxu2 %v4955_v41  ;;  %3732 = vmatpush.bf16.msra.mxu3 %v5019_v47  ;;  %v6024_v41 = vld [vmem:[%s9620_s2 + $0x84] sm:$0xf]  ;;  %v4848_v47 = vld [vmem:[%s9620_s2 + $0x88] sm:$0xf0] }
 0x24d   :  { %v4851_v26 = vor.u32 %v6024_v41, %v4848_v47  ;;  %v6112_v41 = vld [vmem:[%s9620_s2 + $0x344] sm:$0xf]  ;;  %v5200_v47 = vld [vmem:[%s9620_s2 + $0x348] sm:$0xf0] }
 0x24f   :  { %3691 = vmatpush.bf16.msra.mxu0 %v4819_v23  ;;  %3705 = vmatpush.bf16.msra.mxu1 %v4883_v25  ;;  %v6086_v23 = vld [vmem:[%s9620_s2 + $0x274] sm:$0xf]  ;;  %v5096_v25 = vld [vmem:[%s9620_s2 + $0x278] sm:$0xf0] }
 0x250   :  { %3719 = vmatpush.bf16.msra.mxu2 %v4947_v58  ;;  %3733 = vmatpush.bf16.msra.mxu3 %v5011_v19  ;;  %v6118_v58 = vld [vmem:[%s9620_s2 + $0x374] sm:$0xf]  ;;  %v4787_v19 = vor.u32 %v6008_v50, %v4784_v0  ;;  %v6080_v50 = vld [vmem:[%s9620_s2 + $0x244] sm:$0xf]  ;;  %v5275_v0 = vor.u32 %v6130_v46, %v5272_v45  ;;  %v5040_v45 = vld [vmem:[%s9620_s2 + $0x208] sm:$0xf0] }
 0x253   :  { %3692 = vmatpush.bf16.msra.mxu0 %v4811_v28  ;;  %3706 = vmatpush.bf16.msra.mxu1 %v4875_v48  ;;  %v5099_v28 = vor.u32 %v6086_v23, %v5096_v25  ;;  %v5163_v48 = vor.u32 %v6102_v35, %v5160_v59  ;;  %v5203_v23 = vor.u32 %v6112_v41, %v5200_v47  ;;  %v6094_v35 = vld [vmem:[%s9620_s2 + $0x2b4] sm:$0xf]  ;;  %v5128_v59 = vld [vmem:[%s9620_s2 + $0x2b8] sm:$0xf0] }
 0x254   :  { %3720 = vmatpush.bf16.msra.mxu2 %v4939_v24  ;;  %3734 = vmatpush.bf16.msra.mxu3 %v5003_v53  ;;  %v5227_v24 = vor.u32 %v6118_v58, %v5224_v33  ;;  %v5291_v53 = vor.u32 %v6134_v52, %v5288_v11  ;;  %v6110_v58 = vld [vmem:[%s9620_s2 + $0x334] sm:$0xf]  ;;  %v5256_v33 = vld [vmem:[%s9620_s2 + $0x3b8] sm:$0xf0]  ;;  %v5067_v52 = vor.u32 %v6078_v38, %v5064_v27 }
 0x255   :  { %v5131_v11 = vor.u32 %v6094_v35, %v5128_v59  ;;  %v6150_v41 = vld [vmem:[%s9620_s2 + $0x474] sm:$0xf]  ;;  %v5352_v47 = vld [vmem:[%s9620_s2 + $0x478] sm:$0xf0] }
 0x256   :  { %v5480_v27 = vld [vmem:[%s9620_s2 + $0x578] sm:$0xf0] }
 0x257   :  { %3693 = vmatpush.bf16.msra.mxu0 %v4803_v8  ;;  %3707 = vmatpush.bf16.msra.mxu1 %v4867_v44  ;;  %v5091_v8 = vor.u32 %v6084_v18, %v5088_v29  ;;  %v5155_v44 = vor.u32 %v6100_v34, %v5152_v20  ;;  %v6092_v18 = vld [vmem:[%s9620_s2 + $0x2a4] sm:$0xf]  ;;  %v5120_v29 = vld [vmem:[%s9620_s2 + $0x2a8] sm:$0xf0] }
 0x258   :  { %3721 = vmatpush.bf16.msra.mxu2 %v4931_v22  ;;  %3735 = vmatpush.bf16.msra.mxu3 %v4995_v43  ;;  %v5219_v22 = vor.u32 %v6116_v54, %v5216_v49  ;;  %v5283_v43 = vor.u32 %v6132_v31, %v5280_v63  ;;  %v6124_v34 = vld [vmem:[%s9620_s2 + $0x3a4] sm:$0xf]  ;;  %v5248_v20 = vld [vmem:[%s9620_s2 + $0x3a8] sm:$0xf0]  ;;  %v5123_v49 = vor.u32 %v6092_v18, %v5120_v29  ;;  %v6074_v31 = vld [vmem:[%s9620_s2 + $0x214] sm:$0xf] }
 0x259   :  { %v5048_v63 = vld [vmem:[%s9620_s2 + $0x218] sm:$0xf0]  ;;  %v6196_v18 = vld [vmem:[%s9620_s2 + $0x5e4] sm:$0xf]  ;;  %v5536_v29 = vld [vmem:[%s9620_s2 + $0x5e8] sm:$0xf0] }
 0x25b   :  { %3694 = vmatpush.bf16.msra.mxu0 %v4795_v9  ;;  %3708 = vmatpush.bf16.msra.mxu1 %v4859_v4  ;;  %v5072_v9 = vld [vmem:[%s9620_s2 + $0x248] sm:$0xf0]  ;;  %v5211_v4 = vor.u32 %v6114_v30, %v5208_v7  ;;  %v6072_v30 = vld [vmem:[%s9620_s2 + $0x204] sm:$0xf]  ;;  %v5051_v7 = vor.u32 %v6074_v31, %v5048_v63  ;;  %v6162_v31 = vld [vmem:[%s9620_s2 + $0x4d4] sm:$0xf] }
 0x25c   :  { %3722 = vmatpush.bf16.msra.mxu2 %v4923_v56  ;;  %3736 = vmatpush.bf16.msra.mxu3 %v4987_v60  ;;  %v6128_v56 = vld [vmem:[%s9620_s2 + $0x3c4] sm:$0xf]  ;;  %v5264_v60 = vld [vmem:[%s9620_s2 + $0x3c8] sm:$0xf0]  ;;  %v5075_v55 = vor.u32 %v6080_v50, %v5072_v9  ;;  %v5400_v63 = vld [vmem:[%s9620_s2 + $0x4d8] sm:$0xf0] }
 0x25d   :  { %v5267_v25 = vor.u32 %v6128_v56, %v5264_v60  ;;  %v6166_v56 = vld [vmem:[%s9620_s2 + $0x4f4] sm:$0xf]  ;;  %v5416_v60 = vld [vmem:[%s9620_s2 + $0x4f8] sm:$0xf0] }
 0x25f   :  { %3695 = vmatpush.bf16.msra.mxu0 %v4787_v19  ;;  %3709 = vmatpush.bf16.msra.mxu1 %v4851_v26  ;;  %v5192_v19 = vld [vmem:[%s9620_s2 + $0x338] sm:$0xf0]  ;;  %v6126_v26 = vld [vmem:[%s9620_s2 + $0x3b4] sm:$0xf] }
 0x260   :  { %3723 = vmatpush.bf16.msra.mxu2 %v4915_v39  ;;  %3737 = vmatpush.bf16.msra.mxu3 %v4979_v1  ;;  %v6076_v39 = vld [vmem:[%s9620_s2 + $0x224] sm:$0xf]  ;;  %v5056_v1 = vld [vmem:[%s9620_s2 + $0x228] sm:$0xf0] }
 0x261   :  { %v5059_v54 = vor.u32 %v6076_v39, %v5056_v1  ;;  %v6164_v39 = vld [vmem:[%s9620_s2 + $0x4e4] sm:$0xf]  ;;  %v5408_v1 = vld [vmem:[%s9620_s2 + $0x4e8] sm:$0xf0] }
 0x262   :  { %3696 = vmatmul.bf16.vlgmr.msra.gmra.mxu0 %v8336_v62  ;;  %3710 = vmatmul.bf16.vlgmr.msra.gmra.mxu1 %v8338_v36  ;;  %v5083_v62 = vor.u32 %v6082_v37, %v5080_v57  ;;  %v5147_v36 = vor.u32 %v6098_v2, %v5144_v16  ;;  %v6090_v37 = vld [vmem:[%s9620_s2 + $0x294] sm:$0xf]  ;;  %v5112_v57 = vld [vmem:[%s9620_s2 + $0x298] sm:$0xf0] }
 0x263   :  { %3744 = vmatpush.bf16.msrb.mxu0 %v5099_v28  ;;  %3758 = vmatpush.bf16.msrb.mxu1 %v5163_v48  ;;  %v5195_v28 = vor.u32 %v6110_v58, %v5192_v19  ;;  %v5259_v48 = vor.u32 %v6126_v26, %v5256_v33  ;;  %v6122_v2 = vld [vmem:[%s9620_s2 + $0x394] sm:$0xf]  ;;  %v5240_v16 = vld [vmem:[%s9620_s2 + $0x398] sm:$0xf0]  ;;  %v5115_v46 = vor.u32 %v6090_v37, %v5112_v57  ;;  %v6148_v26 = vld [vmem:[%s9620_s2 + $0x464] sm:$0xf] }
 0x264   :  { %3772 = vmatpush.bf16.msrb.mxu2 %v5227_v24  ;;  %3786 = vmatpush.bf16.msrb.mxu3 %v5291_v53  ;;  %v6108_v24 = vld [vmem:[%s9620_s2 + $0x324] sm:$0xf]  ;;  %v5184_v53 = vld [vmem:[%s9620_s2 + $0x328] sm:$0xf0]  ;;  %v5243_v9 = vor.u32 %v6122_v2, %v5240_v16  ;;  %v5355_v58 = vor.u32 %v6150_v41, %v5352_v47  ;;  %v5419_v19 = vor.u32 %v6166_v56, %v5416_v60  ;;  %v6194_v37 = vld [vmem:[%s9620_s2 + $0x5d4] sm:$0xf] }
 0x265   :  { %3724 = vmatmul.bf16.vlgmr.msra.gmra.mxu2 %v8340_v17  ;;  %3738 = vmatmul.bf16.vlgmr.msra.gmra.mxu3 %v8342_v14  ;;  %v6096_v17 = vld [vmem:[%s9620_s2 + $0x2c4] sm:$0xf]  ;;  %v5136_v14 = vld [vmem:[%s9620_s2 + $0x2c8] sm:$0xf0]  ;;  %v5528_v57 = vld [vmem:[%s9620_s2 + $0x5d8] sm:$0xf0] }
 0x266   :  { %v5139_v5 = vor.u32 %v6096_v17, %v5136_v14  ;;  %v6120_v17 = vld [vmem:[%s9620_s2 + $0x384] sm:$0xf]  ;;  %v5232_v14 = vld [vmem:[%s9620_s2 + $0x388] sm:$0xf0]  ;;  %v5531_v16 = vor.u32 %v6194_v37, %v5528_v57  ;;  %v5384_v41 = vld [vmem:[%s9620_s2 + $0x4b8] sm:$0xf0] }
 0x267   :  { %3745 = vmatpush.bf16.msrb.mxu0 %v5091_v8  ;;  %3759 = vmatpush.bf16.msrb.mxu1 %v5155_v44  ;;  %v5187_v8 = vor.u32 %v6108_v24, %v5184_v53  ;;  %v5251_v44 = vor.u32 %v6124_v34, %v5248_v20  ;;  %v5235_v59 = vor.u32 %v6120_v17, %v5232_v14  ;;  %v5344_v33 = vld [vmem:[%s9620_s2 + $0x468] sm:$0xf0]  ;;  %v6146_v34 = vld [vmem:[%s9620_s2 + $0x454] sm:$0xf]  ;;  %v5336_v20 = vld [vmem:[%s9620_s2 + $0x458] sm:$0xf0] }
 0x268   :  { %3773 = vmatpush.bf16.msrb.mxu2 %v5219_v22  ;;  %3787 = vmatpush.bf16.msrb.mxu3 %v5283_v43  ;;  %v6106_v22 = vld [vmem:[%s9620_s2 + $0x314] sm:$0xf]  ;;  %v5176_v43 = vld [vmem:[%s9620_s2 + $0x318] sm:$0xf0]  ;;  %v5347_v24 = vor.u32 %v6148_v26, %v5344_v33  ;;  %v5411_v53 = vor.u32 %v6164_v39, %v5408_v1  ;;  %v6172_v26 = vld [vmem:[%s9620_s2 + $0x524] sm:$0xf] }
 0x269   :  { %v5179_v50 = vor.u32 %v6106_v22, %v5176_v43  ;;  %v6144_v22 = vld [vmem:[%s9620_s2 + $0x444] sm:$0xf]  ;;  %v5328_v43 = vld [vmem:[%s9620_s2 + $0x448] sm:$0xf0]  ;;  %v6158_v14 = vld [vmem:[%s9620_s2 + $0x4b4] sm:$0xf] }
 0x26a   :  { %v6174_v47 = vld [vmem:[%s9620_s2 + $0x534] sm:$0xf]  ;;  %v5448_v56 = vld [vmem:[%s9620_s2 + $0x538] sm:$0xf0]  ;;  %v5440_v33 = vld [vmem:[%s9620_s2 + $0x528] sm:$0xf0] }
 0x26b   :  { %3746 = vmatpush.bf16.msrb.mxu0 %v5083_v62  ;;  %3760 = vmatpush.bf16.msrb.mxu1 %v5147_v36  ;;  %v6088_v62 = vld [vmem:[%s9620_s2 + $0x284] sm:$0xf]  ;;  %v5104_v36 = vld [vmem:[%s9620_s2 + $0x288] sm:$0xf0]  ;;  %v6190_v60 = vld [vmem:[%s9620_s2 + $0x5b4] sm:$0xf] }
 0x26c   :  { %3774 = vmatpush.bf16.msrb.mxu2 %v5211_v4  ;;  %3788 = vmatpush.bf16.msrb.mxu3 %v5275_v0  ;;  %v6104_v4 = vld [vmem:[%s9620_s2 + $0x304] sm:$0xf]  ;;  %v5168_v0 = vld [vmem:[%s9620_s2 + $0x308] sm:$0xf0]  ;;  %v5107_v38 = vor.u32 %v6088_v62, %v5104_v36  ;;  %v5331_v62 = vor.u32 %v6144_v22, %v5328_v43 }
 0x26d   :  { %v5171_v35 = vor.u32 %v6104_v4, %v5168_v0  ;;  %v5360_v22 = vld [vmem:[%s9620_s2 + $0x488] sm:$0xf0] }
 0x26f   :  { %3747 = vmatpush.bf16.msrb.mxu0 %v5075_v55  ;;  %3761 = vmatpush.bf16.msrb.mxu1 %v5139_v5  ;;  %v6182_v55 = vld [vmem:[%s9620_s2 + $0x574] sm:$0xf]  ;;  %v5043_v5 = vor.u32 %v6072_v30, %v5040_v45  ;;  %v6176_v30 = vld [vmem:[%s9620_s2 + $0x544] sm:$0xf]  ;;  %v5520_v45 = vld [vmem:[%s9620_s2 + $0x5c8] sm:$0xf0] }
 0x270   :  { %3775 = vmatpush.bf16.msrb.mxu2 %v5203_v23  ;;  %3789 = vmatpush.bf16.msrb.mxu3 %v5267_v25  ;;  %v6198_v23 = vld [vmem:[%s9620_s2 + $0x5f4] sm:$0xf]  ;;  %v5544_v25 = vld [vmem:[%s9620_s2 + $0x5f8] sm:$0xf0] }
 0x273   :  { %3748 = vmatpush.bf16.msrb.mxu0 %v5067_v52  ;;  %3762 = vmatpush.bf16.msrb.mxu1 %v5131_v11  ;;  %v5483_v52 = vor.u32 %v6182_v55, %v5480_v27  ;;  %v5547_v11 = vor.u32 %v6198_v23, %v5544_v25  ;;  %v5512_v55 = vld [vmem:[%s9620_s2 + $0x5b8] sm:$0xf0]  ;;  %v5387_v27 = vor.u32 %v6158_v14, %v5384_v41  ;;  %v6140_v23 = vld [vmem:[%s9620_s2 + $0x424] sm:$0xf]  ;;  %v5312_v25 = vld [vmem:[%s9620_s2 + $0x428] sm:$0xf0] }
 0x274   :  { %3776 = vmatpush.bf16.msrb.mxu2 %v5195_v28  ;;  %3790 = vmatpush.bf16.msrb.mxu3 %v5259_v48  ;;  %v6180_v28 = vld [vmem:[%s9620_s2 + $0x564] sm:$0xf]  ;;  %v5472_v48 = vld [vmem:[%s9620_s2 + $0x568] sm:$0xf0]  ;;  %v6262_v14 = vld [vmem:[%s9620_s2 + $0x7f4] sm:$0xf] }
 0x275   :  { %v5800_v41 = vld [vmem:[%s9620_s2 + $0x7f8] sm:$0xf0] }
 0x277   :  { %3749 = vmatpush.bf16.msrb.mxu0 %v5059_v54  ;;  %3763 = vmatpush.bf16.msrb.mxu1 %v5123_v49  ;;  %v5475_v54 = vor.u32 %v6180_v28, %v5472_v48  ;;  %v5539_v49 = vor.u32 %v6196_v18, %v5536_v29  ;;  %v5315_v28 = vor.u32 %v6140_v23, %v5312_v25  ;;  %v6138_v18 = vld [vmem:[%s9620_s2 + $0x414] sm:$0xf]  ;;  %v5304_v29 = vld [vmem:[%s9620_s2 + $0x418] sm:$0xf0]  ;;  %v6212_v23 = vld [vmem:[%s9620_s2 + $0x664] sm:$0xf] }
 0x278   :  { %3777 = vmatpush.bf16.msrb.mxu2 %v5187_v8  ;;  %3791 = vmatpush.bf16.msrb.mxu3 %v5251_v44  ;;  %v6178_v8 = vld [vmem:[%s9620_s2 + $0x554] sm:$0xf]  ;;  %v5464_v44 = vld [vmem:[%s9620_s2 + $0x558] sm:$0xf0]  ;;  %v5307_v37 = vor.u32 %v6138_v18, %v5304_v29  ;;  %v5600_v25 = vld [vmem:[%s9620_s2 + $0x668] sm:$0xf0] }
 0x279   :  { %v5467_v2 = vor.u32 %v6178_v8, %v5464_v44  ;;  %v6136_v44 = vld [vmem:[%s9620_s2 + $0x404] sm:$0xf]  ;;  %v6210_v29 = vld [vmem:[%s9620_s2 + $0x654] sm:$0xf] }
 0x27b   :  { %3750 = vmatpush.bf16.msrb.mxu0 %v5051_v7  ;;  %3764 = vmatpush.bf16.msrb.mxu1 %v5115_v46  ;;  %v5456_v7 = vld [vmem:[%s9620_s2 + $0x548] sm:$0xf0]  ;;  %v6192_v46 = vld [vmem:[%s9620_s2 + $0x5c4] sm:$0xf] }
 0x27c   :  { %3778 = vmatpush.bf16.msrb.mxu2 %v5179_v50  ;;  %3792 = vmatpush.bf16.msrb.mxu3 %v5243_v9  ;;  %v6142_v50 = vld [vmem:[%s9620_s2 + $0x434] sm:$0xf]  ;;  %v5320_v9 = vld [vmem:[%s9620_s2 + $0x438] sm:$0xf0]  ;;  %v5459_v0 = vor.u32 %v6176_v30, %v5456_v7  ;;  %v5523_v17 = vor.u32 %v6192_v46, %v5520_v45  ;;  %v5488_v7 = vld [vmem:[%s9620_s2 + $0x588] sm:$0xf0] }
 0x27d   :  { %v6214_v46 = vld [vmem:[%s9620_s2 + $0x674] sm:$0xf]  ;;  %v5608_v45 = vld [vmem:[%s9620_s2 + $0x678] sm:$0xf0] }
 0x27e   :  { %v9261_v4 = vpop.f32.mrf.mxu0 }
 0x27f   :  { %3751 = vmatpush.bf16.msrb.mxu0 %v5043_v5  ;;  %3765 = vmatpush.bf16.msrb.mxu1 %v5107_v38  ;;  %v9281_v5 = vpop.f32.mrf.mxu1  ;;  %v5323_v38 = vor.u32 %v6142_v50, %v5320_v9  ;;  %v6246_v50 = vld [vmem:[%s9620_s2 + $0x774] sm:$0xf] }
 0x280   :  { %3779 = vmatpush.bf16.msrb.mxu2 %v5171_v35  ;;  %3793 = vmatpush.bf16.msrb.mxu3 %v5235_v59  ;;  %v5451_v35 = vor.u32 %v6174_v47, %v5448_v56  ;;  %v5515_v59 = vor.u32 %v6190_v60, %v5512_v55 }
 0x282   :  { %3752 = vmatmul.bf16.vlgmr.msrb.gmra.mxu0 %v8443_v40  ;;  %3766 = vmatmul.bf16.vlgmr.msrb.gmra.mxu1 %v8447_v61  ;;  %v5339_v40 = vor.u32 %v6146_v34, %v5336_v20  ;;  %v5403_v61 = vor.u32 %v6162_v31, %v5400_v63  ;;  %v6154_v34 = vld [vmem:[%s9620_s2 + $0x494] sm:$0xf]  ;;  %v5368_v20 = vld [vmem:[%s9620_s2 + $0x498] sm:$0xf0] }
 0x283   :  { %3800 = vmatpush.bf16.msra.mxu0 %v5355_v58  ;;  %3814 = vmatpush.bf16.msra.mxu1 %v5419_v19  ;;  %v6156_v58 = vld [vmem:[%s9620_s2 + $0x4a4] sm:$0xf]  ;;  %v5376_v19 = vld [vmem:[%s9620_s2 + $0x4a8] sm:$0xf0]  ;;  %v6186_v31 = vld [vmem:[%s9620_s2 + $0x594] sm:$0xf]  ;;  %v5371_v57 = vor.u32 %v6154_v34, %v5368_v20 }
 0x284   :  { %3828 = vmatpush.bf16.msra.mxu2 %v5483_v52  ;;  %3842 = vmatpush.bf16.msra.mxu3 %v5547_v11  ;;  %v6188_v52 = vld [vmem:[%s9620_s2 + $0x5a4] sm:$0xf]  ;;  %v5504_v11 = vld [vmem:[%s9620_s2 + $0x5a8] sm:$0xf0]  ;;  %v5379_v48 = vor.u32 %v6156_v58, %v5376_v19  ;;  %v5496_v63 = vld [vmem:[%s9620_s2 + $0x598] sm:$0xf0] }
 0x285   :  { %3780 = vmatmul.bf16.vlgmr.msrb.gmra.mxu2 %v8455_v10  ;;  %3794 = vmatmul.bf16.vlgmr.msrb.gmra.mxu3 %v8457_v13  ;;  %v6160_v10 = vld [vmem:[%s9620_s2 + $0x4c4] sm:$0xf]  ;;  %v5392_v13 = vld [vmem:[%s9620_s2 + $0x4c8] sm:$0xf0]  ;;  %v9307_v39 = vpop.f32.mrf.mxu2  ;;  %v9309_v1 = vpop.f32.mrf.mxu3  ;;  %v6226_v20 = vld [vmem:[%s9620_s2 + $0x6d4] sm:$0xf] }
 0x286   :  { %v5395_v36 = vor.u32 %v6160_v10, %v5392_v13  ;;  %v9335_v8 = vpop.f32.mrf.mxu0  ;;  %v5424_v10 = vld [vmem:[%s9620_s2 + $0x508] sm:$0xf0]  ;;  %v6184_v13 = vld [vmem:[%s9620_s2 + $0x584] sm:$0xf] }
 0x287   :  { %3801 = vmatpush.bf16.msra.mxu0 %v5347_v24  ;;  %3815 = vmatpush.bf16.msra.mxu1 %v5411_v53  ;;  %v5443_v24 = vor.u32 %v6172_v26, %v5440_v33  ;;  %v5507_v53 = vor.u32 %v6188_v52, %v5504_v11  ;;  %v9358_v30 = vpop.f32.mrf.mxu1  ;;  %v5491_v56 = vor.u32 %v6184_v13, %v5488_v7  ;;  %v6228_v58 = vld [vmem:[%s9620_s2 + $0x6e4] sm:$0xf]  ;;  %v5664_v19 = vld [vmem:[%s9620_s2 + $0x6e8] sm:$0xf0] }
 0x288   :  { %3829 = vmatpush.bf16.msra.mxu2 %v5475_v54  ;;  %3843 = vmatpush.bf16.msra.mxu3 %v5539_v49  ;;  %v6170_v54 = vld [vmem:[%s9620_s2 + $0x514] sm:$0xf]  ;;  %v5432_v49 = vld [vmem:[%s9620_s2 + $0x518] sm:$0xf0]  ;;  %v6244_v26 = vld [vmem:[%s9620_s2 + $0x764] sm:$0xf]  ;;  %v5667_v18 = vor.u32 %v6228_v58, %v5664_v19 }
 0x289   :  { %v5435_v43 = vor.u32 %v6170_v54, %v5432_v49  ;;  %v5728_v33 = vld [vmem:[%s9620_s2 + $0x768] sm:$0xf0]  ;;  %v6260_v52 = vld [vmem:[%s9620_s2 + $0x7e4] sm:$0xf]  ;;  %v5656_v54 = vld [vmem:[%s9620_s2 + $0x6d8] sm:$0xf0] }
 0x28a   :  { %v5792_v11 = vld [vmem:[%s9620_s2 + $0x7e8] sm:$0xf0]  ;;  %v6242_v49 = vld [vmem:[%s9620_s2 + $0x754] sm:$0xf]  ;;  %v6256_v13 = vld [vmem:[%s9620_s2 + $0x7c4] sm:$0xf] }
 0x28b   :  { %3802 = vmatpush.bf16.msra.mxu0 %v5339_v40  ;;  %3816 = vmatpush.bf16.msra.mxu1 %v5403_v61  ;;  %v5296_v40 = vld [vmem:[%s9620_s2 + $0x408] sm:$0xf0]  ;;  %v6152_v61 = vld [vmem:[%s9620_s2 + $0x484] sm:$0xf]  ;;  %v5795_v34 = vor.u32 %v6260_v52, %v5792_v11  ;;  %v3490_v11 = vadd.f32 %v9358_v30, %v9335_v8 }
 0x28c   :  { %3830 = vmatpush.bf16.msra.mxu2 %v5467_v2  ;;  %3844 = vmatpush.bf16.msra.mxu3 %v5531_v16  ;;  %v5499_v2 = vor.u32 %v6186_v31, %v5496_v63  ;;  %v6168_v16 = vld [vmem:[%s9620_s2 + $0x504] sm:$0xf]  ;;  %v5299_v9 = vor.u32 %v6136_v44, %v5296_v40  ;;  %v5720_v63 = vld [vmem:[%s9620_s2 + $0x758] sm:$0xf0]  ;;  %v6258_v44 = vld [vmem:[%s9620_s2 + $0x7d4] sm:$0xf] }
 0x28d   :  { %v5427_v47 = vor.u32 %v6168_v16, %v5424_v10  ;;  %v9387_v60 = vpop.f32.mrf.mxu2  ;;  %v9389_v55 = vpop.f32.mrf.mxu3  ;;  %v5584_v40 = vld [vmem:[%s9620_s2 + $0x648] sm:$0xf0]  ;;  %v6236_v52 = vld [vmem:[%s9620_s2 + $0x724] sm:$0xf] }
 0x28e   :  { %v5712_v10 = vld [vmem:[%s9620_s2 + $0x748] sm:$0xf0] }
 0x28f   :  { %3803 = vmatpush.bf16.msra.mxu0 %v5331_v62  ;;  %3817 = vmatpush.bf16.msra.mxu1 %v5395_v36  ;;  %v6230_v62 = vld [vmem:[%s9620_s2 + $0x6f4] sm:$0xf]  ;;  %v5672_v36 = vld [vmem:[%s9620_s2 + $0x6f8] sm:$0xf0]  ;;  %v9432_v31 = vpop.f32.mrf.mxu1  ;;  %v5776_v7 = vld [vmem:[%s9620_s2 + $0x7c8] sm:$0xf0] }
 0x290   :  { %3831 = vmatpush.bf16.msra.mxu2 %v5459_v0  ;;  %3845 = vmatpush.bf16.msra.mxu3 %v5523_v17  ;;  %v5363_v0 = vor.u32 %v6152_v61, %v5360_v22  ;;  %v5736_v17 = vld [vmem:[%s9620_s2 + $0x778] sm:$0xf0]  ;;  %v5723_v61 = vor.u32 %v6242_v49, %v5720_v63 }
 0x291   :  { %v5624_v63 = vld [vmem:[%s9620_s2 + $0x698] sm:$0xf0] }
 0x293   :  { %3804 = vmatpush.bf16.msra.mxu0 %v5323_v38  ;;  %3818 = vmatpush.bf16.msra.mxu1 %v5387_v27  ;;  %v5611_v38 = vor.u32 %v6214_v46, %v5608_v45  ;;  %v5675_v27 = vor.u32 %v6230_v62, %v5672_v36  ;;  %v3488_v46 = vadd.f32 %v9281_v5, %v9261_v4  ;;  %v6206_v36 = vld [vmem:[%s9620_s2 + $0x634] sm:$0xf] }
 0x294   :  { %3832 = vmatpush.bf16.msra.mxu2 %v5451_v35  ;;  %3846 = vmatpush.bf16.msra.mxu3 %v5515_v59  ;;  %v5739_v35 = vor.u32 %v6246_v50, %v5736_v17  ;;  %v5803_v59 = vor.u32 %v6262_v14, %v5800_v41  ;;  %v5576_v50 = vld [vmem:[%s9620_s2 + $0x638] sm:$0xf0]  ;;  %v5779_v4 = vor.u32 %v6256_v13, %v5776_v7  ;;  %v6222_v5 = vld [vmem:[%s9620_s2 + $0x6b4] sm:$0xf]  ;;  %v5616_v7 = vld [vmem:[%s9620_s2 + $0x688] sm:$0xf0] }
 0x295   :  { %v9464_v16 = vpop.f32.mrf.mxu3  ;;  %v5640_v14 = vld [vmem:[%s9620_s2 + $0x6b8] sm:$0xf0]  ;;  %v6238_v41 = vld [vmem:[%s9620_s2 + $0x734] sm:$0xf] }
 0x297   :  { %3805 = vmatpush.bf16.msra.mxu0 %v5315_v28  ;;  %3819 = vmatpush.bf16.msra.mxu1 %v5379_v48  ;;  %v9415_v28 = vpop.f32.mrf.mxu0  ;;  %v5603_v48 = vor.u32 %v6212_v23, %v5600_v25  ;;  %v5643_v23 = vor.u32 %v6222_v5, %v5640_v14  ;;  %v6204_v25 = vld [vmem:[%s9620_s2 + $0x624] sm:$0xf] }
 0x298   :  { %3833 = vmatpush.bf16.msra.mxu2 %v5443_v24  ;;  %3847 = vmatpush.bf16.msra.mxu3 %v5507_v53  ;;  %v5592_v24 = vld [vmem:[%s9620_s2 + $0x658] sm:$0xf0]  ;;  %v5731_v53 = vor.u32 %v6244_v26, %v5728_v33  ;;  %v6220_v26 = vld [vmem:[%s9620_s2 + $0x6a4] sm:$0xf]  ;;  %v5632_v33 = vld [vmem:[%s9620_s2 + $0x6a8] sm:$0xf0] }
 0x299   :  { %v5635_v30 = vor.u32 %v6220_v26, %v5632_v33 }
 0x29b   :  { %3806 = vmatpush.bf16.msra.mxu0 %v5307_v37  ;;  %3820 = vmatpush.bf16.msra.mxu1 %v5371_v57  ;;  %v5784_v37 = vld [vmem:[%s9620_s2 + $0x7d8] sm:$0xf0]  ;;  %v6208_v57 = vld [vmem:[%s9620_s2 + $0x644] sm:$0xf] }
 0x29c   :  { %3834 = vmatpush.bf16.msra.mxu2 %v5435_v43  ;;  %3848 = vmatpush.bf16.msra.mxu3 %v5499_v2  ;;  %v5787_v22 = vor.u32 %v6258_v44, %v5784_v37  ;;  %v6240_v43 = vld [vmem:[%s9620_s2 + $0x744] sm:$0xf]  ;;  %v9462_v2 = vpop.f32.mrf.mxu2  ;;  %v5587_v45 = vor.u32 %v6208_v57, %v5584_v40  ;;  %v6234_v44 = vld [vmem:[%s9620_s2 + $0x714] sm:$0xf]  ;;  %v5688_v37 = vld [vmem:[%s9620_s2 + $0x718] sm:$0xf0] }
 0x29d   :  { %v5715_v17 = vor.u32 %v6240_v43, %v5712_v10  ;;  %v5552_v43 = vld [vmem:[%s9620_s2 + $0x608] sm:$0xf0] }
 0x29f   :  { %3807 = vmatpush.bf16.msra.mxu0 %v5299_v9  ;;  %3821 = vmatpush.bf16.msra.mxu1 %v5363_v0  ;;  %v3502_v9 = vadd.f32 %v9307_v39, %v3488_v46  ;;  %v9484_v0 = vpop.f32.mrf.mxu0  ;;  %v5704_v39 = vld [vmem:[%s9620_s2 + $0x738] sm:$0xf0]  ;;  %v6232_v46 = vld [vmem:[%s9620_s2 + $0x704] sm:$0xf] }
 0x2a0   :  { %3835 = vmatpush.bf16.msra.mxu2 %v5427_v47  ;;  %3849 = vmatpush.bf16.msra.mxu3 %v5491_v56  ;;  %v6254_v47 = vld [vmem:[%s9620_s2 + $0x7b4] sm:$0xf]  ;;  %v5768_v56 = vld [vmem:[%s9620_s2 + $0x7b8] sm:$0xf0]  ;;  %v5707_v58 = vor.u32 %v6238_v41, %v5704_v39 }
 0x2a1   :  { %v5771_v19 = vor.u32 %v6254_v47, %v5768_v56 }
 0x2a2   :  { %3808 = vmatmul.bf16.vlgmr.msra.gmra.mxu0 %v8607_v3  ;;  %3822 = vmatmul.bf16.vlgmr.msra.gmra.mxu1 %v8609_v51  ;;  %v5595_v3 = vor.u32 %v6210_v29, %v5592_v24  ;;  %v5659_v51 = vor.u32 %v6226_v20, %v5656_v54  ;;  %v3504_v24 = vadd.f32 %v9387_v60, %v3490_v11  ;;  %v6202_v20 = vld [vmem:[%s9620_s2 + $0x614] sm:$0xf]  ;;  %v5560_v54 = vld [vmem:[%s9620_s2 + $0x618] sm:$0xf0] }
 0x2a3   :  { %3856 = vmatpush.bf16.msrb.mxu0 %v5611_v38  ;;  %3870 = vmatpush.bf16.msrb.mxu1 %v5675_v27  ;;  %v9504_v38 = vpop.f32.mrf.mxu1  ;;  %v5579_v27 = vor.u32 %v6206_v36, %v5576_v50  ;;  %v6218_v60 = vld [vmem:[%s9620_s2 + $0x694] sm:$0xf]  ;;  %v5744_v36 = vld [vmem:[%s9620_s2 + $0x788] sm:$0xf0] }
 0x2a4   :  { %3884 = vmatpush.bf16.msrb.mxu2 %v5739_v35  ;;  %3898 = vmatpush.bf16.msrb.mxu3 %v5803_v59  ;;  %v5568_v35 = vld [vmem:[%s9620_s2 + $0x628] sm:$0xf0]  ;;  %v3516_v59 = vadd.f32 %v9309_v1, %v3502_v9 }
 0x2a5   :  { %3836 = vmatmul.bf16.vlgmr.msra.gmra.mxu2 %v8617_v6  ;;  %3850 = vmatmul.bf16.vlgmr.msra.gmra.mxu3 %v8619_v21  ;;  %v6224_v6 = vld [vmem:[%s9620_s2 + $0x6c4] sm:$0xf]  ;;  %v5648_v21 = vld [vmem:[%s9620_s2 + $0x6c8] sm:$0xf0]  ;;  %v5571_v8 = vor.u32 %v6204_v25, %v5568_v35 }
 0x2a6   :  { %v5651_v62 = vor.u32 %v6224_v6, %v5648_v21  ;;  %v5696_v1 = vld [vmem:[%s9620_s2 + $0x728] sm:$0xf0]  ;;  %v3530_v29 = vadd.f32 %v9415_v28, %v3516_v59  ;;  %v5627_v6 = vor.u32 %v6218_v60, %v5624_v63  ;;  %v6200_v21 = vld [vmem:[%s9620_s2 + $0x604] sm:$0xf] }
 0x2a7   :  { %3857 = vmatpush.bf16.msrb.mxu0 %v5603_v48  ;;  %3871 = vmatpush.bf16.msrb.mxu1 %v5667_v18  ;;  %v6252_v48 = vld [vmem:[%s9620_s2 + $0x7a4] sm:$0xf]  ;;  %v5760_v18 = vld [vmem:[%s9620_s2 + $0x7a8] sm:$0xf0]  ;;  %v5699_v28 = vor.u32 %v6236_v52, %v5696_v1  ;;  %v3585_v40 = vpop.f32.mrf.mxu0  ;;  %v5555_v9 = vor.u32 %v6200_v21, %v5552_v43 }
 0x2a8   :  { %3885 = vmatpush.bf16.msrb.mxu2 %v5731_v53  ;;  %3899 = vmatpush.bf16.msrb.mxu3 %v5795_v34  ;;  %v3559_v53 = vpop.f32.mrf.mxu2  ;;  %v9535_v34 = vpop.f32.mrf.mxu3  ;;  %v5763_v49 = vor.u32 %v6252_v48, %v5760_v18  ;;  %v3544_v57 = vadd.f32 %v9432_v31, %v3530_v29  ;;  %v5691_v31 = vor.u32 %v6234_v44, %v5688_v37 }
 0x2aa   :  { %v3558_v10 = vadd.f32 %v9462_v2, %v3544_v57  ;;  %v5680_v2 = vld [vmem:[%s9620_s2 + $0x708] sm:$0xf0] }
 0x2ab   :  { %3858 = vmatpush.bf16.msrb.mxu0 %v5595_v3  ;;  %3872 = vmatpush.bf16.msrb.mxu1 %v5659_v51  ;;  %v6250_v3 = vld [vmem:[%s9620_s2 + $0x794] sm:$0xf]  ;;  %v5752_v51 = vld [vmem:[%s9620_s2 + $0x798] sm:$0xf0]  ;;  %v5683_v5 = vor.u32 %v6232_v46, %v5680_v2 }
 0x2ac   :  { %3886 = vmatpush.bf16.msrb.mxu2 %v5723_v61  ;;  %3900 = vmatpush.bf16.msrb.mxu3 %v5787_v22  ;;  %v3518_v61 = vadd.f32 %v9389_v55, %v3504_v24  ;;  %v5563_v22 = vor.u32 %v6202_v20, %v5560_v54  ;;  %v5755_v13 = vor.u32 %v6250_v3, %v5752_v51  ;;  %v6216_v55 = vld [vmem:[%s9620_s2 + $0x684] sm:$0xf] }
 0x2ae   :  { %v3532_v50 = vadd.f32 %v9484_v0, %v3518_v61 }
 0x2af   :  { %3859 = vmatpush.bf16.msrb.mxu0 %v5587_v45  ;;  %3873 = vmatpush.bf16.msrb.mxu1 %v5651_v62  ;;  %v3599_v45 = vpop.f32.mrf.mxu1  ;;  %v6248_v62 = vld [vmem:[%s9620_s2 + $0x784] sm:$0xf] }
 0x2b0   :  { %3887 = vmatpush.bf16.msrb.mxu2 %v5715_v17  ;;  %3901 = vmatpush.bf16.msrb.mxu3 %v5779_v4  ;;  %v5619_v17 = vor.u32 %v6216_v55, %v5616_v7  ;;  %v3572_v4 = vadd.f32 %v9464_v16, %v3558_v10  ;;  %v5747_v14 = vor.u32 %v6248_v62, %v5744_v36  ;;  %v3613_v41 = vpop.f32.mrf.mxu2  ;;  %v3627_v39 = vpop.f32.mrf.mxu3 }
 0x2b1   :  { %v3546_v47 = vadd.f32 %v9504_v38, %v3532_v50 }
 0x2b2   :  { %v3586_v56 = vadd.f32 %v3585_v40, %v3572_v4 }
 0x2b3   :  { %3860 = vmatpush.bf16.msrb.mxu0 %v5579_v27  ;;  %3874 = vmatpush.bf16.msrb.mxu1 %v5643_v23  ;;  %v3560_v27 = vadd.f32 %v3559_v53, %v3546_v47  ;;  %v3587_v23 = vpop.f32.mrf.mxu0 }
 0x2b4   :  { %3888 = vmatpush.bf16.msrb.mxu2 %v5707_v58  ;;  %3902 = vmatpush.bf16.msrb.mxu3 %v5771_v19  ;;  %v3600_v0 = vadd.f32 %v3599_v45, %v3586_v56 }
 0x2b5   :  { %v3574_v25 = vadd.f32 %v9535_v34, %v3560_v27 }
 0x2b6   :  { %v3614_v38 = vadd.f32 %v3613_v41, %v3600_v0 }
 0x2b7   :  { %3861 = vmatpush.bf16.msrb.mxu0 %v5571_v8  ;;  %3875 = vmatpush.bf16.msrb.mxu1 %v5635_v30  ;;  %v3601_v16 = vpop.f32.mrf.mxu1  ;;  %v3588_v35 = vadd.f32 %v3587_v23, %v3574_v25 }
 0x2b8   :  { %3889 = vmatpush.bf16.msrb.mxu2 %v5699_v28  ;;  %3903 = vmatpush.bf16.msrb.mxu3 %v5763_v49  ;;  %v3615_v59 = vpop.f32.mrf.mxu2  ;;  %v3629_v58 = vpop.f32.mrf.mxu3  ;;  %v3628_v19 = vadd.f32 %v3627_v39, %v3614_v38 }
 0x2b9   :  { %v3602_v33 = vadd.f32 %v3601_v16, %v3588_v35 }
 0x2bb   :  { %3862 = vmatpush.bf16.msrb.mxu0 %v5563_v22  ;;  %3876 = vmatpush.bf16.msrb.mxu1 %v5627_v6  ;;  %v3616_v1 = vadd.f32 %v3615_v59, %v3602_v33 }
 0x2bc   :  { %3890 = vmatpush.bf16.msrb.mxu2 %v5691_v31  ;;  %3904 = vmatpush.bf16.msrb.mxu3 %v5755_v13 }
 0x2bd   :  { %v3630_v18 = vadd.f32 %v3629_v58, %v3616_v1 }
 0x2bf   :  { %3863 = vmatpush.bf16.msrb.mxu0 %v5555_v9  ;;  %3877 = vmatpush.bf16.msrb.mxu1 %v5619_v17  ;;  %v3641_v26 = vpop.f32.mrf.mxu0  ;;  %v3655_v11 = vpop.f32.mrf.mxu1 }
 0x2c0   :  { %3891 = vmatpush.bf16.msrb.mxu2 %v5683_v5  ;;  %3905 = vmatpush.bf16.msrb.mxu3 %v5747_v14  ;;  %v3642_v52 = vadd.f32 %v3641_v26, %v3628_v19 }
 0x2c2   :  { %3864 = vmatmul.bf16.vlgmr.msrb.gmra.mxu0 %v8487_v32  ;;  %3878 = vmatmul.bf16.vlgmr.msrb.gmra.mxu1 %v8489_v15  ;;  %v3656_v32 = vadd.f32 %v3655_v11, %v3642_v52 }
 0x2c3   :  { %3892 = vmatmul.bf16.vlgmr.msrb.gmra.mxu2 %v8497_v42  ;;  %3906 = vmatmul.bf16.vlgmr.msrb.gmra.mxu3 %v8508_v12 }
 0x2c7   :  { %v3643_v42 = vpop.f32.mrf.mxu0  ;;  %v3657_v53 = vpop.f32.mrf.mxu1 }
 0x2c8   :  { %v3669_v48 = vpop.f32.mrf.mxu2  ;;  %v3683_v15 = vpop.f32.mrf.mxu3  ;;  %v3644_v12 = vadd.f32 %v3643_v42, %v3630_v18 }
 0x2c9   :  { %v3670_v29 = vadd.f32 %v3669_v48, %v3656_v32 }
 0x2ca   :  { %v3658_v34 = vadd.f32 %v3657_v53, %v3644_v12 }
 0x2cb   :  { %v3684_v24 = vadd.f32 %v3683_v15, %v3670_v29 }
 0x2cd   :  { %3912 = vst [vmem:[%s9621_s3] sm:$0xff] %v3684_v24  ;;  %v3930_v28 = vmul.f32 %v3684_v24, %v3684_v24 }
 0x2d0   :  { %v3671_v8 = vpop.f32.mrf.mxu2  ;;  %v3685_v20 = vpop.f32.mrf.mxu3 }
 0x2d1   :  { %v3672_v30 = vadd.f32 %v3671_v8, %v3658_v34 }
 0x2d3   :  { %v3686_v54 = vadd.f32 %v3685_v20, %v3672_v30 }
 0x2d5   :  { %3914 = vst [vmem:[%s9621_s3 + $0x10] sm:$0xff] %v3686_v54  ;;  %v3916_v49 = vadd.f32 %v3686_v54, %v3684_v24  ;;  %v3932_v60 = vmul.f32 %v3686_v54, %v3686_v54 }
 0x2d7   :  { %v3917_v63 = vrot.slane %v3916_v49, 4  ;;  %v3934_v44 = vadd.f32 %v3932_v60, %v3930_v28 }
 0x2d9   :  { %v3918_v37 = vadd.f32 %v3917_v63, %v3916_v49  ;;  %v3935_v3 = vrot.slane %v3934_v44, 4 }
 0x2db   :  { %v3919_v51 = vrot.slane %v3918_v37, 2  ;;  %v3936_v57 = vadd.f32 %v3935_v3, %v3934_v44 }
 0x2dd   :  { %v3920_v40 = vadd.f32 %v3919_v51, %v3918_v37  ;;  %v3937_v61 = vrot.slane %v3936_v57, 2 }
 0x2df   :  { %v3921_v22 = vrot.slane %v3920_v40, 1  ;;  %v3938_v6 = vadd.f32 %v3937_v61, %v3936_v57  ;;  %v3697_v55 = vpop.f32.mrf.mxu0  ;;  %v3711_v7 = vpop.f32.mrf.mxu1 }
 0x2e0   :  { %v3712_v4 = vadd.f32 %v3711_v7, %v3697_v55 }
 0x2e1   :  { %v3939_v21 = vrot.slane %v3938_v6, 1  ;;  %v3922_v43 = vadd.f32 %v3921_v22, %v3920_v40 }
 0x2e3   :  { %v3940_v10 = vadd.f32 %v3939_v21, %v3938_v6 }
 0x2e5   :  { %v3949_v31 = vsel %vm3948_vm12, %v3922_v43, %v3940_v10 }
 0x2e6   :  { %v3952_v13 = vsel %vm3951_vm13, %v3949_v31, 0.0 }
 0x2e7   :  { %3954 = vst [vmem:[%s9622_s4] sm:$0xff] %v3952_v13  ;;  %v3699_v2 = vpop.f32.mrf.mxu0  ;;  %v3713_v62 = vpop.f32.mrf.mxu1 }
 0x2e8   :  { %v3725_v46 = vpop.f32.mrf.mxu2  ;;  %v3739_v45 = vpop.f32.mrf.mxu3  ;;  %v3714_v27 = vadd.f32 %v3713_v62, %v3699_v2 }
 0x2e9   :  { %v3726_v41 = vadd.f32 %v3725_v46, %v3712_v4 }
 0x2eb   :  { %v3740_v47 = vadd.f32 %v3739_v45, %v3726_v41 }
 0x2f0   :  { %v3727_v36 = vpop.f32.mrf.mxu2  ;;  %v3741_v50 = vpop.f32.mrf.mxu3 }
 0x2f1   :  { %v3728_v0 = vadd.f32 %v3727_v36, %v3714_v27 }
 0x2f3   :  { %v3742_v59 = vadd.f32 %v3741_v50, %v3728_v0 }
 0x2ff   :  { %v3753_v9 = vpop.f32.mrf.mxu0  ;;  %v3767_v17 = vpop.f32.mrf.mxu1 }
 0x300   :  { %v3754_v23 = vadd.f32 %v3753_v9, %v3740_v47 }
 0x302   :  { %v3768_v38 = vadd.f32 %v3767_v17, %v3754_v23 }
 0x307   :  { %v3755_v39 = vpop.f32.mrf.mxu0  ;;  %v3769_v56 = vpop.f32.mrf.mxu1 }
 0x308   :  { %v3781_v5 = vpop.f32.mrf.mxu2  ;;  %v3795_v14 = vpop.f32.mrf.mxu3  ;;  %v3756_v26 = vadd.f32 %v3755_v39, %v3742_v59 }
 0x309   :  { %v3782_v58 = vadd.f32 %v3781_v5, %v3768_v38 }
 0x30a   :  { %v3770_v1 = vadd.f32 %v3769_v56, %v3756_v26 }
 0x30b   :  { %v3796_v33 = vadd.f32 %v3795_v14, %v3782_v58 }
 0x310   :  { %v3783_v16 = vpop.f32.mrf.mxu2  ;;  %v3797_v25 = vpop.f32.mrf.mxu3 }
 0x311   :  { %v3784_v48 = vadd.f32 %v3783_v16, %v3770_v1 }
 0x313   :  { %v3798_v42 = vadd.f32 %v3797_v25, %v3784_v48 }
 0x31f   :  { %v3809_v35 = vpop.f32.mrf.mxu0  ;;  %v3823_v19 = vpop.f32.mrf.mxu1 }
 0x320   :  { %v3810_v32 = vadd.f32 %v3809_v35, %v3796_v33 }
 0x322   :  { %v3824_v18 = vadd.f32 %v3823_v19, %v3810_v32 }
 0x327   :  { %v3811_v15 = vpop.f32.mrf.mxu0  ;;  %v3825_v29 = vpop.f32.mrf.mxu1 }
 0x328   :  { %v3837_v52 = vpop.f32.mrf.mxu2  ;;  %v3851_v11 = vpop.f32.mrf.mxu3  ;;  %v3812_v12 = vadd.f32 %v3811_v15, %v3798_v42 }
 0x329   :  { %v3838_v24 = vadd.f32 %v3837_v52, %v3824_v18 }
 0x32a   :  { %v3826_v20 = vadd.f32 %v3825_v29, %v3812_v12 }
 0x32b   :  { %v3852_v8 = vadd.f32 %v3851_v11, %v3838_v24 }
 0x330   :  { %v3839_v53 = vpop.f32.mrf.mxu2  ;;  %v3853_v34 = vpop.f32.mrf.mxu3 }
 0x331   :  { %v3840_v49 = vadd.f32 %v3839_v53, %v3826_v20 }
 0x333   :  { %v3854_v37 = vadd.f32 %v3853_v34, %v3840_v49 }
 0x33f   :  { %v3865_v30 = vpop.f32.mrf.mxu0  ;;  %v3879_v28 = vpop.f32.mrf.mxu1 }
 0x340   :  { %v3866_v54 = vadd.f32 %v3865_v30, %v3852_v8 }
 0x342   :  { %v3880_v60 = vadd.f32 %v3879_v28, %v3866_v54 }
 0x346   :  { %v3893_v63 = vpop.f32.mrf.mxu2  ;;  %v3907_v44 = vpop.f32.mrf.mxu3 }
 0x347   :  { %v3894_v3 = vadd.f32 %v3893_v63, %v3880_v60  ;;  %v3867_v51 = vpop.f32.mrf.mxu0  ;;  %v3881_v61 = vpop.f32.mrf.mxu1 }
 0x348   :  { %v3868_v40 = vadd.f32 %v3867_v51, %v3854_v37 }
 0x349   :  { %v3908_v57 = vadd.f32 %v3907_v44, %v3894_v3 }
 0x34a   :  { %v3882_v22 = vadd.f32 %v3881_v61, %v3868_v40 }
 0x34b   :  { %3913 = vst [vmem:[%s9621_s3 + $0x8] sm:$0xff] %v3908_v57  ;;  %v3931_v31 = vmul.f32 %v3908_v57, %v3908_v57 }
 0x34e   :  { %v3895_v6 = vpop.f32.mrf.mxu2  ;;  %v3909_v43 = vpop.f32.mrf.mxu3 }
 0x34f   :  { %v3896_v21 = vadd.f32 %v3895_v6, %v3882_v22 }
 0x351   :  { %v3910_v10 = vadd.f32 %v3909_v43, %v3896_v21 }
 0x353   :  { %3915 = vst [vmem:[%s9621_s3 + $0x18] sm:$0xff] %v3910_v10  ;;  %v3923_v13 = vadd.f32 %v3910_v10, %v3908_v57  ;;  %v3933_v55 = vmul.f32 %v3910_v10, %v3910_v10 }
 0x355   :  { %v3924_v7 = vrot.slane %v3923_v13, 4  ;;  %v3941_v46 = vadd.f32 %v3933_v55, %v3931_v31 }
 0x357   :  { %v3925_v45 = vadd.f32 %v3924_v7, %v3923_v13  ;;  %v3942_v2 = vrot.slane %v3941_v46, 4 }
 0x359   :  { %v3926_v62 = vrot.slane %v3925_v45, 2  ;;  %v3943_v36 = vadd.f32 %v3942_v2, %v3941_v46 }
 0x35b   :  { %v3927_v50 = vadd.f32 %v3926_v62, %v3925_v45  ;;  %v3944_v9 = vrot.slane %v3943_v36, 2 }
 0x35d   :  { %v3928_v17 = vrot.slane %v3927_v50, 1  ;;  %v3945_v4 = vadd.f32 %v3944_v9, %v3943_v36 }
 0x35f   :  { %v3946_v5 = vrot.slane %v3945_v4, 1  ;;  %v3929_v14 = vadd.f32 %v3928_v17, %v3927_v50 }
 0x361   :  { %v3947_v41 = vadd.f32 %v3946_v5, %v3945_v4 }
 0x363   :  { %v3950_v39 = vsel %vm3948_vm12, %v3929_v14, %v3947_v41 }
 0x364   :  { %v3953_v47 = vsel %vm3951_vm13, %v3950_v39, 0.0 }
 0x365   :  { %3955 = vst [vmem:[%s9622_s4 + $0x8] sm:$0xff] %v3953_v47 }

</bundles_post_ra>
